<compile_context>
chip_gen: v5e
topology: v5e:2x2
jax: 0.10.0
libtpu: 0.0.40
codegen_flags: <defaults>
</compile_context>

<pallas_src>
import jax
import jax.numpy as jnp
from jax.experimental import pallas as pl
from jax.experimental.pallas import tpu as pltpu


def _vmem_limit_bytes():
    """Generation-aware VMEM budget (v7x: 64 MiB physical, v5e/v6e: 128 MiB)."""
    try:
        cap = int(pltpu.get_tpu_info().vmem_capacity_bytes)
    except Exception:
        cap = 64 * 1024 * 1024
    if not cap or cap < (16 << 20):
        cap = 64 * 1024 * 1024
    return int(min(cap * 3 // 4, 100 * 1024 * 1024))


# ------------------------------ Pallas kernel -------------------------------

def _make_conv_stats_kernel(offsets, thw, matmul_dtype):
    """Fused ReLU + direct conv (k*k tap matmuls) + per-image BN statistics.

    Grid = (N, J): batch axis "parallel" (megacore-safe, per-image stats),
    row-tile axis "arbitrary" (stats accumulate in a VMEM scratch across it).
    """
    thw_aligned = (thw % 8 == 0)

    def kernel(x_ref, w_ref, mask_ref, y_ref, stat_ref, stat_acc):
        j = pl.program_id(1)

        @pl.when(j == 0)
        def _():
            stat_acc[...] = jnp.zeros_like(stat_acc)

        row0 = j * thw
        if thw_aligned:
            row0 = pl.multiple_of(row0, 8)

        acc = jnp.zeros((thw, y_ref.shape[-1]), jnp.float32)
        for t, off in enumerate(offsets):            # static unroll over k*k taps
            xt = x_ref[pl.ds(row0 + off, thw), :]    # contiguous window of resident image
            xt = jnp.maximum(xt, 0.0).astype(matmul_dtype)   # fused ReLU (+ opt. bf16)
            acc = acc + jnp.dot(xt, w_ref[t], preferred_element_type=jnp.float32)

        # zero garbage columns / padded bottom rows -> exact BN statistics
        accm = acc * mask_ref[...]
        y_ref[...] = accm
        stat_acc[0:1, :] += jnp.sum(accm, axis=0, keepdims=True)
        stat_acc[1:2, :] += jnp.sum(accm * accm, axis=0, keepdims=True)

        @pl.when(j == pl.num_programs(1) - 1)
        def _():
            stat_ref[...] = stat_acc[...]

    return kernel


# ------------------------------- JAX wrapper --------------------------------

def ws_relu_conv_bn(x, weights, x_id, gamma, beta, *, stride=1, padding=0,
                    eps=1e-5, row_tile=None, matmul_dtype=jnp.float32):
    """Forward of WSReLUConvBN.  x: (N, C_in*len(x_id), H, W) float32 NCHW."""
    # weight sharing: concat the selected kernels along the input-channel dim
    w_cat = jnp.concatenate([weights[i] for i in x_id], axis=1)   # (C_out, C, k, k)
    C_out, C_in_tot, k, _ = w_cat.shape
    N, C, H, W = x.shape
    assert C == C_in_tot, "input channels must equal C_in * len(x_id)"

    Hp, Wp = H + 2 * padding, W + 2 * padding
    assert Hp >= k and Wp >= k, "kernel larger than padded input"
    # the kernel always computes the stride-1 conv; stride>1 subsamples afterwards
    Ho1, Wo1 = Hp - k + 1, Wp - k + 1

    # ---- row tiling (shape aware) ----
    if row_tile is None:
        th = max(1, 4096 // Wp)                 # ~4K matmul rows per grid step
    else:
        th = max(1, int(row_tile))
    th = min(th, Ho1)
    if th < Ho1:
        th = max(8, (th // 8) * 8)              # keep (block rows) % 8 == 0
    J = pl.cdiv(Ho1, th)
    Ho_pad = J * th
    THW = th * Wp
    L_out = Ho_pad * Wp
    Hp_alloc = Ho_pad + k                       # halo + slack row for the +kj overhang
    L_in = Hp_alloc * Wp

    # ---- layout prep (cheap XLA glue; the conv never materializes im2col) ----
    x_nhwc = jnp.transpose(x, (0, 2, 3, 1))
    x_pad = jnp.pad(x_nhwc, ((0, 0),
                             (padding, Hp_alloc - H - padding),
                             (padding, padding),
                             (0, 0)))
    x_flat = x_pad.reshape(N, L_in, C)

    # per-tap (C, C_out) weight matrices, tap-major: w_taps[ki*k+kj][c, co]
    w_taps = jnp.transpose(w_cat, (2, 3, 1, 0)).reshape(k * k, C, C_out)
    w_taps = w_taps.astype(matmul_dtype)
    offsets = tuple(ki * Wp + kj for ki in range(k) for kj in range(k))

    # validity mask over the flattened (Ho_pad, Wp) output grid
    row_valid = jnp.arange(Ho_pad) < Ho1
    col_valid = jnp.arange(Wp) < Wo1
    mask = (row_valid[:, None] & col_valid[None, :]).astype(jnp.float32)
    mask = mask.reshape(L_out, 1)

    kernel = _make_conv_stats_kernel(offsets, THW, matmul_dtype)

    y_flat, stats = pl.pallas_call(
        kernel,
        out_shape=(jax.ShapeDtypeStruct((N, L_out, C_out), jnp.float32),
                   jax.ShapeDtypeStruct((N, 8, C_out), jnp.float32)),
        grid_spec=pltpu.PrefetchScalarGridSpec(
            num_scalar_prefetch=0,
            grid=(N, J),
            in_specs=[
                # whole padded image resident across the row-tile axis
                pl.BlockSpec((None, L_in, C), lambda n, j: (n, 0, 0)),
                # constant per-tap weight slab
                pl.BlockSpec((k * k, C, C_out), lambda n, j: (0, 0, 0)),
                # per-row-tile validity mask
                pl.BlockSpec((THW, 1), lambda n, j: (j, 0)),
            ],
            out_specs=(
                # channel-compact intermediate y (no 128-lane HBM padding)
                pl.BlockSpec((None, THW, C_out), lambda n, j: (n, j, 0)),
                # per-image BN sum / sumsq (rows 0,1), combined in XLA
                pl.BlockSpec((None, 8, C_out), lambda n, j: (n, 0, 0)),
            ),
            scratch_shapes=[pltpu.VMEM((8, C_out), jnp.float32)],
        ),
        compiler_params=pltpu.CompilerParams(
            dimension_semantics=("parallel", "arbitrary"),
            vmem_limit_bytes=_vmem_limit_bytes()),
    )(x_flat, w_taps, mask)

    # ---- BN params + normalize + NHWC->NCHW: single fused XLA epilogue ----
    y4 = y_flat.reshape(N, Ho_pad, Wp, C_out)[:, :Ho1, :Wo1, :]
    if stride == 1:
        cnt = N * Ho1 * Wo1
        mean = jnp.sum(stats[:, 0, :], axis=0) / cnt
        # biased variance (PyTorch BN train-mode normalization); guard the
        # E[y^2]-mean^2 cancellation against tiny negative values.
        var = jnp.maximum(jnp.sum(stats[:, 1, :], axis=0) / cnt - mean * mean, 0.0)
        y_out = y4
    else:
        # TODO(synk): natively strided tap loop instead of subsampling the
        # stride-1 conv (stats recomputed here from the strided output).
        y_out = y4[:, ::stride, ::stride, :]
        mean = jnp.mean(y_out, axis=(0, 1, 2))
        var = jnp.var(y_out, axis=(0, 1, 2))

    inv_std = jax.lax.rsqrt(var + eps)
    scale = (gamma * inv_std).reshape(1, 1, 1, C_out)
    shift = (beta - mean * gamma * inv_std).reshape(1, 1, 1, C_out)
    # TODO(synk): BatchNorm running_mean/running_var updates are a training-time
    # side effect that does not change the forward output; not materialized.
    out = y_out * scale + shift
    return jnp.transpose(out, (0, 3, 1, 2))


# ---------------------------- pure-JAX reference ----------------------------

def _reference(x, weights, x_id, gamma, beta, stride, padding, eps=1e-5):
    w_cat = jnp.concatenate([weights[i] for i in x_id], axis=1)
    xr = jnp.maximum(x, 0.0)
    y = jax.lax.conv_general_dilated(
        xr, w_cat, window_strides=(stride, stride),
        padding=[(padding, padding), (padding, padding)],
        dimension_numbers=("NCHW", "OIHW", "NCHW"))
    mean = y.mean(axis=(0, 2, 3), keepdims=True)
    var = y.var(axis=(0, 2, 3), keepdims=True)          # biased
    yhat = (y - mean) / jnp.sqrt(var + eps)
    return gamma.reshape(1, -1, 1, 1) * yhat + beta.reshape(1, -1, 1, 1)


if __name__ == "__main__":
    key = jax.random.PRNGKey(0)

    num_possible_inputs, C_out, C_in, kernel_size = 3, 8, 4, 3
    x_id = (0, 2)                        # picks 2 shared-weight slices -> C = C_in*2
    C = C_in * len(x_id)

    keys = jax.random.split(key, num_possible_inputs + 3)
    weights = [0.1 * jax.random.normal(keys[i],
                                       (C_out, C_in, kernel_size, kernel_size),
                                       jnp.float32)
               for i in range(num_possible_inputs)]
    gamma = 1.0 + 0.1 * jax.random.normal(keys[-3], (C_out,), jnp.float32)
    beta = 0.1 * jax.random.normal(keys[-2], (C_out,), jnp.float32)

    # test 1: stride 1, padding 1, single row-tile (whole image per grid step), f32 MXU
    N, H, W = 2, 16, 16
    x1 = jax.random.normal(keys[-1], (N, C, H, W), jnp.float32)
    out1 = jax.block_until_ready(
        ws_relu_conv_bn(x1, weights, x_id, gamma, beta, stride=1, padding=1))
    ref1 = _reference(x1, weights, x_id, gamma, beta, 1, 1)
    assert out1.shape == ref1.shape == (N, C_out, H, W)
    assert float(jnp.max(jnp.abs(out1 - ref1))) < 1e-3, "mismatch vs reference (f32)"

    # test 2: multi row-tile (J=2) + odd spatial size -> padded garbage rows/columns
    H2 = W2 = 15
    x2 = jax.random.normal(jax.random.PRNGKey(1), (N, C, H2, W2), jnp.float32)
    out2 = jax.block_until_ready(
        ws_relu_conv_bn(x2, weights, x_id, gamma, beta, stride=1, padding=1, row_tile=8))
    ref2 = _reference(x2, weights, x_id, gamma, beta, 1, 1)
    assert out2.shape == ref2.shape == (N, C_out, H2, W2)
    assert float(jnp.max(jnp.abs(out2 - ref2))) < 1e-3, "mismatch vs reference (tiled)"

    # test 3: bf16 MXU operands with f32 accumulation (fast path on v5e/v6e/v7x)
    out3 = jax.block_until_ready(
        ws_relu_conv_bn(x1, weights, x_id, gamma, beta, stride=1, padding=1,
                        matmul_dtype=jnp.bfloat16))
    assert float(jnp.max(jnp.abs(out3 - ref1))) < 5e-2, "mismatch vs reference (bf16)"

    # test 4: stride=2 fallback (stride-1 conv + subsample, stats recomputed in XLA)
    out4 = jax.block_until_ready(
        ws_relu_conv_bn(x1, weights, x_id, gamma, beta, stride=2, padding=1))
    ref4 = _reference(x1, weights, x_id, gamma, beta, 2, 1)
    assert out4.shape == ref4.shape
    assert float(jnp.max(jnp.abs(out4 - ref4))) < 1e-3, "mismatch vs reference (stride 2)"

    print("KERNEL_OK")
</pallas_src>

<mosaic_0001>
module attributes {stable_mosaic.version = 11 : i64} {
  func.func @kernel(%arg0: i32, %arg1: i32, %arg2: memref<1x342x8xf32, #tpu.memory_space<vmem>>, %arg3: memref<9x8x8xf32, #tpu.memory_space<vmem>>, %arg4: memref<288x1xf32, #tpu.memory_space<vmem>>, %arg5: memref<1x288x8xf32, #tpu.memory_space<vmem>>, %arg6: memref<1x8x8xf32, #tpu.memory_space<vmem>>, %arg7: memref<8x8xf32, #tpu.memory_space<vmem>>) attributes {dimension_semantics = [#tpu.dimension_semantics<parallel>, #tpu.dimension_semantics<arbitrary>], iteration_bounds = array<i64: 2, 1>, scalar_prefetch = 0 : i64, scratch_operands = 1 : i64, tpu.core_type = #tpu.core_type<tc>, window_params = [{transform_indices = @transform_0, window_bounds = array<i64: 1, 342, 8>}, {pipeline_mode = #tpu.pipeline_mode<synchronous>, transform_indices = @transform_1, window_bounds = array<i64: 9, 8, 8>}, {transform_indices = @transform_2, window_bounds = array<i64: 288, 1>}, {transform_indices = @transform_3, window_bounds = array<i64: 1, 288, 8>}, {transform_indices = @transform_4, window_bounds = array<i64: 1, 8, 8>}]} {
    %c0_i32 = arith.constant 0 : i32
    %0 = arith.cmpi eq, %arg1, %c0_i32 : i32
    %1 = arith.extui %0 : i1 to i32
    %c0_i32_0 = arith.constant 0 : i32
    %2 = arith.cmpi ne, %1, %c0_i32_0 : i32
    scf.if %2 {
      %cst_73 = arith.constant 0.000000e+00 : f32
      %116 = vector.broadcast %cst_73 : f32 to vector<8x8xf32>
      %c0_74 = arith.constant 0 : index
      %c0_75 = arith.constant 0 : index
      %117 = vector.load %arg7[%c0_74, %c0_75] : memref<8x8xf32, #tpu.memory_space<vmem>>, vector<8x8xf32>
      tpu.vector_store %arg7[%c0_74, %c0_75], %116 {strides = array<i32>} : memref<8x8xf32, #tpu.memory_space<vmem>>, vector<8x8xf32>,
    } else {
    }
    %c288_i32 = arith.constant 288 : i32
    %3 = arith.muli %arg1, %c288_i32 : i32
    %4 = tpu.assume_multiple %3, 8 : i32
    %cst = arith.constant 0.000000e+00 : f32
    %5 = vector.broadcast %cst : f32 to vector<288x8xf32>
    %c0_i32_1 = arith.constant 0 : i32
    %6 = arith.addi %4, %c0_i32_1 : i32
    %c0 = arith.constant 0 : index
    %7 = arith.index_cast %6 : i32 to index
    %c0_2 = arith.constant 0 : index
    %8 = vector.load %arg2[%c0, %7, %c0_2] : memref<1x342x8xf32, #tpu.memory_space<vmem>>, vector<1x288x8xf32>
    %9 = vector.shape_cast %8 : vector<1x288x8xf32> to vector<288x8xf32>
    %cst_3 = arith.constant 0.000000e+00 : f32
    %10 = vector.broadcast %cst_3 : f32 to vector<288x8xf32>
    %11 = arith.maximumf %9, %10 : vector<288x8xf32>
    %c0_4 = arith.constant 0 : index
    %c0_5 = arith.constant 0 : index
    %c0_6 = arith.constant 0 : index
    %12 = vector.load %arg3[%c0_4, %c0_5, %c0_6] : memref<9x8x8xf32, #tpu.memory_space<vmem>>, vector<1x8x8xf32>
    %13 = vector.shape_cast %12 : vector<1x8x8xf32> to vector<8x8xf32>
    %cst_7 = arith.constant dense<0.000000e+00> : vector<288x8xf32>
    %14 = tpu.matmul %11, %13, %cst_7 {dimension_numbers = #tpu.dot_dimension_numbers<[1], [0], [0], [1], [0, 0, 1, 1], [], []>} : vector<288x8xf32>, vector<8x8xf32>, vector<288x8xf32> -> vector<288x8xf32>
    %15 = arith.addf %5, %14 : vector<288x8xf32>
    %c1_i32 = arith.constant 1 : i32
    %16 = arith.addi %4, %c1_i32 : i32
    %c0_8 = arith.constant 0 : index
    %17 = arith.index_cast %16 : i32 to index
    %c0_9 = arith.constant 0 : index
    %18 = vector.load %arg2[%c0_8, %17, %c0_9] : memref<1x342x8xf32, #tpu.memory_space<vmem>>, vector<1x288x8xf32>
    %19 = vector.shape_cast %18 : vector<1x288x8xf32> to vector<288x8xf32>
    %cst_10 = arith.constant 0.000000e+00 : f32
    %20 = vector.broadcast %cst_10 : f32 to vector<288x8xf32>
    %21 = arith.maximumf %19, %20 : vector<288x8xf32>
    %c1 = arith.constant 1 : index
    %c0_11 = arith.constant 0 : index
    %c0_12 = arith.constant 0 : index
    %22 = vector.load %arg3[%c1, %c0_11, %c0_12] : memref<9x8x8xf32, #tpu.memory_space<vmem>>, vector<1x8x8xf32>
    %23 = vector.shape_cast %22 : vector<1x8x8xf32> to vector<8x8xf32>
    %cst_13 = arith.constant dense<0.000000e+00> : vector<288x8xf32>
    %24 = tpu.matmul %21, %23, %cst_13 {dimension_numbers = #tpu.dot_dimension_numbers<[1], [0], [0], [1], [0, 0, 1, 1], [], []>} : vector<288x8xf32>, vector<8x8xf32>, vector<288x8xf32> -> vector<288x8xf32>
    %25 = arith.addf %15, %24 : vector<288x8xf32>
    %c2_i32 = arith.constant 2 : i32
    %26 = arith.addi %4, %c2_i32 : i32
    %c0_14 = arith.constant 0 : index
    %27 = arith.index_cast %26 : i32 to index
    %c0_15 = arith.constant 0 : index
    %28 = vector.load %arg2[%c0_14, %27, %c0_15] : memref<1x342x8xf32, #tpu.memory_space<vmem>>, vector<1x288x8xf32>
    %29 = vector.shape_cast %28 : vector<1x288x8xf32> to vector<288x8xf32>
    %cst_16 = arith.constant 0.000000e+00 : f32
    %30 = vector.broadcast %cst_16 : f32 to vector<288x8xf32>
    %31 = arith.maximumf %29, %30 : vector<288x8xf32>
    %c2 = arith.constant 2 : index
    %c0_17 = arith.constant 0 : index
    %c0_18 = arith.constant 0 : index
    %32 = vector.load %arg3[%c2, %c0_17, %c0_18] : memref<9x8x8xf32, #tpu.memory_space<vmem>>, vector<1x8x8xf32>
    %33 = vector.shape_cast %32 : vector<1x8x8xf32> to vector<8x8xf32>
    %cst_19 = arith.constant dense<0.000000e+00> : vector<288x8xf32>
    %34 = tpu.matmul %31, %33, %cst_19 {dimension_numbers = #tpu.dot_dimension_numbers<[1], [0], [0], [1], [0, 0, 1, 1], [], []>} : vector<288x8xf32>, vector<8x8xf32>, vector<288x8xf32> -> vector<288x8xf32>
    %35 = arith.addf %25, %34 : vector<288x8xf32>
    %c18_i32 = arith.constant 18 : i32
    %36 = arith.addi %4, %c18_i32 : i32
    %c0_20 = arith.constant 0 : index
    %37 = arith.index_cast %36 : i32 to index
    %c0_21 = arith.constant 0 : index
    %38 = vector.load %arg2[%c0_20, %37, %c0_21] : memref<1x342x8xf32, #tpu.memory_space<vmem>>, vector<1x288x8xf32>
    %39 = vector.shape_cast %38 : vector<1x288x8xf32> to vector<288x8xf32>
    %cst_22 = arith.constant 0.000000e+00 : f32
    %40 = vector.broadcast %cst_22 : f32 to vector<288x8xf32>
    %41 = arith.maximumf %39, %40 : vector<288x8xf32>
    %c3 = arith.constant 3 : index
    %c0_23 = arith.constant 0 : index
    %c0_24 = arith.constant 0 : index
    %42 = vector.load %arg3[%c3, %c0_23, %c0_24] : memref<9x8x8xf32, #tpu.memory_space<vmem>>, vector<1x8x8xf32>
    %43 = vector.shape_cast %42 : vector<1x8x8xf32> to vector<8x8xf32>
    %cst_25 = arith.constant dense<0.000000e+00> : vector<288x8xf32>
    %44 = tpu.matmul %41, %43, %cst_25 {dimension_numbers = #tpu.dot_dimension_numbers<[1], [0], [0], [1], [0, 0, 1, 1], [], []>} : vector<288x8xf32>, vector<8x8xf32>, vector<288x8xf32> -> vector<288x8xf32>
    %45 = arith.addf %35, %44 : vector<288x8xf32>
    %c19_i32 = arith.constant 19 : i32
    %46 = arith.addi %4, %c19_i32 : i32
    %c0_26 = arith.constant 0 : index
    %47 = arith.index_cast %46 : i32 to index
    %c0_27 = arith.constant 0 : index
    %48 = vector.load %arg2[%c0_26, %47, %c0_27] : memref<1x342x8xf32, #tpu.memory_space<vmem>>, vector<1x288x8xf32>
    %49 = vector.shape_cast %48 : vector<1x288x8xf32> to vector<288x8xf32>
    %cst_28 = arith.constant 0.000000e+00 : f32
    %50 = vector.broadcast %cst_28 : f32 to vector<288x8xf32>
    %51 = arith.maximumf %49, %50 : vector<288x8xf32>
    %c4 = arith.constant 4 : index
    %c0_29 = arith.constant 0 : index
    %c0_30 = arith.constant 0 : index
    %52 = vector.load %arg3[%c4, %c0_29, %c0_30] : memref<9x8x8xf32, #tpu.memory_space<vmem>>, vector<1x8x8xf32>
    %53 = vector.shape_cast %52 : vector<1x8x8xf32> to vector<8x8xf32>
    %cst_31 = arith.constant dense<0.000000e+00> : vector<288x8xf32>
    %54 = tpu.matmul %51, %53, %cst_31 {dimension_numbers = #tpu.dot_dimension_numbers<[1], [0], [0], [1], [0, 0, 1, 1], [], []>} : vector<288x8xf32>, vector<8x8xf32>, vector<288x8xf32> -> vector<288x8xf32>
    %55 = arith.addf %45, %54 : vector<288x8xf32>
    %c20_i32 = arith.constant 20 : i32
    %56 = arith.addi %4, %c20_i32 : i32
    %c0_32 = arith.constant 0 : index
    %57 = arith.index_cast %56 : i32 to index
    %c0_33 = arith.constant 0 : index
    %58 = vector.load %arg2[%c0_32, %57, %c0_33] : memref<1x342x8xf32, #tpu.memory_space<vmem>>, vector<1x288x8xf32>
    %59 = vector.shape_cast %58 : vector<1x288x8xf32> to vector<288x8xf32>
    %cst_34 = arith.constant 0.000000e+00 : f32
    %60 = vector.broadcast %cst_34 : f32 to vector<288x8xf32>
    %61 = arith.maximumf %59, %60 : vector<288x8xf32>
    %c5 = arith.constant 5 : index
    %c0_35 = arith.constant 0 : index
    %c0_36 = arith.constant 0 : index
    %62 = vector.load %arg3[%c5, %c0_35, %c0_36] : memref<9x8x8xf32, #tpu.memory_space<vmem>>, vector<1x8x8xf32>
    %63 = vector.shape_cast %62 : vector<1x8x8xf32> to vector<8x8xf32>
    %cst_37 = arith.constant dense<0.000000e+00> : vector<288x8xf32>
    %64 = tpu.matmul %61, %63, %cst_37 {dimension_numbers = #tpu.dot_dimension_numbers<[1], [0], [0], [1], [0, 0, 1, 1], [], []>} : vector<288x8xf32>, vector<8x8xf32>, vector<288x8xf32> -> vector<288x8xf32>
    %65 = arith.addf %55, %64 : vector<288x8xf32>
    %c36_i32 = arith.constant 36 : i32
    %66 = arith.addi %4, %c36_i32 : i32
    %c0_38 = arith.constant 0 : index
    %67 = arith.index_cast %66 : i32 to index
    %c0_39 = arith.constant 0 : index
    %68 = vector.load %arg2[%c0_38, %67, %c0_39] : memref<1x342x8xf32, #tpu.memory_space<vmem>>, vector<1x288x8xf32>
    %69 = vector.shape_cast %68 : vector<1x288x8xf32> to vector<288x8xf32>
    %cst_40 = arith.constant 0.000000e+00 : f32
    %70 = vector.broadcast %cst_40 : f32 to vector<288x8xf32>
    %71 = arith.maximumf %69, %70 : vector<288x8xf32>
    %c6 = arith.constant 6 : index
    %c0_41 = arith.constant 0 : index
    %c0_42 = arith.constant 0 : index
    %72 = vector.load %arg3[%c6, %c0_41, %c0_42] : memref<9x8x8xf32, #tpu.memory_space<vmem>>, vector<1x8x8xf32>
    %73 = vector.shape_cast %72 : vector<1x8x8xf32> to vector<8x8xf32>
    %cst_43 = arith.constant dense<0.000000e+00> : vector<288x8xf32>
    %74 = tpu.matmul %71, %73, %cst_43 {dimension_numbers = #tpu.dot_dimension_numbers<[1], [0], [0], [1], [0, 0, 1, 1], [], []>} : vector<288x8xf32>, vector<8x8xf32>, vector<288x8xf32> -> vector<288x8xf32>
    %75 = arith.addf %65, %74 : vector<288x8xf32>
    %c37_i32 = arith.constant 37 : i32
    %76 = arith.addi %4, %c37_i32 : i32
    %c0_44 = arith.constant 0 : index
    %77 = arith.index_cast %76 : i32 to index
    %c0_45 = arith.constant 0 : index
    %78 = vector.load %arg2[%c0_44, %77, %c0_45] : memref<1x342x8xf32, #tpu.memory_space<vmem>>, vector<1x288x8xf32>
    %79 = vector.shape_cast %78 : vector<1x288x8xf32> to vector<288x8xf32>
    %cst_46 = arith.constant 0.000000e+00 : f32
    %80 = vector.broadcast %cst_46 : f32 to vector<288x8xf32>
    %81 = arith.maximumf %79, %80 : vector<288x8xf32>
    %c7 = arith.constant 7 : index
    %c0_47 = arith.constant 0 : index
    %c0_48 = arith.constant 0 : index
    %82 = vector.load %arg3[%c7, %c0_47, %c0_48] : memref<9x8x8xf32, #tpu.memory_space<vmem>>, vector<1x8x8xf32>
    %83 = vector.shape_cast %82 : vector<1x8x8xf32> to vector<8x8xf32>
    %cst_49 = arith.constant dense<0.000000e+00> : vector<288x8xf32>
    %84 = tpu.matmul %81, %83, %cst_49 {dimension_numbers = #tpu.dot_dimension_numbers<[1], [0], [0], [1], [0, 0, 1, 1], [], []>} : vector<288x8xf32>, vector<8x8xf32>, vector<288x8xf32> -> vector<288x8xf32>
    %85 = arith.addf %75, %84 : vector<288x8xf32>
    %c38_i32 = arith.constant 38 : i32
    %86 = arith.addi %4, %c38_i32 : i32
    %c0_50 = arith.constant 0 : index
    %87 = arith.index_cast %86 : i32 to index
    %c0_51 = arith.constant 0 : index
    %88 = vector.load %arg2[%c0_50, %87, %c0_51] : memref<1x342x8xf32, #tpu.memory_space<vmem>>, vector<1x288x8xf32>
    %89 = vector.shape_cast %88 : vector<1x288x8xf32> to vector<288x8xf32>
    %cst_52 = arith.constant 0.000000e+00 : f32
    %90 = vector.broadcast %cst_52 : f32 to vector<288x8xf32>
    %91 = arith.maximumf %89, %90 : vector<288x8xf32>
    %c8 = arith.constant 8 : index
    %c0_53 = arith.constant 0 : index
    %c0_54 = arith.constant 0 : index
    %92 = vector.load %arg3[%c8, %c0_53, %c0_54] : memref<9x8x8xf32, #tpu.memory_space<vmem>>, vector<1x8x8xf32>
    %93 = vector.shape_cast %92 : vector<1x8x8xf32> to vector<8x8xf32>
    %cst_55 = arith.constant dense<0.000000e+00> : vector<288x8xf32>
    %94 = tpu.matmul %91, %93, %cst_55 {dimension_numbers = #tpu.dot_dimension_numbers<[1], [0], [0], [1], [0, 0, 1, 1], [], []>} : vector<288x8xf32>, vector<8x8xf32>, vector<288x8xf32> -> vector<288x8xf32>
    %95 = arith.addf %85, %94 : vector<288x8xf32>
    %c0_56 = arith.constant 0 : index
    %c0_57 = arith.constant 0 : index
    %96 = vector.load %arg4[%c0_56, %c0_57] : memref<288x1xf32, #tpu.memory_space<vmem>>, vector<288x1xf32>
    %97 = vector.broadcast %96 : vector<288x1xf32> to vector<288x8xf32>
    %98 = arith.mulf %95, %97 : vector<288x8xf32>
    %c0_58 = arith.constant 0 : index
    %c0_59 = arith.constant 0 : index
    %c0_60 = arith.constant 0 : index
    %99 = vector.load %arg5[%c0_58, %c0_59, %c0_60] : memref<1x288x8xf32, #tpu.memory_space<vmem>>, vector<1x288x8xf32>
    %100 = vector.shape_cast %99 : vector<1x288x8xf32> to vector<288x8xf32>
    %101 = vector.shape_cast %98 : vector<288x8xf32> to vector<1x288x8xf32>
    tpu.vector_store %arg5[%c0_58, %c0_59, %c0_60], %101 {strides = array<i32>} : memref<1x288x8xf32, #tpu.memory_space<vmem>>, vector<1x288x8xf32>,
    %c0_61 = arith.constant 0 : index
    %c0_62 = arith.constant 0 : index
    %102 = vector.load %arg7[%c0_61, %c0_62] : memref<8x8xf32, #tpu.memory_space<vmem>>, vector<1x8xf32>
    %cst_63 = arith.constant dense<0.000000e+00> : vector<8xf32>
    %103 = vector.multi_reduction <add>, %98, %cst_63 [0] : vector<288x8xf32> to vector<8xf32>
    %104 = vector.shape_cast %103 : vector<8xf32> to vector<1x8xf32>
    %105 = arith.addf %102, %104 : vector<1x8xf32>
    %c0_64 = arith.constant 0 : index
    %c0_65 = arith.constant 0 : index
    %106 = vector.load %arg7[%c0_64, %c0_65] : memref<8x8xf32, #tpu.memory_space<vmem>>, vector<1x8xf32>
    tpu.vector_store %arg7[%c0_64, %c0_65], %105 {strides = array<i32>} : memref<8x8xf32, #tpu.memory_space<vmem>>, vector<1x8xf32>,
    %c1_66 = arith.constant 1 : index
    %c0_67 = arith.constant 0 : index
    %107 = vector.load %arg7[%c1_66, %c0_67] : memref<8x8xf32, #tpu.memory_space<vmem>>, vector<1x8xf32>
    %108 = arith.mulf %98, %98 : vector<288x8xf32>
    %cst_68 = arith.constant dense<0.000000e+00> : vector<8xf32>
    %109 = vector.multi_reduction <add>, %108, %cst_68 [0] : vector<288x8xf32> to vector<8xf32>
    %110 = vector.shape_cast %109 : vector<8xf32> to vector<1x8xf32>
    %111 = arith.addf %107, %110 : vector<1x8xf32>
    %c1_69 = arith.constant 1 : index
    %c0_70 = arith.constant 0 : index
    %112 = vector.load %arg7[%c1_69, %c0_70] : memref<8x8xf32, #tpu.memory_space<vmem>>, vector<1x8xf32>
    tpu.vector_store %arg7[%c1_69, %c0_70], %111 {strides = array<i32>} : memref<8x8xf32, #tpu.memory_space<vmem>>, vector<1x8xf32>,
    %c0_i32_71 = arith.constant 0 : i32
    %113 = arith.cmpi eq, %arg1, %c0_i32_71 : i32
    %114 = arith.extui %113 : i1 to i32
    %c0_i32_72 = arith.constant 0 : i32
    %115 = arith.cmpi ne, %114, %c0_i32_72 : i32
    scf.if %115 {
      %c0_73 = arith.constant 0 : index
      %c0_74 = arith.constant 0 : index
      %116 = vector.load %arg7[%c0_73, %c0_74] : memref<8x8xf32, #tpu.memory_space<vmem>>, vector<8x8xf32>
      %c0_75 = arith.constant 0 : index
      %c0_76 = arith.constant 0 : index
      %c0_77 = arith.constant 0 : index
      %117 = vector.load %arg6[%c0_75, %c0_76, %c0_77] : memref<1x8x8xf32, #tpu.memory_space<vmem>>, vector<1x8x8xf32>
      %118 = vector.shape_cast %117 : vector<1x8x8xf32> to vector<8x8xf32>
      %119 = vector.shape_cast %116 : vector<8x8xf32> to vector<1x8x8xf32>
      tpu.vector_store %arg6[%c0_75, %c0_76, %c0_77], %119 {strides = array<i32>} : memref<1x8x8xf32, #tpu.memory_space<vmem>>, vector<1x8x8xf32>,
    } else {
    }
    return
  }
  func.func @transform_0(%arg0: i32, %arg1: i32) -> (i32, i32, i32) {
    %c0_i32 = arith.constant 0 : i32
    %c0_i32_0 = arith.constant 0 : i32
    %c0_i32_1 = arith.constant 0 : i32
    return %arg0, %c0_i32, %c0_i32_0 : i32, i32, i32
  }
  func.func @transform_1(%arg0: i32, %arg1: i32) -> (i32, i32, i32) {
    %c0_i32 = arith.constant 0 : i32
    %c0_i32_0 = arith.constant 0 : i32
    %c0_i32_1 = arith.constant 0 : i32
    %c0_i32_2 = arith.constant 0 : i32
    return %c0_i32, %c0_i32_0, %c0_i32_1 : i32, i32, i32
  }
  func.func @transform_2(%arg0: i32, %arg1: i32) -> (i32, i32) {
    %c0_i32 = arith.constant 0 : i32
    %c0_i32_0 = arith.constant 0 : i32
    return %arg1, %c0_i32 : i32, i32
  }
  func.func @transform_3(%arg0: i32, %arg1: i32) -> (i32, i32, i32) {
    %c0_i32 = arith.constant 0 : i32
    %c0_i32_0 = arith.constant 0 : i32
    return %arg0, %arg1, %c0_i32 : i32, i32, i32
  }
  func.func @transform_4(%arg0: i32, %arg1: i32) -> (i32, i32, i32) {
    %c0_i32 = arith.constant 0 : i32
    %c0_i32_0 = arith.constant 0 : i32
    %c0_i32_1 = arith.constant 0 : i32
    return %arg0, %c0_i32, %c0_i32_0 : i32, i32, i32
  }
}

</mosaic_0001>

<bundles_post_ra>
// kernel: tpu_custom_call.1
= control target key start
LH: loop header
LB: loop body
LE: loop exit
PB: predicated region body
PF: predicated region fallthrough
CT: control target
= control target key end

     0   :  { %10 = vsyncpa [#allocation4], 0  ;;  %s6069_s0 = inlined_call_operand.vmem [shape: f32[2,342,8], index: 0, kind: input, shape index: {}]   ;;  %s6070_s1 = inlined_call_operand.vmem [shape: f32[9,8,8], index: 1, kind: input, shape index: {}]   ;;  %s6071_s2 = inlined_call_operand.vmem [shape: f32[288,1], index: 2, kind: input, shape index: {}]   ;;  %s6072_s3 = inlined_call_operand.vmem [shape: f32[2,288,8], index: 3, kind: output, shape index: {0}]   ;;  %s6073_s4 = inlined_call_operand.hbm [shape: f32[2,8,8], index: 4, kind: output, shape index: {1}]  }
   0x1   :  { %12 = vsyncpa [#allocation4 + $0x1], 0  ;;  %s4762_s15 = smov 0   ;;  %s4764_s16 = smov 0  }
   0x2   :  { %s4766_s17 = smov 0   ;;  %s4768_s18 = smov 0  }
   0x3   :  { %s4770_s19 = smov 0   ;;  %s4772_s20 = smov 0  }
   0x4 LB: > { %s3957_s21 = sadd.s32 4294967295, %s4733_s20   ;;  %s3958_s22 = sadd.s32 4294967294, %s4733_s20   ;;  %s4733_s20 = sphi %s4772_s20, %s18_s20   ;;  %s4729_s19 = sphi %s4770_s19, %s6080_s19   ;;  %s4725_s18 = sphi %s4768_s18, %s6079_s18   ;;  %s4721_s17 = sphi %s4766_s17, %s6078_s17   ;;  %s4717_s16 = sphi %s4764_s16, %s6077_s16   ;;  %s4713_s15 = sphi %s4762_s15, %s6076_s15  }
   0x5   : > { %s30_s23 = sadd.s32 1, %s4729_s19  ;;  %s138_s24 = sadd.s32 1, %s4721_s17 }
   0x6   : > { %p32_p0 = scmp.ge.s32.totalorder %s30_s23, 2  ;;  %p148_p1 = scmp.ne.s32.totalorder %s4721_s17, %s4717_s16 }
   0x7   : > { %p149_p2 = scmp.eq.s32.totalorder %s3957_s21, 1  ;;  %p154_p3 = scmp.ne.s32.totalorder %s4717_s16, %s4713_s15 }
   0x8   : > { %s6082_s23 = smov (%p32_p0, %s30_s23), 0  ;;  %p155_p5 = scmp.eq.s32.totalorder %s3958_s22, 1 }
   0x9   : > { %p4802_p4 = por %p149_p2, %p148_p1  ;;  %s135_s26 = ssub.s32 %s4729_s19, %s6082_s23 }
   0xa   : > { %p3962_p6 = scmp.ge.s32.totalorder %s4733_s20, 1  ;;  %p136_p7 = scmp.eq.s32.totalorder %s135_s26, 0 }
   0xb   : > { %p4809_p8 = por %p155_p5, %p154_p3  ;;  %p193_p9 = scmp.lt.s32.totalorder %s4733_s20, 3 }
   0xc   : > { %s4815_s28 = scalar_select %p136_p7, %s4721_s17, %s138_s24  }
   0xd   : > { %p194_p10 = pnand %p3962_p6, %p193_p9 }
   0xe   : > { %p233_p11 = scmp.lt.s32.totalorder (!%p194_p10), %s4725_s18, 1  ;;  %s4587_s22 = sshll.u32 (!%p194_p10), %s4725_s18, 3 }
   0xf   : > { %197 = sbr.rel (%p194_p10) target bundleno = 838 (0x346), region = 32  ;;  %s3807_s30 = scalar_lea.hbm (!%p194_p10), %s6073_s4, %s4587_s22 }
  0x10   : > { %s3811_s7 = sshll.u32 (!%p194_p10), %s3807_s30, 4  ;;  %s4675_s13 = scalar_lea.hbm (!%p194_p10), %s6073_s4, 16  ;;  %s3812_s7 = int_to_ptr.hbm [resolvable:$true] %s3811_s7 }
  0x11   : > { %s4669_s9 = sshra.s32 (!%p194_p10), %s3812_s7, 4  ;;  %s4670_s9 = int_to_ptr.hbm [resolvable:$true] %s4669_s9 }
  0x12   : > { %p4676_p1 = scmp.lt.s32.totalorder (!%p194_p10), %s4670_s9, %s6073_s4 }
  0x14   : > { %v4002_v0 = vld [vmem:[%s6070_s1 + $0x8] sm:$0xff]  ;;  %v4111_v1 = vld [vmem:[%s6070_s1 + $0x10] sm:$0xff]  ;;  %v4184_v2 = vld [vmem:[%s6070_s1 + $0x18] sm:$0xff]  ;;  %s4831_s11 = scalar_select %p233_p11, %s4725_s18, 1  ;;  %vm258_vm0 = vcmask 64512   ;;  %vm3660_vm1 = vcmask 57344  }
  0x15   : > { %4590 = vmatpush.msra.mxu1 %v4002_v0  ;;  %4591 = vmatpush.msra.mxu2 %v4002_v0  ;;  %v334_v3 = vld [vmem:[%s6070_s1] sm:$0xff]  ;;  %v4403_v54 = vld [vmem:[%s6070_s1 + $0x30] sm:$0xff]  ;;  %v4476_v56 = vld [vmem:[%s6070_s1 + $0x38] sm:$0xff]  ;;  %s4671_s18 = scalar_lea.hbm %s4670_s9, 8 }
  0x16   : > { %4592 = vmatpush.msra.mxu3 %v4002_v0  ;;  %v4257_v4 = vld [vmem:[%s6070_s1 + $0x20] sm:$0xff]  ;;  %s4593_s14 = smul.u32 344, %s4831_s11  ;;  %535 = vmatpush.msra.mxu0 %v4002_v0  ;;  %v4330_v57 = vld [vmem:[%s6070_s1 + $0x28] sm:$0xff]  ;;  %p4672_p12 = scmp.ne.s32.totalorder %s4670_s9, %s4671_s18 }
  0x17   : > { %1077 = vmatpush.msrb.mxu2 %v4111_v1  ;;  %768 = vmatpush.msrb.mxu1 %v334_v3  ;;  %s4594_s26 = smul.u32 288, %s4831_s11  ;;  %p4677_p2 = scmp.lt.s32.totalorder %s4675_s13, %s4671_s18 }
  0x18   : > { %1422 = vmatpush.msrb.mxu3 %v4184_v2  ;;  %1767 = vmatpush.msrb.mxu0 %v4257_v4  ;;  %s4840_s24 = scalar_lea.vmem %s6069_s0, %s4593_s14  ;;  %v4549_v2 = vld [vmem:[%s6070_s1 + $0x40] sm:$0xff]  ;;  %p4673_p13 = pnand %p4672_p12, %p4802_p4 }
  0x19   : > { %v3975_v5 = vld [vmem:[%s4840_s24 + $0x49] sm:$0xff]  ;;  %v3984_v6 = vld [vmem:[%s4840_s24 + $0x91] sm:$0xff]  ;;  %v3993_v7 = vld [vmem:[%s4840_s24 + $0xd9] sm:$0xff]  ;;  %s5553_s6 = scalar_lea.vmem %s6072_s3, %s4594_s26  ;;  %p4678_p3 = por %p4677_p2, %p4676_p1 }
  0x1a   : > { %v382_v8 = vmax.f32 %v3975_v5, 0.0  ;;  %v391_v9 = vmax.f32 %v3984_v6, 0.0  ;;  %v400_v10 = vmax.f32 %v3993_v7, 0.0  ;;  %v3966_v11 = vld [vmem:[%s4840_s24 + $0x1] sm:$0xff]  ;;  %v3976_v13 = vld [vmem:[%s4840_s24 + $0x51] sm:$0xff]  ;;  %v3985_v14 = vld [vmem:[%s4840_s24 + $0x99] sm:$0xff]  ;;  %p4674_p0 = pneg %p4673_p13 }
  0x1b   : > { %v373_v12 = vmax.f32 %v3966_v11, 0.0  ;;  %v3994_v15 = vld [vmem:[%s4840_s24 + $0xe1] sm:$0xff]  ;;  %v3967_v16 = vld [vmem:[%s4840_s24 + $0x9] sm:$0xff]  ;;  %v383_v17 = vmax.f32 %v3976_v13, 0.0  ;;  %v392_v18 = vmax.f32 %v3985_v14, 0.0  ;;  %v3977_v21 = vld [vmem:[%s4840_s24 + $0x59] sm:$0xff] }
  0x1c   : > { %4012 = vmatmul.msk.f32.vlgmr.msra.gmra.mxu1 %vm258_vm0, %v382_v8  ;;  %4021 = vmatmul.msk.f32.vlgmr.msra.gmra.mxu2 %vm258_vm0, %v391_v9  ;;  %v401_v19 = vmax.f32 %v3994_v15, 0.0  ;;  %v374_v20 = vmax.f32 %v3967_v16, 0.0  ;;  %v3986_v22 = vld [vmem:[%s4840_s24 + $0xa1] sm:$0xff]  ;;  %v3995_v23 = vld [vmem:[%s4840_s24 + $0xe9] sm:$0xff]  ;;  %v3968_v24 = vld [vmem:[%s4840_s24 + $0x11] sm:$0xff]  ;;  %v384_v25 = vmax.f32 %v3977_v21, 0.0  ;;  %p4679_p5 = pnand %p4678_p3, %p4674_p0 }
  0x1d   : > { %4030 = vmatmul.msk.f32.vlgmr.msra.gmra.mxu3 %vm258_vm0, %v400_v10  ;;  %4003 = vmatmul.msk.f32.vlgmr.msra.gmra.mxu0 %vm258_vm0, %v373_v12  ;;  %v393_v26 = vmax.f32 %v3986_v22, 0.0  ;;  %v402_v27 = vmax.f32 %v3995_v23, 0.0  ;;  %v375_v28 = vmax.f32 %v3968_v24, 0.0  ;;  %v3978_v29 = vld [vmem:[%s4840_s24 + $0x61] sm:$0xff]  ;;  %v3987_v30 = vld [vmem:[%s4840_s24 + $0xa9] sm:$0xff]  ;;  %v3996_v31 = vld [vmem:[%s4840_s24 + $0xf1] sm:$0xff] }
  0x1e   : > { %v3969_v32 = vld [vmem:[%s4840_s24 + $0x19] sm:$0xff]  ;;  %v385_v33 = vmax.f32 %v3978_v29, 0.0  ;;  %v394_v34 = vmax.f32 %v3987_v30, 0.0  ;;  %v403_v35 = vmax.f32 %v3996_v31, 0.0  ;;  %v3979_v37 = vld [vmem:[%s4840_s24 + $0x69] sm:$0xff]  ;;  %v3988_v38 = vld [vmem:[%s4840_s24 + $0xb1] sm:$0xff]  ;;  %2457 = vmatpush.msra.mxu2 %v4403_v54  ;;  %2802 = vmatpush.msra.mxu3 %v4476_v56 }
  0x1f   : > { %v376_v36 = vmax.f32 %v3969_v32, 0.0  ;;  %v3997_v39 = vld [vmem:[%s4840_s24 + $0xf9] sm:$0xff]  ;;  %v3970_v40 = vld [vmem:[%s4840_s24 + $0x21] sm:$0xff]  ;;  %v386_v41 = vmax.f32 %v3979_v37, 0.0  ;;  %v395_v42 = vmax.f32 %v3988_v38, 0.0  ;;  %v3980_v45 = vld [vmem:[%s4840_s24 + $0x71] sm:$0xff]  ;;  %2112 = vmatpush.msra.mxu1 %v4330_v57  ;;  %3147 = vmatpush.msra.mxu0 %v4549_v2 }
  0x20   : > { %v404_v43 = vmax.f32 %v3997_v39, 0.0  ;;  %v377_v44 = vmax.f32 %v3970_v40, 0.0  ;;  %v3989_v46 = vld [vmem:[%s4840_s24 + $0xb9] sm:$0xff]  ;;  %v3998_v47 = vld [vmem:[%s4840_s24 + $0x101] sm:$0xff]  ;;  %v3971_v48 = vld [vmem:[%s4840_s24 + $0x29] sm:$0xff]  ;;  %v387_v49 = vmax.f32 %v3980_v45, 0.0 }
  0x21   : > { %v396_v50 = vmax.f32 %v3989_v46, 0.0  ;;  %v405_v51 = vmax.f32 %v3998_v47, 0.0  ;;  %v378_v52 = vmax.f32 %v3971_v48, 0.0  ;;  %v3981_v53 = vld [vmem:[%s4840_s24 + $0x79] sm:$0xff]  ;;  %v3990_v55 = vld [vmem:[%s4840_s24 + $0xc1] sm:$0xff]  ;;  %v3999_v58 = vld [vmem:[%s4840_s24 + $0x109] sm:$0xff] }
  0x22   : > { %v3972_v59 = vld [vmem:[%s4840_s24 + $0x31] sm:$0xff]  ;;  %v388_v60 = vmax.f32 %v3981_v53, 0.0  ;;  %v397_v61 = vmax.f32 %v3990_v55, 0.0  ;;  %v406_v62 = vmax.f32 %v3999_v58, 0.0  ;;  %v3982_v0 = vld [vmem:[%s4840_s24 + $0x81] sm:$0xff]  ;;  %v3991_v1 = vld [vmem:[%s4840_s24 + $0xc9] sm:$0xff] }
  0x23   : > { %v379_v63 = vmax.f32 %v3972_v59, 0.0  ;;  %v4000_v3 = vld [vmem:[%s4840_s24 + $0x111] sm:$0xff]  ;;  %v3973_v4 = vld [vmem:[%s4840_s24 + $0x39] sm:$0xff]  ;;  %v389_v5 = vmax.f32 %v3982_v0, 0.0  ;;  %v398_v6 = vmax.f32 %v3991_v1, 0.0  ;;  %v3983_v9 = vld [vmem:[%s4840_s24 + $0x89] sm:$0xff] }
  0x24   : > { %4013 = vmatmul.msk.f32.gmra.mxu1 %vm258_vm0, %v383_v17  ;;  %4022 = vmatmul.msk.f32.gmra.mxu2 %vm258_vm0, %v392_v18  ;;  %v407_v7 = vmax.f32 %v4000_v3, 0.0  ;;  %v380_v8 = vmax.f32 %v3973_v4, 0.0  ;;  %v3992_v10 = vld [vmem:[%s4840_s24 + $0xd1] sm:$0xff]  ;;  %v4001_v11 = vld [vmem:[%s4840_s24 + $0x119] sm:$0xff]  ;;  %v3974_v12 = vld [vmem:[%s4840_s24 + $0x41] sm:$0xff]  ;;  %v390_v13 = vmax.f32 %v3983_v9, 0.0 }
  0x25   : > { %4031 = vmatmul.msk.f32.gmra.mxu3 %vm258_vm0, %v401_v19  ;;  %4004 = vmatmul.msk.f32.gmra.mxu0 %vm258_vm0, %v374_v20  ;;  %v399_v14 = vmax.f32 %v3992_v10, 0.0  ;;  %v408_v15 = vmax.f32 %v4001_v11, 0.0  ;;  %v381_v16 = vmax.f32 %v3974_v12, 0.0  ;;  %v262_v17 = vld [vmem:[%s4840_s24] sm:$0xff]  ;;  %v4148_v19 = vld [vmem:[%s4840_s24 + $0x12] sm:$0xff]  ;;  %v4151_v40 = vld [vmem:[%s4840_s24 + $0x2a] sm:$0xff] }
  0x26   : > { %v4075_v18 = vld [vmem:[%s4840_s24 + $0x2] sm:$0xff]  ;;  %v4221_v20 = vld [vmem:[%s4840_s24 + $0x13] sm:$0xff]  ;;  %v298_v21 = vmax.f32 %v262_v17, 0.0  ;;  %v1261_v23 = vmax.f32 %v4148_v19, 0.0  ;;  %v4155_v0 = vld [vmem:[%s4840_s24 + $0x4a] sm:$0xff] }
  0x27   : > { %v916_v22 = vmax.f32 %v4075_v18, 0.0  ;;  %v1606_v24 = vmax.f32 %v4221_v20, 0.0  ;;  %v265_v39 = vld [vmem:[%s4840_s24 + $0x18] sm:$0xff]  ;;  %v266_v45 = vld [vmem:[%s4840_s24 + $0x20] sm:$0xff]  ;;  %v268_v57 = vld [vmem:[%s4840_s24 + $0x30] sm:$0xff]  ;;  %v1268_v4 = vmax.f32 %v4155_v0, 0.0 }
  0x28   : > { %v4152_v46 = vld [vmem:[%s4840_s24 + $0x32] sm:$0xff]  ;;  %v302_v48 = vmax.f32 %v266_v45, 0.0  ;;  %v4226_v53 = vld [vmem:[%s4840_s24 + $0x3b] sm:$0xff]  ;;  %v4227_v59 = vld [vmem:[%s4840_s24 + $0x43] sm:$0xff] }
  0x29   : > { %v4225_v47 = vld [vmem:[%s4840_s24 + $0x33] sm:$0xff]  ;;  %v1611_v56 = vmax.f32 %v4226_v53, 0.0  ;;  %v4154_v58 = vld [vmem:[%s4840_s24 + $0x42] sm:$0xff]  ;;  %v4228_v1 = vld [vmem:[%s4840_s24 + $0x4b] sm:$0xff] }
  0x2a   : > { %v4229_v9 = vld [vmem:[%s4840_s24 + $0x53] sm:$0xff]  ;;  %v271_v17 = vld [vmem:[%s4840_s24 + $0x48] sm:$0xff]  ;;  %v4230_v19 = vld [vmem:[%s4840_s24 + $0x5b] sm:$0xff] }
  0x2b   : > { %v4157_v18 = vld [vmem:[%s4840_s24 + $0x5a] sm:$0xff] }
  0x2c   : > { %4014 = vmatmul.msk.f32.gmra.mxu1 %vm258_vm0, %v384_v25  ;;  %4023 = vmatmul.msk.f32.gmra.mxu2 %vm258_vm0, %v393_v26  ;;  %v263_v25 = vld [vmem:[%s4840_s24 + $0x8] sm:$0xff] }
  0x2d   : > { %4032 = vmatmul.msk.f32.gmra.mxu3 %vm258_vm0, %v402_v27  ;;  %4005 = vmatmul.msk.f32.gmra.mxu0 %vm258_vm0, %v375_v28  ;;  %v4076_v26 = vld [vmem:[%s4840_s24 + $0xa] sm:$0xff]  ;;  %v4149_v27 = vld [vmem:[%s4840_s24 + $0x1a] sm:$0xff]  ;;  %v299_v29 = vmax.f32 %v263_v25, 0.0  ;;  %v1615_v25 = vmax.f32 %v4230_v19, 0.0 }
  0x2e   : > { %v4222_v28 = vld [vmem:[%s4840_s24 + $0x1b] sm:$0xff]  ;;  %v917_v30 = vmax.f32 %v4076_v26, 0.0  ;;  %v1262_v31 = vmax.f32 %v4149_v27, 0.0  ;;  %v272_v27 = vld [vmem:[%s4840_s24 + $0x50] sm:$0xff] }
  0x2f   : > { %v1607_v32 = vmax.f32 %v4222_v28, 0.0  ;;  %v4158_v28 = vld [vmem:[%s4840_s24 + $0x62] sm:$0xff]  ;;  %v277_v19 = vld [vmem:[%s4840_s24 + $0x78] sm:$0xff] }
  0x34   : > { %4015 = vmatmul.msk.f32.gmra.mxu1 %vm258_vm0, %v385_v33  ;;  %4024 = vmatmul.msk.f32.gmra.mxu2 %vm258_vm0, %v394_v34  ;;  %v264_v33 = vld [vmem:[%s4840_s24 + $0x10] sm:$0xff]  ;;  %v4150_v34 = vld [vmem:[%s4840_s24 + $0x22] sm:$0xff] }
  0x35   : > { %4033 = vmatmul.msk.f32.gmra.mxu3 %vm258_vm0, %v403_v35  ;;  %4006 = vmatmul.msk.f32.gmra.mxu0 %vm258_vm0, %v376_v36  ;;  %v4223_v35 = vld [vmem:[%s4840_s24 + $0x23] sm:$0xff]  ;;  %v300_v36 = vmax.f32 %v264_v33, 0.0  ;;  %v1263_v37 = vmax.f32 %v4150_v34, 0.0  ;;  %v1271_v34 = vmax.f32 %v4158_v28, 0.0  ;;  %v313_v28 = vmax.f32 %v277_v19, 0.0 }
  0x36   : > { %v1608_v38 = vmax.f32 %v4223_v35, 0.0 }
  0x3c   : > { %4016 = vmatmul.msk.f32.gmra.mxu1 %vm258_vm0, %v386_v41  ;;  %4025 = vmatmul.msk.f32.gmra.mxu2 %vm258_vm0, %v395_v42  ;;  %v4224_v41 = vld [vmem:[%s4840_s24 + $0x2b] sm:$0xff]  ;;  %v301_v42 = vmax.f32 %v265_v39, 0.0 }
  0x3d   : > { %4034 = vmatmul.msk.f32.gmra.mxu3 %vm258_vm0, %v404_v43  ;;  %4007 = vmatmul.msk.f32.gmra.mxu0 %vm258_vm0, %v377_v44  ;;  %v1264_v43 = vmax.f32 %v4151_v40, 0.0  ;;  %v1609_v44 = vmax.f32 %v4224_v41, 0.0  ;;  %v4232_v39 = vld [vmem:[%s4840_s24 + $0x6b] sm:$0xff] }
  0x3e   : > { %v1617_v45 = vmax.f32 %v4232_v39, 0.0  ;;  %v4237_v39 = vld [vmem:[%s4840_s24 + $0x93] sm:$0xff] }
  0x44   : > { %4017 = vmatmul.msk.f32.gmra.mxu1 %vm258_vm0, %v387_v49  ;;  %4026 = vmatmul.msk.f32.gmra.mxu2 %vm258_vm0, %v396_v50  ;;  %v1265_v49 = vmax.f32 %v4152_v46, 0.0  ;;  %v1610_v50 = vmax.f32 %v4225_v47, 0.0  ;;  %v274_v47 = vld [vmem:[%s4840_s24 + $0x60] sm:$0xff] }
  0x45   : > { %4035 = vmatmul.msk.f32.gmra.mxu3 %vm258_vm0, %v405_v51  ;;  %4008 = vmatmul.msk.f32.gmra.mxu0 %vm258_vm0, %v378_v52  ;;  %v267_v51 = vld [vmem:[%s4840_s24 + $0x28] sm:$0xff]  ;;  %v4153_v52 = vld [vmem:[%s4840_s24 + $0x3a] sm:$0xff] }
  0x46   : > { %v303_v54 = vmax.f32 %v267_v51, 0.0  ;;  %v1266_v55 = vmax.f32 %v4153_v52, 0.0  ;;  %v310_v52 = vmax.f32 %v274_v47, 0.0 }
  0x4c   : > { %4018 = vmatmul.msk.f32.gmra.mxu1 %vm258_vm0, %v388_v60  ;;  %4027 = vmatmul.msk.f32.gmra.mxu2 %vm258_vm0, %v397_v61  ;;  %v304_v60 = vmax.f32 %v268_v57, 0.0  ;;  %v1267_v61 = vmax.f32 %v4154_v58, 0.0  ;;  %v275_v57 = vld [vmem:[%s4840_s24 + $0x68] sm:$0xff]  ;;  %v4161_v58 = vld [vmem:[%s4840_s24 + $0x7a] sm:$0xff] }
  0x4d   : > { %4036 = vmatmul.msk.f32.gmra.mxu3 %vm258_vm0, %v406_v62  ;;  %4009 = vmatmul.msk.f32.gmra.mxu0 %vm258_vm0, %v379_v63  ;;  %v1612_v62 = vmax.f32 %v4227_v59, 0.0  ;;  %v269_v63 = vld [vmem:[%s4840_s24 + $0x38] sm:$0xff]  ;;  %v1274_v0 = vmax.f32 %v4161_v58, 0.0 }
  0x4e   : > { %v305_v2 = vmax.f32 %v269_v63, 0.0  ;;  %v4234_v59 = vld [vmem:[%s4840_s24 + $0x7b] sm:$0xff] }
  0x4f   : > { %v4238_v58 = vld [vmem:[%s4840_s24 + $0x9b] sm:$0xff] }
  0x54   : > { %4019 = vmatmul.msk.f32.gmra.mxu1 %vm258_vm0, %v389_v5  ;;  %4028 = vmatmul.msk.f32.gmra.mxu2 %vm258_vm0, %v398_v6  ;;  %v1613_v5 = vmax.f32 %v4228_v1, 0.0  ;;  %v1619_v1 = vmax.f32 %v4234_v59, 0.0 }
  0x55   : > { %4037 = vmatmul.msk.f32.gmra.mxu3 %vm258_vm0, %v407_v7  ;;  %4010 = vmatmul.msk.f32.gmra.mxu0 %vm258_vm0, %v380_v8  ;;  %v270_v7 = vld [vmem:[%s4840_s24 + $0x40] sm:$0xff]  ;;  %v4156_v8 = vld [vmem:[%s4840_s24 + $0x52] sm:$0xff] }
  0x56   : > { %v306_v12 = vmax.f32 %v270_v7, 0.0  ;;  %v4235_v7 = vld [vmem:[%s4840_s24 + $0x83] sm:$0xff] }
  0x5c   : > { %4020 = vmatmul.msk.f32.gmra.mxu1 %vm258_vm0, %v390_v13  ;;  %4029 = vmatmul.msk.f32.gmra.mxu2 %vm258_vm0, %v399_v14  ;;  %v1269_v14 = vmax.f32 %v4156_v8, 0.0 }
  0x5d   : > { %4038 = vmatmul.msk.f32.gmra.mxu3 %vm258_vm0, %v408_v15  ;;  %4011 = vmatmul.msk.f32.gmra.mxu0 %vm258_vm0, %v381_v16  ;;  %v1614_v15 = vmax.f32 %v4229_v9, 0.0 }
  0x64   : > { %4039 = vmatmul.msk.f32.vlgmr.msrb.gmra.mxu1 %vm258_vm0, %v298_v21  ;;  %4112 = vmatmul.msk.f32.vlgmr.msrb.gmra.mxu2 %vm258_vm0, %v916_v22  ;;  %v307_v22 = vmax.f32 %v271_v17, 0.0  ;;  %v1620_v17 = vmax.f32 %v4235_v7, 0.0  ;;  %v1623_v7 = vmax.f32 %v4238_v58, 0.0 }
  0x65   : > { %4185 = vmatmul.msk.f32.vlgmr.msrb.gmra.mxu3 %vm258_vm0, %v1261_v23  ;;  %4258 = vmatmul.msk.f32.vlgmr.msrb.gmra.mxu0 %vm258_vm0, %v1606_v24  ;;  %v1270_v24 = vmax.f32 %v4157_v18, 0.0 }
  0x6c   : > { %4040 = vmatmul.msk.f32.gmra.mxu1 %vm258_vm0, %v299_v29  ;;  %4113 = vmatmul.msk.f32.gmra.mxu2 %vm258_vm0, %v917_v30  ;;  %v4231_v29 = vld [vmem:[%s4840_s24 + $0x63] sm:$0xff] }
  0x6d   : > { %4186 = vmatmul.msk.f32.gmra.mxu3 %vm258_vm0, %v1262_v31  ;;  %4259 = vmatmul.msk.f32.gmra.mxu0 %vm258_vm0, %v1607_v32  ;;  %v308_v32 = vmax.f32 %v272_v27, 0.0  ;;  %v1616_v35 = vmax.f32 %v4231_v29, 0.0 }
  0x74   : > { %4041 = vmatmul.msk.f32.gmra.mxu1 %vm258_vm0, %v300_v36  ;;  %4114 = vmatmul.msk.f32.gmra.mxu2 %vm258_vm0, %v1261_v23 }
  0x75   : > { %4187 = vmatmul.msk.f32.gmra.mxu3 %vm258_vm0, %v1263_v37  ;;  %4260 = vmatmul.msk.f32.gmra.mxu0 %vm258_vm0, %v1608_v38  ;;  %v4159_v38 = vld [vmem:[%s4840_s24 + $0x6a] sm:$0xff] }
  0x7c   : > { %4042 = vmatmul.msk.f32.gmra.mxu1 %vm258_vm0, %v301_v42  ;;  %4115 = vmatmul.msk.f32.gmra.mxu2 %vm258_vm0, %v1262_v31 }
  0x7d   : > { %4188 = vmatmul.msk.f32.gmra.mxu3 %vm258_vm0, %v1264_v43  ;;  %4261 = vmatmul.msk.f32.gmra.mxu0 %vm258_vm0, %v1609_v44  ;;  %v1272_v44 = vmax.f32 %v4159_v38, 0.0  ;;  %v4164_v38 = vld [vmem:[%s4840_s24 + $0x92] sm:$0xff] }
  0x84   : > { %4043 = vmatmul.msk.f32.gmra.mxu1 %vm258_vm0, %v302_v48  ;;  %4116 = vmatmul.msk.f32.gmra.mxu2 %vm258_vm0, %v1263_v37  ;;  %v273_v37 = vld [vmem:[%s4840_s24 + $0x58] sm:$0xff] }
  0x85   : > { %4189 = vmatmul.msk.f32.gmra.mxu3 %vm258_vm0, %v1265_v49  ;;  %4262 = vmatmul.msk.f32.gmra.mxu0 %vm258_vm0, %v1610_v50  ;;  %v309_v42 = vmax.f32 %v273_v37, 0.0  ;;  %v4160_v48 = vld [vmem:[%s4840_s24 + $0x72] sm:$0xff]  ;;  %v278_v37 = vld [vmem:[%s4840_s24 + $0x80] sm:$0xff] }
  0x8c   : > { %4044 = vmatmul.msk.f32.gmra.mxu1 %vm258_vm0, %v303_v54  ;;  %4117 = vmatmul.msk.f32.gmra.mxu2 %vm258_vm0, %v1264_v43  ;;  %v1273_v54 = vmax.f32 %v4160_v48, 0.0  ;;  %v1277_v48 = vmax.f32 %v4164_v38, 0.0 }
  0x8d   : > { %4190 = vmatmul.msk.f32.gmra.mxu3 %vm258_vm0, %v1266_v55  ;;  %4263 = vmatmul.msk.f32.gmra.mxu0 %vm258_vm0, %v1611_v56 }
  0x94   : > { %4045 = vmatmul.msk.f32.gmra.mxu1 %vm258_vm0, %v304_v60  ;;  %4118 = vmatmul.msk.f32.gmra.mxu2 %vm258_vm0, %v1265_v49  ;;  %v4233_v49 = vld [vmem:[%s4840_s24 + $0x73] sm:$0xff] }
  0x95   : > { %4191 = vmatmul.msk.f32.gmra.mxu3 %vm258_vm0, %v1267_v61  ;;  %4264 = vmatmul.msk.f32.gmra.mxu0 %vm258_vm0, %v1612_v62  ;;  %v311_v62 = vmax.f32 %v275_v57, 0.0  ;;  %v4165_v57 = vld [vmem:[%s4840_s24 + $0x9a] sm:$0xff] }
  0x99   : > { %v4980_v3 = vpop.f32.mrf.mxu1 }
  0x9a   : > { %v4982_v6 = vpop.f32.mrf.mxu0 }
  0x9c   : > { %4046 = vmatmul.msk.f32.gmra.mxu1 %vm258_vm0, %v305_v2  ;;  %4119 = vmatmul.msk.f32.gmra.mxu2 %vm258_vm0, %v1266_v55  ;;  %v1618_v55 = vmax.f32 %v4233_v49, 0.0  ;;  %v1622_v49 = vmax.f32 %v4237_v39, 0.0 }
  0x9d   : > { %4192 = vmatmul.msk.f32.gmra.mxu3 %vm258_vm0, %v1268_v4  ;;  %4265 = vmatmul.msk.f32.gmra.mxu0 %vm258_vm0, %v1613_v5  ;;  %v4162_v5 = vld [vmem:[%s4840_s24 + $0x82] sm:$0xff] }
  0x9f   : > { %v4991_v10 = vpop.f32.mrf.mxu2 }
  0xa0   : > { %v4993_v11 = vpop.f32.mrf.mxu3 }
  0xa1   : > { %v4995_v13 = vpop.f32.mrf.mxu1 }
  0xa2   : > { %v4997_v16 = vpop.f32.mrf.mxu0 }
  0xa4   : > { %4047 = vmatmul.msk.f32.gmra.mxu1 %vm258_vm0, %v306_v12  ;;  %4120 = vmatmul.msk.f32.gmra.mxu2 %vm258_vm0, %v1267_v61 }
  0xa5   : > { %4193 = vmatmul.msk.f32.gmra.mxu3 %vm258_vm0, %v1269_v14  ;;  %4266 = vmatmul.msk.f32.gmra.mxu0 %vm258_vm0, %v1614_v15  ;;  %v1275_v15 = vmax.f32 %v4162_v5, 0.0  ;;  %v1278_v5 = vmax.f32 %v4165_v57, 0.0  ;;  %v4240_v57 = vld [vmem:[%s4840_s24 + $0xab] sm:$0xff] }
  0xa7   : > { %v5006_v20 = vpop.f32.mrf.mxu2 }
  0xa8   : > { %v5008_v21 = vpop.f32.mrf.mxu3 }
  0xa9   : > { %v5010_v23 = vpop.f32.mrf.mxu1 }
  0xaa   : > { %v5012_v26 = vpop.f32.mrf.mxu0 }
  0xac   : > { %4048 = vmatmul.msk.f32.gmra.mxu1 %vm258_vm0, %v307_v22  ;;  %4121 = vmatmul.msk.f32.gmra.mxu2 %vm258_vm0, %v1268_v4  ;;  %v276_v4 = vld [vmem:[%s4840_s24 + $0x70] sm:$0xff] }
  0xad   : > { %4194 = vmatmul.msk.f32.gmra.mxu3 %vm258_vm0, %v1270_v24  ;;  %4267 = vmatmul.msk.f32.gmra.mxu0 %vm258_vm0, %v1615_v25  ;;  %v312_v12 = vmax.f32 %v276_v4, 0.0  ;;  %v4163_v22 = vld [vmem:[%s4840_s24 + $0x8a] sm:$0xff] }
  0xaf   : > { %v5021_v30 = vpop.f32.mrf.mxu2 }
  0xb0   : > { %v5023_v31 = vpop.f32.mrf.mxu3 }
  0xb1   : > { %v5025_v33 = vpop.f32.mrf.mxu1 }
  0xb2   : > { %v5027_v36 = vpop.f32.mrf.mxu0 }
  0xb4   : > { %4049 = vmatmul.msk.f32.gmra.mxu1 %vm258_vm0, %v308_v32  ;;  %4122 = vmatmul.msk.f32.gmra.mxu2 %vm258_vm0, %v1269_v14  ;;  %v1276_v32 = vmax.f32 %v4163_v22, 0.0  ;;  %v4166_v22 = vld [vmem:[%s4840_s24 + $0xa2] sm:$0xff] }
  0xb5   : > { %4195 = vmatmul.msk.f32.gmra.mxu3 %vm258_vm0, %v1271_v34  ;;  %4268 = vmatmul.msk.f32.gmra.mxu0 %vm258_vm0, %v1616_v35 }
  0xb7   : > { %v5036_v40 = vpop.f32.mrf.mxu2 }
  0xb8   : > { %v5038_v41 = vpop.f32.mrf.mxu3 }
  0xb9   : > { %v5040_v43 = vpop.f32.mrf.mxu1 }
  0xba   : > { %v5042_v46 = vpop.f32.mrf.mxu0 }
  0xbc   : > { %4050 = vmatmul.msk.f32.gmra.mxu1 %vm258_vm0, %v309_v42  ;;  %4123 = vmatmul.msk.f32.gmra.mxu2 %vm258_vm0, %v1270_v24  ;;  %v4236_v24 = vld [vmem:[%s4840_s24 + $0x8b] sm:$0xff] }
  0xbd   : > { %4196 = vmatmul.msk.f32.gmra.mxu3 %vm258_vm0, %v1272_v44  ;;  %4269 = vmatmul.msk.f32.gmra.mxu0 %vm258_vm0, %v1617_v45  ;;  %v314_v45 = vmax.f32 %v278_v37, 0.0 }
  0xbf   : > { %v5051_v50 = vpop.f32.mrf.mxu2 }
  0xc0   : > { %v5053_v51 = vpop.f32.mrf.mxu3 }
  0xc1   : > { %v5055_v53 = vpop.f32.mrf.mxu1 }
  0xc2   : > { %v5057_v56 = vpop.f32.mrf.mxu0 }
  0xc4   : > { %4051 = vmatmul.msk.f32.gmra.mxu1 %vm258_vm0, %v310_v52  ;;  %4124 = vmatmul.msk.f32.gmra.mxu2 %vm258_vm0, %v1271_v34  ;;  %v1621_v34 = vmax.f32 %v4236_v24, 0.0  ;;  %v4239_v24 = vld [vmem:[%s4840_s24 + $0xa3] sm:$0xff] }
  0xc5   : > { %4197 = vmatmul.msk.f32.gmra.mxu3 %vm258_vm0, %v1273_v54  ;;  %4270 = vmatmul.msk.f32.gmra.mxu0 %vm258_vm0, %v1618_v55 }
  0xc7   : > { %v5066_v60 = vpop.f32.mrf.mxu2 }
  0xc8   : > { %v5068_v61 = vpop.f32.mrf.mxu3 }
  0xc9   : > { %v5070_v63 = vpop.f32.mrf.mxu1 }
  0xca   : > { %v5072_v2 = vpop.f32.mrf.mxu0 }
  0xcc   : > { %4052 = vmatmul.msk.f32.gmra.mxu1 %vm258_vm0, %v311_v62  ;;  %4125 = vmatmul.msk.f32.gmra.mxu2 %vm258_vm0, %v1272_v44 }
  0xcd   : > { %4198 = vmatmul.msk.f32.gmra.mxu3 %vm258_vm0, %v1274_v0  ;;  %4271 = vmatmul.msk.f32.gmra.mxu0 %vm258_vm0, %v1619_v1 }
  0xcf   : > { %v5081_v8 = vpop.f32.mrf.mxu2 }
  0xd0   : > { %v5083_v9 = vpop.f32.mrf.mxu3 }
  0xd1   : > { %v5085_v14 = vpop.f32.mrf.mxu1 }
  0xd2   : > { %v5087_v18 = vpop.f32.mrf.mxu0 }
  0xd4   : > { %4053 = vmatmul.msk.f32.gmra.mxu1 %vm258_vm0, %v312_v12  ;;  %4126 = vmatmul.msk.f32.gmra.mxu2 %vm258_vm0, %v1273_v54  ;;  %v279_v54 = vld [vmem:[%s4840_s24 + $0x88] sm:$0xff] }
  0xd5   : > { %4199 = vmatmul.msk.f32.gmra.mxu3 %vm258_vm0, %v1275_v15  ;;  %4272 = vmatmul.msk.f32.gmra.mxu0 %vm258_vm0, %v1620_v17  ;;  %v315_v1 = vmax.f32 %v279_v54, 0.0 }
  0xd7   : > { %v5096_v25 = vpop.f32.mrf.mxu2 }
  0xd8   : > { %v5098_v27 = vpop.f32.mrf.mxu3 }
  0xd9   : > { %v5100_v29 = vpop.f32.mrf.mxu1 }
  0xda   : > { %v5102_v35 = vpop.f32.mrf.mxu0 }
  0xdc   : > { %4054 = vmatmul.msk.f32.gmra.mxu1 %vm258_vm0, %v313_v28  ;;  %4127 = vmatmul.msk.f32.gmra.mxu2 %vm258_vm0, %v1274_v0 }
  0xdd   : > { %4200 = vmatmul.msk.f32.gmra.mxu3 %vm258_vm0, %v1276_v32  ;;  %4273 = vmatmul.msk.f32.gmra.mxu0 %vm258_vm0, %v1621_v34 }
  0xdf   : > { %v5111_v42 = vpop.f32.mrf.mxu2 }
  0xe0   : > { %v5113_v44 = vpop.f32.mrf.mxu3 }
  0xe1   : > { %v770_v47 = vpop.f32.mrf.mxu1 }
  0xe2   : > { %v1769_v52 = vpop.f32.mrf.mxu0  ;;  %v771_v55 = vadd.f32 %v770_v47, %v4982_v6  ;;  %v280_v6 = vld [vmem:[%s4840_s24 + $0x90] sm:$0xff]  ;;  %v1624_v47 = vmax.f32 %v4239_v24, 0.0 }
  0xe3   : > { %v316_v38 = vmax.f32 %v280_v6, 0.0 }
  0xe4   : > { %4055 = vmatmul.msk.f32.gmra.mxu1 %vm258_vm0, %v314_v45  ;;  %4128 = vmatmul.msk.f32.gmra.mxu2 %vm258_vm0, %v1275_v15  ;;  %v1279_v45 = vmax.f32 %v4166_v22, 0.0  ;;  %v4241_v22 = vld [vmem:[%s4840_s24 + $0xb3] sm:$0xff] }
  0xe5   : > { %4201 = vmatmul.msk.f32.gmra.mxu3 %vm258_vm0, %v1277_v48  ;;  %4274 = vmatmul.msk.f32.gmra.mxu0 %vm258_vm0, %v1622_v49 }
  0xe7   : > { %v1079_v59 = vpop.f32.mrf.mxu2 }
  0xe8   : > { %v1187_v62 = vadd.f32 %v1079_v59, %v771_v55  ;;  %v1424_v0 = vpop.f32.mrf.mxu3  ;;  %v4167_v55 = vld [vmem:[%s4840_s24 + $0xaa] sm:$0xff] }
  0xe9   : > { %v773_v4 = vpop.f32.mrf.mxu1 }
  0xea   : > { %v1532_v12 = vadd.f32 %v1424_v0, %v1187_v62  ;;  %v1772_v15 = vpop.f32.mrf.mxu0  ;;  %v774_v19 = vadd.f32 %v773_v4, %v4997_v16  ;;  %v281_v16 = vld [vmem:[%s4840_s24 + $0x98] sm:$0xff]  ;;  %v1280_v4 = vmax.f32 %v4167_v55, 0.0 }
  0xeb   : > { %v317_v0 = vmax.f32 %v281_v16, 0.0  ;;  %v4242_v55 = vld [vmem:[%s4840_s24 + $0xbb] sm:$0xff] }
  0xec   : > { %v5123_v17 = vadd.f32 %v1769_v52, %v1532_v12  ;;  %4056 = vmatmul.msk.f32.gmra.mxu1 %vm258_vm0, %v315_v1  ;;  %4129 = vmatmul.msk.f32.gmra.mxu2 %vm258_vm0, %v1276_v32 }
  0xed   : > { %4202 = vmatmul.msk.f32.gmra.mxu3 %vm258_vm0, %v1278_v5  ;;  %4275 = vmatmul.msk.f32.gmra.mxu0 %vm258_vm0, %v1623_v7  ;;  %v1625_v7 = vmax.f32 %v4240_v57, 0.0 }
  0xef   : > { %v1082_v28 = vpop.f32.mrf.mxu2 }
  0xf0   : > { %v1188_v34 = vadd.f32 %v1082_v28, %v774_v19  ;;  %v1427_v37 = vpop.f32.mrf.mxu3  ;;  %v4168_v19 = vld [vmem:[%s4840_s24 + $0xb2] sm:$0xff] }
  0xf1   : > { %v776_v39 = vpop.f32.mrf.mxu1 }
  0xf2   : > { %v1533_v32 = vadd.f32 %v1427_v37, %v1188_v34  ;;  %v1775_v49 = vpop.f32.mrf.mxu0  ;;  %v777_v54 = vadd.f32 %v776_v39, %v5012_v26  ;;  %v282_v26 = vld [vmem:[%s4840_s24 + $0xa0] sm:$0xff]  ;;  %v1281_v39 = vmax.f32 %v4168_v19, 0.0 }
  0xf3   : > { %v318_v37 = vmax.f32 %v282_v26, 0.0  ;;  %v4243_v19 = vld [vmem:[%s4840_s24 + $0xc3] sm:$0xff] }
  0xf4   : > { %v5133_v52 = vadd.f32 %v1772_v15, %v1533_v32  ;;  %4057 = vmatmul.msk.f32.gmra.mxu1 %vm258_vm0, %v316_v38  ;;  %4130 = vmatmul.msk.f32.gmra.mxu2 %vm258_vm0, %v1277_v48 }
  0xf5   : > { %4203 = vmatmul.msk.f32.gmra.mxu3 %vm258_vm0, %v1279_v45  ;;  %4276 = vmatmul.msk.f32.gmra.mxu0 %vm258_vm0, %v1624_v47  ;;  %v1626_v47 = vmax.f32 %v4241_v22, 0.0 }
  0xf7   : > { %v1085_v58 = vpop.f32.mrf.mxu2 }
  0xf8   : > { %v1189_v59 = vadd.f32 %v1085_v58, %v777_v54  ;;  %v1430_v62 = vpop.f32.mrf.mxu3  ;;  %v4169_v54 = vld [vmem:[%s4840_s24 + $0xba] sm:$0xff] }
  0xf9   : > { %v779_v1 = vpop.f32.mrf.mxu1 }
  0xfa   : > { %v1534_v48 = vadd.f32 %v1430_v62, %v1189_v59  ;;  %v1778_v12 = vpop.f32.mrf.mxu0  ;;  %v780_v6 = vadd.f32 %v779_v1, %v5027_v36  ;;  %v283_v36 = vld [vmem:[%s4840_s24 + $0xa8] sm:$0xff]  ;;  %v1282_v1 = vmax.f32 %v4169_v54, 0.0 }
  0xfb   : > { %v319_v62 = vmax.f32 %v283_v36, 0.0  ;;  %v4244_v54 = vld [vmem:[%s4840_s24 + $0xcb] sm:$0xff] }
  0xfc   : > { %v5143_v15 = vadd.f32 %v1775_v49, %v1534_v48  ;;  %4058 = vmatmul.msk.f32.gmra.mxu1 %vm258_vm0, %v317_v0  ;;  %4131 = vmatmul.msk.f32.gmra.mxu2 %vm258_vm0, %v1278_v5 }
  0xfd   : > { %4204 = vmatmul.msk.f32.gmra.mxu3 %vm258_vm0, %v1280_v4  ;;  %4277 = vmatmul.msk.f32.gmra.mxu0 %vm258_vm0, %v1625_v7  ;;  %v1627_v7 = vmax.f32 %v4242_v55, 0.0 }
  0xff   : > { %v1088_v24 = vpop.f32.mrf.mxu2 }
 0x100   : > { %v1190_v28 = vadd.f32 %v1088_v24, %v780_v6  ;;  %v1433_v34 = vpop.f32.mrf.mxu3  ;;  %v4170_v6 = vld [vmem:[%s4840_s24 + $0xc2] sm:$0xff] }
 0x101   : > { %v782_v38 = vpop.f32.mrf.mxu1 }
 0x102   : > { %v1535_v5 = vadd.f32 %v1433_v34, %v1190_v28  ;;  %v1781_v32 = vpop.f32.mrf.mxu0  ;;  %v783_v16 = vadd.f32 %v782_v38, %v5042_v46  ;;  %v284_v46 = vld [vmem:[%s4840_s24 + $0xb0] sm:$0xff]  ;;  %v1283_v38 = vmax.f32 %v4170_v6, 0.0 }
 0x103   : > { %v320_v34 = vmax.f32 %v284_v46, 0.0  ;;  %v4245_v6 = vld [vmem:[%s4840_s24 + $0xd3] sm:$0xff] }
 0x104   : > { %v5153_v49 = vadd.f32 %v1778_v12, %v1535_v5  ;;  %4059 = vmatmul.msk.f32.gmra.mxu1 %vm258_vm0, %v318_v37  ;;  %4132 = vmatmul.msk.f32.gmra.mxu2 %vm258_vm0, %v1279_v45 }
 0x105   : > { %4205 = vmatmul.msk.f32.gmra.mxu3 %vm258_vm0, %v1281_v39  ;;  %4278 = vmatmul.msk.f32.gmra.mxu0 %vm258_vm0, %v1626_v47  ;;  %v1628_v47 = vmax.f32 %v4243_v19, 0.0 }
 0x107   : > { %v1091_v57 = vpop.f32.mrf.mxu2 }
 0x108   : > { %v1191_v58 = vadd.f32 %v1091_v57, %v783_v16  ;;  %v1436_v59 = vpop.f32.mrf.mxu3  ;;  %v4171_v16 = vld [vmem:[%s4840_s24 + $0xca] sm:$0xff] }
 0x109   : > { %v785_v0 = vpop.f32.mrf.mxu1 }
 0x10a   : > { %v1536_v45 = vadd.f32 %v1436_v59, %v1191_v58  ;;  %v1784_v48 = vpop.f32.mrf.mxu0  ;;  %v786_v26 = vadd.f32 %v785_v0, %v5057_v56  ;;  %v285_v56 = vld [vmem:[%s4840_s24 + $0xb8] sm:$0xff]  ;;  %v1284_v0 = vmax.f32 %v4171_v16, 0.0 }
 0x10b   : > { %v321_v59 = vmax.f32 %v285_v56, 0.0  ;;  %v4246_v16 = vld [vmem:[%s4840_s24 + $0xdb] sm:$0xff] }
 0x10c   : > { %v5163_v12 = vadd.f32 %v1781_v32, %v1536_v45  ;;  %4060 = vmatmul.msk.f32.gmra.mxu1 %vm258_vm0, %v319_v62  ;;  %4133 = vmatmul.msk.f32.gmra.mxu2 %vm258_vm0, %v1280_v4 }
 0x10d   : > { %4206 = vmatmul.msk.f32.gmra.mxu3 %vm258_vm0, %v1282_v1  ;;  %4279 = vmatmul.msk.f32.gmra.mxu0 %vm258_vm0, %v1627_v7  ;;  %v1629_v7 = vmax.f32 %v4244_v54, 0.0 }
 0x10f   : > { %v1094_v22 = vpop.f32.mrf.mxu2 }
 0x110   : > { %v1192_v24 = vadd.f32 %v1094_v22, %v786_v26  ;;  %v1439_v28 = vpop.f32.mrf.mxu3  ;;  %v4172_v26 = vld [vmem:[%s4840_s24 + $0xd2] sm:$0xff] }
 0x111   : > { %v788_v37 = vpop.f32.mrf.mxu1 }
 0x112   : > { %v1537_v4 = vadd.f32 %v1439_v28, %v1192_v24  ;;  %v1787_v5 = vpop.f32.mrf.mxu0  ;;  %v789_v36 = vadd.f32 %v788_v37, %v5072_v2  ;;  %v286_v2 = vld [vmem:[%s4840_s24 + $0xc0] sm:$0xff]  ;;  %v1285_v37 = vmax.f32 %v4172_v26, 0.0 }
 0x113   : > { %v322_v28 = vmax.f32 %v286_v2, 0.0  ;;  %v4247_v26 = vld [vmem:[%s4840_s24 + $0xe3] sm:$0xff] }
 0x114   : > { %v5173_v32 = vadd.f32 %v1784_v48, %v1537_v4  ;;  %4061 = vmatmul.msk.f32.gmra.mxu1 %vm258_vm0, %v320_v34  ;;  %4134 = vmatmul.msk.f32.gmra.mxu2 %vm258_vm0, %v1281_v39 }
 0x115   : > { %4207 = vmatmul.msk.f32.gmra.mxu3 %vm258_vm0, %v1283_v38  ;;  %4280 = vmatmul.msk.f32.gmra.mxu0 %vm258_vm0, %v1628_v47  ;;  %v1630_v47 = vmax.f32 %v4245_v6, 0.0 }
 0x117   : > { %v1097_v55 = vpop.f32.mrf.mxu2 }
 0x118   : > { %v1193_v57 = vadd.f32 %v1097_v55, %v789_v36  ;;  %v1442_v58 = vpop.f32.mrf.mxu3  ;;  %v4173_v36 = vld [vmem:[%s4840_s24 + $0xda] sm:$0xff] }
 0x119   : > { %v791_v62 = vpop.f32.mrf.mxu1 }
 0x11a   : > { %v1538_v39 = vadd.f32 %v1442_v58, %v1193_v57  ;;  %v1790_v45 = vpop.f32.mrf.mxu0  ;;  %v792_v46 = vadd.f32 %v791_v62, %v5087_v18  ;;  %v287_v18 = vld [vmem:[%s4840_s24 + $0xc8] sm:$0xff]  ;;  %v1286_v62 = vmax.f32 %v4173_v36, 0.0 }
 0x11b   : > { %v323_v58 = vmax.f32 %v287_v18, 0.0  ;;  %v4248_v36 = vld [vmem:[%s4840_s24 + $0xeb] sm:$0xff] }
 0x11c   : > { %v5183_v48 = vadd.f32 %v1787_v5, %v1538_v39  ;;  %4062 = vmatmul.msk.f32.gmra.mxu1 %vm258_vm0, %v321_v59  ;;  %4135 = vmatmul.msk.f32.gmra.mxu2 %vm258_vm0, %v1282_v1 }
 0x11d   : > { %4208 = vmatmul.msk.f32.gmra.mxu3 %vm258_vm0, %v1284_v0  ;;  %4281 = vmatmul.msk.f32.gmra.mxu0 %vm258_vm0, %v1629_v7  ;;  %v1631_v7 = vmax.f32 %v4246_v16, 0.0 }
 0x11f   : > { %v1100_v19 = vpop.f32.mrf.mxu2 }
 0x120   : > { %v1194_v22 = vadd.f32 %v1100_v19, %v792_v46  ;;  %v1445_v24 = vpop.f32.mrf.mxu3  ;;  %v4174_v46 = vld [vmem:[%s4840_s24 + $0xe2] sm:$0xff] }
 0x121   : > { %v794_v34 = vpop.f32.mrf.mxu1 }
 0x122   : > { %v1539_v1 = vadd.f32 %v1445_v24, %v1194_v22  ;;  %v1793_v4 = vpop.f32.mrf.mxu0  ;;  %v795_v56 = vadd.f32 %v794_v34, %v5102_v35  ;;  %v288_v35 = vld [vmem:[%s4840_s24 + $0xd0] sm:$0xff]  ;;  %v1287_v34 = vmax.f32 %v4174_v46, 0.0 }
 0x123   : > { %v324_v24 = vmax.f32 %v288_v35, 0.0  ;;  %v4249_v46 = vld [vmem:[%s4840_s24 + $0xf3] sm:$0xff] }
 0x124   : > { %v5193_v5 = vadd.f32 %v1790_v45, %v1539_v1  ;;  %4063 = vmatmul.msk.f32.gmra.mxu1 %vm258_vm0, %v322_v28  ;;  %4136 = vmatmul.msk.f32.gmra.mxu2 %vm258_vm0, %v1283_v38 }
 0x125   : > { %4209 = vmatmul.msk.f32.gmra.mxu3 %vm258_vm0, %v1285_v37  ;;  %4282 = vmatmul.msk.f32.gmra.mxu0 %vm258_vm0, %v1630_v47  ;;  %v1632_v47 = vmax.f32 %v4247_v26, 0.0 }
 0x127   : > { %v1103_v54 = vpop.f32.mrf.mxu2 }
 0x128   : > { %v1195_v55 = vadd.f32 %v1103_v54, %v795_v56  ;;  %v1448_v57 = vpop.f32.mrf.mxu3  ;;  %v4175_v56 = vld [vmem:[%s4840_s24 + $0xea] sm:$0xff] }
 0x129   : > { %v797_v59 = vpop.f32.mrf.mxu1 }
 0x12a   : > { %v1540_v38 = vadd.f32 %v1448_v57, %v1195_v55  ;;  %v1796_v39 = vpop.f32.mrf.mxu0  ;;  %v798_v2 = vadd.f32 %v797_v59, %v4980_v3  ;;  %v289_v3 = vld [vmem:[%s4840_s24 + $0xd8] sm:$0xff]  ;;  %v1288_v59 = vmax.f32 %v4175_v56, 0.0 }
 0x12b   : > { %v325_v57 = vmax.f32 %v289_v3, 0.0  ;;  %v4250_v56 = vld [vmem:[%s4840_s24 + $0xfb] sm:$0xff] }
 0x12c   : > { %v5203_v45 = vadd.f32 %v1793_v4, %v1540_v38  ;;  %4064 = vmatmul.msk.f32.gmra.mxu1 %vm258_vm0, %v323_v58  ;;  %4137 = vmatmul.msk.f32.gmra.mxu2 %vm258_vm0, %v1284_v0 }
 0x12d   : > { %4210 = vmatmul.msk.f32.gmra.mxu3 %vm258_vm0, %v1286_v62  ;;  %4283 = vmatmul.msk.f32.gmra.mxu0 %vm258_vm0, %v1631_v7  ;;  %v1633_v7 = vmax.f32 %v4248_v36, 0.0 }
 0x12f   : > { %v1106_v6 = vpop.f32.mrf.mxu2 }
 0x130   : > { %v1196_v19 = vadd.f32 %v1106_v6, %v798_v2  ;;  %v1451_v22 = vpop.f32.mrf.mxu3  ;;  %v4176_v2 = vld [vmem:[%s4840_s24 + $0xf2] sm:$0xff] }
 0x131   : > { %v800_v28 = vpop.f32.mrf.mxu1 }
 0x132   : > { %v1541_v0 = vadd.f32 %v1451_v22, %v1196_v19  ;;  %v1799_v1 = vpop.f32.mrf.mxu0  ;;  %v801_v18 = vadd.f32 %v800_v28, %v4995_v13  ;;  %v290_v13 = vld [vmem:[%s4840_s24 + $0xe0] sm:$0xff]  ;;  %v1289_v28 = vmax.f32 %v4176_v2, 0.0 }
 0x133   : > { %v326_v22 = vmax.f32 %v290_v13, 0.0  ;;  %v4251_v2 = vld [vmem:[%s4840_s24 + $0x103] sm:$0xff] }
 0x134   : > { %v5213_v4 = vadd.f32 %v1796_v39, %v1541_v0  ;;  %4065 = vmatmul.msk.f32.gmra.mxu1 %vm258_vm0, %v324_v24  ;;  %4138 = vmatmul.msk.f32.gmra.mxu2 %vm258_vm0, %v1285_v37 }
 0x135   : > { %4211 = vmatmul.msk.f32.gmra.mxu3 %vm258_vm0, %v1287_v34  ;;  %4284 = vmatmul.msk.f32.gmra.mxu0 %vm258_vm0, %v1632_v47  ;;  %v1634_v47 = vmax.f32 %v4249_v46, 0.0 }
 0x137   : > { %v1109_v16 = vpop.f32.mrf.mxu2 }
 0x138   : > { %v1197_v54 = vadd.f32 %v1109_v16, %v801_v18  ;;  %v1454_v55 = vpop.f32.mrf.mxu3  ;;  %v4177_v18 = vld [vmem:[%s4840_s24 + $0xfa] sm:$0xff] }
 0x139   : > { %v803_v58 = vpop.f32.mrf.mxu1 }
 0x13a   : > { %v1542_v37 = vadd.f32 %v1454_v55, %v1197_v54  ;;  %v1802_v38 = vpop.f32.mrf.mxu0  ;;  %v804_v35 = vadd.f32 %v803_v58, %v5010_v23  ;;  %v291_v23 = vld [vmem:[%s4840_s24 + $0xe8] sm:$0xff]  ;;  %v1290_v58 = vmax.f32 %v4177_v18, 0.0 }
 0x13b   : > { %v327_v55 = vmax.f32 %v291_v23, 0.0  ;;  %v4252_v18 = vld [vmem:[%s4840_s24 + $0x10b] sm:$0xff] }
 0x13c   : > { %v5223_v39 = vadd.f32 %v1799_v1, %v1542_v37  ;;  %4066 = vmatmul.msk.f32.gmra.mxu1 %vm258_vm0, %v325_v57  ;;  %4139 = vmatmul.msk.f32.gmra.mxu2 %vm258_vm0, %v1286_v62 }
 0x13d   : > { %4212 = vmatmul.msk.f32.gmra.mxu3 %vm258_vm0, %v1288_v59  ;;  %4285 = vmatmul.msk.f32.gmra.mxu0 %vm258_vm0, %v1633_v7  ;;  %v1635_v7 = vmax.f32 %v4250_v56, 0.0 }
 0x13f   : > { %v1112_v26 = vpop.f32.mrf.mxu2 }
 0x140   : > { %v1198_v6 = vadd.f32 %v1112_v26, %v804_v35  ;;  %v1457_v19 = vpop.f32.mrf.mxu3  ;;  %v4178_v35 = vld [vmem:[%s4840_s24 + $0x102] sm:$0xff] }
 0x141   : > { %v806_v24 = vpop.f32.mrf.mxu1 }
 0x142   : > { %v1543_v62 = vadd.f32 %v1457_v19, %v1198_v6  ;;  %v1805_v0 = vpop.f32.mrf.mxu0  ;;  %v807_v3 = vadd.f32 %v806_v24, %v5025_v33  ;;  %v292_v33 = vld [vmem:[%s4840_s24 + $0xf0] sm:$0xff]  ;;  %v1291_v24 = vmax.f32 %v4178_v35, 0.0 }
 0x143   : > { %v328_v19 = vmax.f32 %v292_v33, 0.0  ;;  %v4253_v35 = vld [vmem:[%s4840_s24 + $0x113] sm:$0xff] }
 0x144   : > { %v5233_v1 = vadd.f32 %v1802_v38, %v1543_v62  ;;  %4067 = vmatmul.msk.f32.gmra.mxu1 %vm258_vm0, %v326_v22  ;;  %4140 = vmatmul.msk.f32.gmra.mxu2 %vm258_vm0, %v1287_v34 }
 0x145   : > { %4213 = vmatmul.msk.f32.gmra.mxu3 %vm258_vm0, %v1289_v28  ;;  %4286 = vmatmul.msk.f32.gmra.mxu0 %vm258_vm0, %v1634_v47  ;;  %v1636_v47 = vmax.f32 %v4251_v2, 0.0 }
 0x147   : > { %v1115_v36 = vpop.f32.mrf.mxu2 }
 0x148   : > { %v1199_v16 = vadd.f32 %v1115_v36, %v807_v3  ;;  %v1460_v54 = vpop.f32.mrf.mxu3  ;;  %v4179_v3 = vld [vmem:[%s4840_s24 + $0x10a] sm:$0xff] }
 0x149   : > { %v809_v57 = vpop.f32.mrf.mxu1 }
 0x14a   : > { %v1544_v34 = vadd.f32 %v1460_v54, %v1199_v16  ;;  %v1808_v37 = vpop.f32.mrf.mxu0  ;;  %v810_v13 = vadd.f32 %v809_v57, %v5040_v43  ;;  %v293_v43 = vld [vmem:[%s4840_s24 + $0xf8] sm:$0xff]  ;;  %v1292_v57 = vmax.f32 %v4179_v3, 0.0 }
 0x14b   : > { %v329_v54 = vmax.f32 %v293_v43, 0.0  ;;  %v4254_v3 = vld [vmem:[%s4840_s24 + $0x11b] sm:$0xff] }
 0x14c   : > { %v5243_v38 = vadd.f32 %v1805_v0, %v1544_v34  ;;  %4068 = vmatmul.msk.f32.gmra.mxu1 %vm258_vm0, %v327_v55  ;;  %4141 = vmatmul.msk.f32.gmra.mxu2 %vm258_vm0, %v1288_v59 }
 0x14d   : > { %4214 = vmatmul.msk.f32.gmra.mxu3 %vm258_vm0, %v1290_v58  ;;  %4287 = vmatmul.msk.f32.gmra.mxu0 %vm258_vm0, %v1635_v7  ;;  %v1637_v7 = vmax.f32 %v4252_v18, 0.0 }
 0x14f   : > { %v1118_v46 = vpop.f32.mrf.mxu2 }
 0x150   : > { %v1200_v26 = vadd.f32 %v1118_v46, %v810_v13  ;;  %v1463_v6 = vpop.f32.mrf.mxu3  ;;  %v4180_v13 = vld [vmem:[%s4840_s24 + $0x112] sm:$0xff] }
 0x151   : > { %v812_v22 = vpop.f32.mrf.mxu1 }
 0x152   : > { %v1545_v59 = vadd.f32 %v1463_v6, %v1200_v26  ;;  %v1811_v62 = vpop.f32.mrf.mxu0  ;;  %v813_v23 = vadd.f32 %v812_v22, %v5055_v53  ;;  %v294_v53 = vld [vmem:[%s4840_s24 + $0x100] sm:$0xff]  ;;  %v1293_v22 = vmax.f32 %v4180_v13, 0.0 }
 0x153   : > { %v330_v6 = vmax.f32 %v294_v53, 0.0  ;;  %v4255_v13 = vld [vmem:[%s4840_s24 + $0x123] sm:$0xff] }
 0x154   : > { %v5253_v0 = vadd.f32 %v1808_v37, %v1545_v59  ;;  %4069 = vmatmul.msk.f32.gmra.mxu1 %vm258_vm0, %v328_v19  ;;  %4142 = vmatmul.msk.f32.gmra.mxu2 %vm258_vm0, %v1289_v28 }
 0x155   : > { %4215 = vmatmul.msk.f32.gmra.mxu3 %vm258_vm0, %v1291_v24  ;;  %4288 = vmatmul.msk.f32.gmra.mxu0 %vm258_vm0, %v1636_v47  ;;  %v1638_v47 = vmax.f32 %v4253_v35, 0.0 }
 0x157   : > { %v1121_v56 = vpop.f32.mrf.mxu2 }
 0x158   : > { %v1201_v36 = vadd.f32 %v1121_v56, %v813_v23  ;;  %v1466_v16 = vpop.f32.mrf.mxu3  ;;  %v4181_v23 = vld [vmem:[%s4840_s24 + $0x11a] sm:$0xff] }
 0x159   : > { %v815_v55 = vpop.f32.mrf.mxu1 }
 0x15a   : > { %v1546_v28 = vadd.f32 %v1466_v16, %v1201_v36  ;;  %v1814_v34 = vpop.f32.mrf.mxu0  ;;  %v816_v33 = vadd.f32 %v815_v55, %v5070_v63  ;;  %v295_v63 = vld [vmem:[%s4840_s24 + $0x108] sm:$0xff]  ;;  %v1294_v55 = vmax.f32 %v4181_v23, 0.0 }
 0x15b   : > { %v331_v16 = vmax.f32 %v295_v63, 0.0  ;;  %v4256_v23 = vld [vmem:[%s4840_s24 + $0x12b] sm:$0xff] }
 0x15c   : > { %v5263_v37 = vadd.f32 %v1811_v62, %v1546_v28  ;;  %4070 = vmatmul.msk.f32.gmra.mxu1 %vm258_vm0, %v329_v54  ;;  %4143 = vmatmul.msk.f32.gmra.mxu2 %vm258_vm0, %v1290_v58 }
 0x15d   : > { %4216 = vmatmul.msk.f32.gmra.mxu3 %vm258_vm0, %v1292_v57  ;;  %4289 = vmatmul.msk.f32.gmra.mxu0 %vm258_vm0, %v1637_v7  ;;  %v1639_v7 = vmax.f32 %v4254_v3, 0.0 }
 0x15f   : > { %v1124_v2 = vpop.f32.mrf.mxu2 }
 0x160   : > { %v1202_v46 = vadd.f32 %v1124_v2, %v816_v33  ;;  %v1469_v26 = vpop.f32.mrf.mxu3  ;;  %v4182_v33 = vld [vmem:[%s4840_s24 + $0x122] sm:$0xff] }
 0x161   : > { %v818_v19 = vpop.f32.mrf.mxu1 }
 0x162   : > { %v1547_v58 = vadd.f32 %v1469_v26, %v1202_v46  ;;  %v1817_v59 = vpop.f32.mrf.mxu0  ;;  %v819_v43 = vadd.f32 %v818_v19, %v5085_v14  ;;  %v296_v14 = vld [vmem:[%s4840_s24 + $0x110] sm:$0xff]  ;;  %v1295_v19 = vmax.f32 %v4182_v33, 0.0  ;;  %v4367_v33 = vld [vmem:[%s4840_s24 + $0x24] sm:$0xff] }
 0x163   : > { %v332_v26 = vmax.f32 %v296_v14, 0.0 }
 0x164   : > { %v5273_v62 = vadd.f32 %v1814_v34, %v1547_v58  ;;  %4071 = vmatmul.msk.f32.gmra.mxu1 %vm258_vm0, %v330_v6  ;;  %4144 = vmatmul.msk.f32.gmra.mxu2 %vm258_vm0, %v1291_v24 }
 0x165   : > { %4217 = vmatmul.msk.f32.gmra.mxu3 %vm258_vm0, %v1293_v22  ;;  %4290 = vmatmul.msk.f32.gmra.mxu0 %vm258_vm0, %v1638_v47  ;;  %v1640_v47 = vmax.f32 %v4255_v13, 0.0 }
 0x167   : > { %v1127_v18 = vpop.f32.mrf.mxu2 }
 0x168   : > { %v1203_v56 = vadd.f32 %v1127_v18, %v819_v43  ;;  %v1472_v36 = vpop.f32.mrf.mxu3  ;;  %v4183_v43 = vld [vmem:[%s4840_s24 + $0x12a] sm:$0xff] }
 0x169   : > { %v821_v54 = vpop.f32.mrf.mxu1 }
 0x16a   : > { %v1548_v24 = vadd.f32 %v1472_v36, %v1203_v56  ;;  %v1820_v28 = vpop.f32.mrf.mxu0  ;;  %v822_v53 = vadd.f32 %v821_v54, %v5100_v29  ;;  %v297_v29 = vld [vmem:[%s4840_s24 + $0x118] sm:$0xff]  ;;  %v1296_v54 = vmax.f32 %v4183_v43, 0.0 }
 0x16b   : > { %v333_v36 = vmax.f32 %v297_v29, 0.0 }
 0x16c   : > { %v5283_v34 = vadd.f32 %v1817_v59, %v1548_v24  ;;  %4072 = vmatmul.msk.f32.gmra.mxu1 %vm258_vm0, %v331_v16  ;;  %4145 = vmatmul.msk.f32.gmra.mxu2 %vm258_vm0, %v1292_v57 }
 0x16d   : > { %4218 = vmatmul.msk.f32.gmra.mxu3 %vm258_vm0, %v1294_v55  ;;  %4291 = vmatmul.msk.f32.gmra.mxu0 %vm258_vm0, %v1639_v7  ;;  %v1641_v7 = vmax.f32 %v4256_v23, 0.0  ;;  %v4295_v23 = vld [vmem:[%s4840_s24 + $0x1c] sm:$0xff] }
 0x16f   : > { %v1130_v35 = vpop.f32.mrf.mxu2 }
 0x170   : > { %v1204_v2 = vadd.f32 %v1130_v35, %v822_v53  ;;  %v1475_v46 = vpop.f32.mrf.mxu3  ;;  %v4294_v53 = vld [vmem:[%s4840_s24 + $0x14] sm:$0xff]  ;;  %v4440_v35 = vld [vmem:[%s4840_s24 + $0x25] sm:$0xff] }
 0x171   : > { %v824_v6 = vpop.f32.mrf.mxu1 }
 0x172   : > { %v1549_v57 = vadd.f32 %v1475_v46, %v1204_v2  ;;  %v1823_v58 = vpop.f32.mrf.mxu0  ;;  %v825_v63 = vadd.f32 %v824_v6, %v4991_v10  ;;  %v3293_v10 = vld [vmem:[%s6071_s2] sm:$0xff] }
 0x173   : > { %v4513_v2 = vld [vmem:[%s4840_s24 + $0x26] sm:$0xff] }
 0x174   : > { %v5293_v59 = vadd.f32 %v1820_v28, %v1549_v57  ;;  %4073 = vmatmul.msk.f32.gmra.mxu1 %vm258_vm0, %v332_v26  ;;  %4146 = vmatmul.msk.f32.gmra.mxu2 %vm258_vm0, %v1293_v22  ;;  %v4735_v28 = vmov 0  }
 0x175   : > { %4219 = vmatmul.msk.f32.gmra.mxu3 %vm258_vm0, %v1295_v19  ;;  %4292 = vmatmul.msk.f32.gmra.mxu0 %vm258_vm0, %v1640_v47  ;;  %v1951_v19 = vmax.f32 %v4294_v53, 0.0  ;;  %v2296_v47 = vmax.f32 %v4367_v33, 0.0 }
 0x176   : > { %4652 = vset.pattern.permute.xlu0 %v4735_v28  ;;  %4653 = vset.pattern.permute.xlu1 %v4735_v28 }
 0x177   : > { %v1133_v3 = vpop.f32.mrf.mxu2  ;;  %3331 = vperm.xlu0 %4652, %v3293_v10   ;;  %4654 = vset.pattern.permute.xlu2 %v4735_v28 }
 0x178   : > { %v1205_v18 = vadd.f32 %v1133_v3, %v825_v63  ;;  %v1478_v56 = vpop.f32.mrf.mxu3  ;;  %v4368_v3 = vld [vmem:[%s4840_s24 + $0x2c] sm:$0xff] }
 0x179   : > { %v827_v16 = vpop.f32.mrf.mxu1 }
 0x17a   : > { %v1550_v24 = vadd.f32 %v1478_v56, %v1205_v18  ;;  %v1826_v22 = vpop.f32.mrf.mxu0  ;;  %v828_v13 = vadd.f32 %v827_v16, %v5006_v20  ;;  %v3294_v20 = vld [vmem:[%s6071_s2 + $0x8] sm:$0xff] }
 0x17b   : > { %v4441_v56 = vld [vmem:[%s4840_s24 + $0x2d] sm:$0xff] }
 0x17c   : > { %v5306_v14 = vadd.f32 %v1823_v58, %v1550_v24  ;;  %4074 = vmatmul.msk.f32.gmra.mxu1 %vm258_vm0, %v333_v36  ;;  %4147 = vmatmul.msk.f32.gmra.mxu2 %vm258_vm0, %v1294_v55  ;;  %v2641_v55 = vmax.f32 %v4440_v35, 0.0  ;;  %v2986_v58 = vmax.f32 %v4513_v2, 0.0  ;;  %v4514_v36 = vld [vmem:[%s4840_s24 + $0x2e] sm:$0xff]  ;;  %v1952_v24 = vmax.f32 %v4295_v23, 0.0 }
 0x17d   : > { %4220 = vmatmul.msk.f32.gmra.mxu3 %vm258_vm0, %v1296_v54  ;;  %4293 = vmatmul.msk.f32.gmra.mxu0 %vm258_vm0, %v1641_v7  ;;  %v2642_v10 = vmax.f32 %v4441_v56, 0.0  ;;  %v2987_v53 = vmax.f32 %v4514_v36, 0.0  ;;  %v3295_v35 = vld [vmem:[%s6071_s2 + $0x10] sm:$0xff]  ;;  %v4370_v56 = vld [vmem:[%s4840_s24 + $0x3c] sm:$0xff] }
 0x17e   : > { %3341 = vperm.xlu1 %4653, %v3295_v35   ;;  %v4369_v2 = vld [vmem:[%s4840_s24 + $0x34] sm:$0xff] }
 0x17f   : > { %v1136_v46 = vpop.f32.mrf.mxu2  ;;  %3336 = vperm.xlu0 %4652, %v3294_v20  }
 0x180   : > { %v1206_v26 = vadd.f32 %v1136_v46, %v828_v13  ;;  %v1481_v6 = vpop.f32.mrf.mxu3 }
 0x181   : > { %v830_v57 = vpop.f32.mrf.mxu1 }
 0x182   : > { %v1551_v29 = vadd.f32 %v1481_v6, %v1206_v26  ;;  %v1829_v63 = vpop.f32.mrf.mxu0  ;;  %v831_v18 = vadd.f32 %v830_v57, %v5021_v30  ;;  %v4442_v26 = vld [vmem:[%s4840_s24 + $0x35] sm:$0xff] }
 0x183   : > { %v4515_v6 = vld [vmem:[%s4840_s24 + $0x36] sm:$0xff] }
 0x184   : > { %v5320_v43 = vadd.f32 %v1826_v22, %v1551_v29  ;;  %4331 = vmatmul.msk.f32.vlgmr.msra.gmra.mxu1 %vm258_vm0, %v1951_v19  ;;  %4404 = vmatmul.msk.f32.vlgmr.msra.gmra.mxu2 %vm258_vm0, %v2296_v47  ;;  %v2297_v22 = vmax.f32 %v4368_v3, 0.0  ;;  %v2988_v20 = vmax.f32 %v4515_v6, 0.0  ;;  %v4517_v6 = vld [vmem:[%s4840_s24 + $0x46] sm:$0xff] }
 0x185   : > { %4477 = vmatmul.msk.f32.vlgmr.msra.gmra.mxu3 %vm258_vm0, %v2641_v55  ;;  %4550 = vmatmul.msk.f32.vlgmr.msra.gmra.mxu0 %vm258_vm0, %v2986_v58  ;;  %v2298_v58 = vmax.f32 %v4369_v2, 0.0 }
 0x187   : > { %v1139_v16 = vpop.f32.mrf.mxu2 }
 0x188   : > { %v1207_v54 = vadd.f32 %v1139_v16, %v831_v18  ;;  %v1484_v7 = vpop.f32.mrf.mxu3  ;;  %v3296_v18 = vld [vmem:[%s6071_s2 + $0x18] sm:$0xff] }
 0x189   : > { %v833_v28 = vpop.f32.mrf.mxu1  ;;  %3346 = vperm.xlu1 %4653, %v3296_v18   ;;  %v4443_v16 = vld [vmem:[%s4840_s24 + $0x3d] sm:$0xff] }
 0x18a   : > { %v1552_v33 = vadd.f32 %v1484_v7, %v1207_v54  ;;  %v1832_v13 = vpop.f32.mrf.mxu0  ;;  %v834_v46 = vadd.f32 %v833_v28, %v5036_v40  ;;  %v4516_v54 = vld [vmem:[%s4840_s24 + $0x3e] sm:$0xff] }
 0x18c   : > { %v5334_v30 = vadd.f32 %v1829_v63, %v1552_v33  ;;  %4332 = vmatmul.msk.f32.gmra.mxu1 %vm258_vm0, %v1952_v24  ;;  %4405 = vmatmul.msk.f32.gmra.mxu2 %vm258_vm0, %v2297_v22  ;;  %v2643_v63 = vmax.f32 %v4442_v26, 0.0  ;;  %v2989_v33 = vmax.f32 %v4516_v54, 0.0  ;;  %v4444_v26 = vld [vmem:[%s4840_s24 + $0x45] sm:$0xff] }
 0x18d   : > { %4478 = vmatmul.msk.f32.gmra.mxu3 %vm258_vm0, %v2642_v10  ;;  %4551 = vmatmul.msk.f32.gmra.mxu0 %vm258_vm0, %v2987_v53  ;;  %v2299_v10 = vmax.f32 %v4370_v56, 0.0 }
 0x18f   : > { %v1142_v19 = vpop.f32.mrf.mxu2 }
 0x190   : > { %v1208_v57 = vadd.f32 %v1142_v19, %v834_v46  ;;  %v1487_v55 = vpop.f32.mrf.mxu3 }
 0x191   : > { %v836_v29 = vpop.f32.mrf.mxu1 }
 0x192   : > { %v1553_v23 = vadd.f32 %v1487_v55, %v1208_v57  ;;  %v1835_v3 = vpop.f32.mrf.mxu0  ;;  %v837_v36 = vadd.f32 %v836_v29, %v5051_v50  ;;  %v4371_v50 = vld [vmem:[%s4840_s24 + $0x44] sm:$0xff] }
 0x193   : > { %v2300_v29 = vmax.f32 %v4371_v50, 0.0  ;;  %v4373_v50 = vld [vmem:[%s4840_s24 + $0x54] sm:$0xff] }
 0x194   : > { %v5347_v40 = vadd.f32 %v1832_v13, %v1553_v23  ;;  %4333 = vmatmul.msk.f32.gmra.mxu1 %vm258_vm0, %v2296_v47  ;;  %4406 = vmatmul.msk.f32.gmra.mxu2 %vm258_vm0, %v2298_v58  ;;  %v2644_v47 = vmax.f32 %v4443_v16, 0.0  ;;  %v4518_v16 = vld [vmem:[%s4840_s24 + $0x4e] sm:$0xff] }
 0x195   : > { %4479 = vmatmul.msk.f32.gmra.mxu3 %vm258_vm0, %v2643_v63  ;;  %4552 = vmatmul.msk.f32.gmra.mxu0 %vm258_vm0, %v2988_v20  ;;  %v2990_v20 = vmax.f32 %v4517_v6, 0.0  ;;  %v4519_v6 = vld [vmem:[%s4840_s24 + $0x56] sm:$0xff] }
 0x197   : > { %v1145_v7 = vpop.f32.mrf.mxu2 }
 0x198   : > { %v1209_v24 = vadd.f32 %v1145_v7, %v837_v36  ;;  %v1490_v28 = vpop.f32.mrf.mxu3  ;;  %v4445_v36 = vld [vmem:[%s4840_s24 + $0x4d] sm:$0xff] }
 0x199   : > { %v839_v53 = vpop.f32.mrf.mxu1 }
 0x19a   : > { %v1554_v13 = vadd.f32 %v1490_v28, %v1209_v24  ;;  %v1838_v35 = vpop.f32.mrf.mxu0  ;;  %v840_v46 = vadd.f32 %v839_v53, %v5066_v60  ;;  %v4372_v60 = vld [vmem:[%s4840_s24 + $0x4c] sm:$0xff] }
 0x19b   : > { %v2301_v28 = vmax.f32 %v4372_v60, 0.0  ;;  %v3297_v60 = vld [vmem:[%s6071_s2 + $0x20] sm:$0xff] }
 0x19c   : > { %v5357_v2 = vadd.f32 %v1835_v3, %v1554_v13  ;;  %4334 = vmatmul.msk.f32.gmra.mxu1 %vm258_vm0, %v2297_v22  ;;  %4407 = vmatmul.msk.f32.gmra.mxu2 %vm258_vm0, %v2299_v10  ;;  %v2645_v22 = vmax.f32 %v4444_v26, 0.0  ;;  %v4446_v26 = vld [vmem:[%s4840_s24 + $0x55] sm:$0xff] }
 0x19d   : > { %4480 = vmatmul.msk.f32.gmra.mxu3 %vm258_vm0, %v2644_v47  ;;  %4553 = vmatmul.msk.f32.gmra.mxu0 %vm258_vm0, %v2989_v33  ;;  %v2991_v47 = vmax.f32 %v4518_v16, 0.0 }
 0x19e   : > { %3351 = vperm.xlu2 %4654, %v3297_v60  }
 0x19f   : > { %v1148_v19 = vpop.f32.mrf.mxu2 }
 0x1a0   : > { %v1210_v57 = vadd.f32 %v1148_v19, %v840_v46  ;;  %v1493_v55 = vpop.f32.mrf.mxu3 }
 0x1a1   : > { %v842_v63 = vpop.f32.mrf.mxu1 }
 0x1a2   : > { %v1555_v23 = vadd.f32 %v1493_v55, %v1210_v57  ;;  %v1841_v3 = vpop.f32.mrf.mxu0  ;;  %v843_v56 = vadd.f32 %v842_v63, %v5081_v8  ;;  %v2302_v63 = vmax.f32 %v4373_v50, 0.0 }
 0x1a4   : > { %v5367_v18 = vadd.f32 %v1838_v35, %v1555_v23  ;;  %4335 = vmatmul.msk.f32.gmra.mxu1 %vm258_vm0, %v2298_v58  ;;  %4408 = vmatmul.msk.f32.gmra.mxu2 %vm258_vm0, %v2300_v29  ;;  %v2646_v58 = vmax.f32 %v4445_v36, 0.0  ;;  %v3299_v35 = vld [vmem:[%s6071_s2 + $0x30] sm:$0xff]  ;;  %v4374_v36 = vld [vmem:[%s4840_s24 + $0x5c] sm:$0xff] }
 0x1a5   : > { %4481 = vmatmul.msk.f32.gmra.mxu3 %vm258_vm0, %v2645_v22  ;;  %4554 = vmatmul.msk.f32.gmra.mxu0 %vm258_vm0, %v2990_v20  ;;  %v2647_v20 = vmax.f32 %v4446_v26, 0.0  ;;  %v4375_v26 = vld [vmem:[%s4840_s24 + $0x64] sm:$0xff] }
 0x1a6   : > { %3361 = vperm.xlu0 %4652, %v3299_v35  }
 0x1a7   : > { %v1151_v54 = vpop.f32.mrf.mxu2 }
 0x1a8   : > { %v1211_v7 = vadd.f32 %v1151_v54, %v843_v56  ;;  %v1496_v24 = vpop.f32.mrf.mxu3  ;;  %v4447_v54 = vld [vmem:[%s4840_s24 + $0x5d] sm:$0xff] }
 0x1a9   : > { %v845_v53 = vpop.f32.mrf.mxu1 }
 0x1aa   : > { %v1556_v33 = vadd.f32 %v1496_v24, %v1211_v7  ;;  %v1844_v13 = vpop.f32.mrf.mxu0  ;;  %v846_v46 = vadd.f32 %v845_v53, %v5096_v25  ;;  %v3300_v25 = vld [vmem:[%s6071_s2 + $0x38] sm:$0xff] }
 0x1ab   : > { %3366 = vperm.xlu1 %4653, %v3300_v25   ;;  %v4520_v7 = vld [vmem:[%s4840_s24 + $0x5e] sm:$0xff] }
 0x1ac   : > { %v5380_v8 = vadd.f32 %v1841_v3, %v1556_v33  ;;  %4336 = vmatmul.msk.f32.gmra.mxu1 %vm258_vm0, %v2299_v10  ;;  %4409 = vmatmul.msk.f32.gmra.mxu2 %vm258_vm0, %v2301_v28  ;;  %v2992_v10 = vmax.f32 %v4519_v6, 0.0 }
 0x1ad   : > { %4482 = vmatmul.msk.f32.gmra.mxu3 %vm258_vm0, %v2646_v58  ;;  %4555 = vmatmul.msk.f32.gmra.mxu0 %vm258_vm0, %v2991_v47  ;;  %v2303_v47 = vmax.f32 %v4374_v36, 0.0  ;;  %v3302_v36 = vld [vmem:[%s6071_s2 + $0x48] sm:$0xff] }
 0x1ae   : > { %3376 = vperm.xlu0 %4652, %v3302_v36  }
 0x1af   : > { %v1154_v19 = vpop.f32.mrf.mxu2 }
 0x1b0   : > { %v1212_v57 = vadd.f32 %v1154_v19, %v846_v46  ;;  %v1499_v55 = vpop.f32.mrf.mxu3  ;;  %v3298_v46 = vld [vmem:[%s6071_s2 + $0x28] sm:$0xff] }
 0x1b1   : > { %v848_v22 = vpop.f32.mrf.mxu1  ;;  %3356 = vperm.xlu2 %4654, %v3298_v46   ;;  %v4448_v19 = vld [vmem:[%s4840_s24 + $0x65] sm:$0xff] }
 0x1b2   : > { %v1557_v23 = vadd.f32 %v1499_v55, %v1212_v57  ;;  %v1847_v3 = vpop.f32.mrf.mxu0  ;;  %v849_v16 = vadd.f32 %v848_v22, %v5111_v42  ;;  %v4521_v57 = vld [vmem:[%s4840_s24 + $0x66] sm:$0xff] }
 0x1b4   : > { %v5396_v56 = vadd.f32 %v1844_v13, %v1557_v23  ;;  %4337 = vmatmul.msk.f32.gmra.mxu1 %vm258_vm0, %v2300_v29  ;;  %4410 = vmatmul.msk.f32.gmra.mxu2 %vm258_vm0, %v2302_v63  ;;  %v2648_v29 = vmax.f32 %v4447_v54, 0.0  ;;  %v2993_v13 = vmax.f32 %v4520_v7, 0.0  ;;  %v4449_v7 = vld [vmem:[%s4840_s24 + $0x6d] sm:$0xff] }
 0x1b5   : > { %4483 = vmatmul.msk.f32.gmra.mxu3 %vm258_vm0, %v2647_v20  ;;  %4556 = vmatmul.msk.f32.gmra.mxu0 %vm258_vm0, %v2992_v10  ;;  %v2304_v10 = vmax.f32 %v4375_v26, 0.0  ;;  %v3303_v26 = vld [vmem:[%s6071_s2 + $0x50] sm:$0xff] }
 0x1b6   : > { %3381 = vperm.xlu1 %4653, %v3303_v26  }
 0x1b7   : > { %v1157_v24 = vpop.f32.mrf.mxu2 }
 0x1b8   : > { %v1213_v53 = vadd.f32 %v1157_v24, %v849_v16  ;;  %v1502_v58 = vpop.f32.mrf.mxu3  ;;  %v4376_v16 = vld [vmem:[%s4840_s24 + $0x6c] sm:$0xff] }
 0x1b9   : > { %v851_v33 = vpop.f32.mrf.mxu1  ;;  %v4522_v24 = vld [vmem:[%s4840_s24 + $0x6e] sm:$0xff] }
 0x1ba   : > { %v1558_v35 = vadd.f32 %v1502_v58, %v1213_v53  ;;  %v1850_v50 = vpop.f32.mrf.mxu0  ;;  %v852_v6 = vadd.f32 %v851_v33, %v4993_v11 }
 0x1bc   : > { %v5409_v42 = vadd.f32 %v1847_v3, %v1558_v35  ;;  %4338 = vmatmul.msk.f32.gmra.mxu1 %vm258_vm0, %v2301_v28  ;;  %4411 = vmatmul.msk.f32.gmra.mxu2 %vm258_vm0, %v2303_v47  ;;  %v2649_v28 = vmax.f32 %v4448_v19, 0.0  ;;  %v2994_v3 = vmax.f32 %v4521_v57, 0.0  ;;  %v2995_v35 = vmax.f32 %v4522_v24, 0.0  ;;  %v4450_v57 = vld [vmem:[%s4840_s24 + $0x75] sm:$0xff]  ;;  %v4451_v24 = vld [vmem:[%s4840_s24 + $0x7d] sm:$0xff] }
 0x1bd   : > { %4484 = vmatmul.msk.f32.gmra.mxu3 %vm258_vm0, %v2648_v29  ;;  %4557 = vmatmul.msk.f32.gmra.mxu0 %vm258_vm0, %v2993_v13  ;;  %v2305_v29 = vmax.f32 %v4376_v16, 0.0  ;;  %v3301_v16 = vld [vmem:[%s6071_s2 + $0x40] sm:$0xff] }
 0x1be   : > { %3371 = vperm.xlu2 %4654, %v3301_v16  }
 0x1bf   : > { %v1160_v55 = vpop.f32.mrf.mxu2 }
 0x1c0   : > { %v1214_v22 = vadd.f32 %v1160_v55, %v852_v6  ;;  %v1505_v20 = vpop.f32.mrf.mxu3  ;;  %v4377_v6 = vld [vmem:[%s4840_s24 + $0x74] sm:$0xff] }
 0x1c1   : > { %v854_v23 = vpop.f32.mrf.mxu1  ;;  %v4523_v55 = vld [vmem:[%s4840_s24 + $0x76] sm:$0xff] }
 0x1c2   : > { %v1559_v60 = vadd.f32 %v1505_v20, %v1214_v22  ;;  %v1853_v25 = vpop.f32.mrf.mxu0  ;;  %v855_v54 = vadd.f32 %v854_v23, %v5008_v21 }
 0x1c4   : > { %v5422_v11 = vadd.f32 %v1850_v50, %v1559_v60  ;;  %4339 = vmatmul.msk.f32.gmra.mxu1 %vm258_vm0, %v2302_v63  ;;  %4412 = vmatmul.msk.f32.gmra.mxu2 %vm258_vm0, %v2304_v10  ;;  %v2650_v63 = vmax.f32 %v4449_v7, 0.0  ;;  %v2996_v60 = vmax.f32 %v4523_v55, 0.0  ;;  %v4452_v55 = vld [vmem:[%s4840_s24 + $0x85] sm:$0xff] }
 0x1c5   : > { %4485 = vmatmul.msk.f32.gmra.mxu3 %vm258_vm0, %v2649_v28  ;;  %4558 = vmatmul.msk.f32.gmra.mxu0 %vm258_vm0, %v2994_v3  ;;  %v2306_v28 = vmax.f32 %v4377_v6, 0.0  ;;  %v3305_v6 = vld [vmem:[%s6071_s2 + $0x60] sm:$0xff] }
 0x1c6   : > { %3391 = vperm.xlu0 %4652, %v3305_v6  }
 0x1c7   : > { %v1163_v53 = vpop.f32.mrf.mxu2 }
 0x1c8   : > { %v1215_v58 = vadd.f32 %v1163_v53, %v855_v54  ;;  %v1508_v33 = vpop.f32.mrf.mxu3  ;;  %v4378_v54 = vld [vmem:[%s4840_s24 + $0x7c] sm:$0xff] }
 0x1c9   : > { %v857_v13 = vpop.f32.mrf.mxu1  ;;  %v4524_v53 = vld [vmem:[%s4840_s24 + $0x7e] sm:$0xff] }
 0x1ca   : > { %v1560_v50 = vadd.f32 %v1508_v33, %v1215_v58  ;;  %v1856_v46 = vpop.f32.mrf.mxu0  ;;  %v858_v19 = vadd.f32 %v857_v13, %v5023_v31 }
 0x1cc   : > { %v5435_v21 = vadd.f32 %v1853_v25, %v1560_v50  ;;  %4340 = vmatmul.msk.f32.gmra.mxu1 %vm258_vm0, %v2303_v47  ;;  %4413 = vmatmul.msk.f32.gmra.mxu2 %vm258_vm0, %v2305_v29  ;;  %v2651_v47 = vmax.f32 %v4450_v57, 0.0  ;;  %v2997_v50 = vmax.f32 %v4524_v53, 0.0  ;;  %v4453_v53 = vld [vmem:[%s4840_s24 + $0x8d] sm:$0xff] }
 0x1cd   : > { %4486 = vmatmul.msk.f32.gmra.mxu3 %vm258_vm0, %v2650_v63  ;;  %4559 = vmatmul.msk.f32.gmra.mxu0 %vm258_vm0, %v2995_v35  ;;  %v2307_v63 = vmax.f32 %v4378_v54, 0.0  ;;  %v3306_v54 = vld [vmem:[%s6071_s2 + $0x68] sm:$0xff] }
 0x1ce   : > { %3396 = vperm.xlu1 %4653, %v3306_v54  }
 0x1cf   : > { %v1166_v22 = vpop.f32.mrf.mxu2 }
 0x1d0   : > { %v1216_v20 = vadd.f32 %v1166_v22, %v858_v19  ;;  %v1511_v23 = vpop.f32.mrf.mxu3  ;;  %v4379_v19 = vld [vmem:[%s4840_s24 + $0x84] sm:$0xff] }
 0x1d1   : > { %v860_v3 = vpop.f32.mrf.mxu1  ;;  %v4525_v22 = vld [vmem:[%s4840_s24 + $0x86] sm:$0xff] }
 0x1d2   : > { %v1561_v25 = vadd.f32 %v1511_v23, %v1216_v20  ;;  %v1859_v36 = vpop.f32.mrf.mxu0  ;;  %v861_v7 = vadd.f32 %v860_v3, %v5038_v41 }
 0x1d4   : > { %v5448_v31 = vadd.f32 %v1856_v46, %v1561_v25  ;;  %4341 = vmatmul.msk.f32.gmra.mxu1 %vm258_vm0, %v2304_v10  ;;  %4414 = vmatmul.msk.f32.gmra.mxu2 %vm258_vm0, %v2306_v28  ;;  %v2652_v10 = vmax.f32 %v4451_v24, 0.0  ;;  %v2998_v25 = vmax.f32 %v4525_v22, 0.0  ;;  %v4454_v22 = vld [vmem:[%s4840_s24 + $0x95] sm:$0xff] }
 0x1d5   : > { %4487 = vmatmul.msk.f32.gmra.mxu3 %vm258_vm0, %v2651_v47  ;;  %4560 = vmatmul.msk.f32.gmra.mxu0 %vm258_vm0, %v2996_v60  ;;  %v2308_v47 = vmax.f32 %v4379_v19, 0.0  ;;  %v3304_v19 = vld [vmem:[%s6071_s2 + $0x58] sm:$0xff] }
 0x1d6   : > { %3386 = vperm.xlu2 %4654, %v3304_v19  }
 0x1d7   : > { %v1169_v58 = vpop.f32.mrf.mxu2 }
 0x1d8   : > { %v1217_v33 = vadd.f32 %v1169_v58, %v861_v7  ;;  %v1514_v13 = vpop.f32.mrf.mxu3  ;;  %v4380_v7 = vld [vmem:[%s4840_s24 + $0x8c] sm:$0xff] }
 0x1d9   : > { %v863_v35 = vpop.f32.mrf.mxu1  ;;  %v4526_v58 = vld [vmem:[%s4840_s24 + $0x8e] sm:$0xff] }
 0x1da   : > { %v1562_v46 = vadd.f32 %v1514_v13, %v1217_v33  ;;  %v1862_v26 = vpop.f32.mrf.mxu0  ;;  %v864_v57 = vadd.f32 %v863_v35, %v5053_v51 }
 0x1dc   : > { %v5461_v41 = vadd.f32 %v1859_v36, %v1562_v46  ;;  %4342 = vmatmul.msk.f32.gmra.mxu1 %vm258_vm0, %v2305_v29  ;;  %4415 = vmatmul.msk.f32.gmra.mxu2 %vm258_vm0, %v2307_v63  ;;  %v2653_v29 = vmax.f32 %v4452_v55, 0.0  ;;  %v2999_v46 = vmax.f32 %v4526_v58, 0.0  ;;  %v4455_v58 = vld [vmem:[%s4840_s24 + $0x9d] sm:$0xff] }
 0x1dd   : > { %4488 = vmatmul.msk.f32.gmra.mxu3 %vm258_vm0, %v2652_v10  ;;  %4561 = vmatmul.msk.f32.gmra.mxu0 %vm258_vm0, %v2997_v50  ;;  %v2309_v10 = vmax.f32 %v4380_v7, 0.0  ;;  %v3308_v7 = vld [vmem:[%s6071_s2 + $0x78] sm:$0xff] }
 0x1de   : > { %3406 = vperm.xlu0 %4652, %v3308_v7  }
 0x1df   : > { %v1172_v20 = vpop.f32.mrf.mxu2 }
 0x1e0   : > { %v1218_v23 = vadd.f32 %v1172_v20, %v864_v57  ;;  %v1517_v3 = vpop.f32.mrf.mxu3  ;;  %v4381_v57 = vld [vmem:[%s4840_s24 + $0x94] sm:$0xff] }
 0x1e1   : > { %v866_v60 = vpop.f32.mrf.mxu1  ;;  %v4527_v20 = vld [vmem:[%s4840_s24 + $0x96] sm:$0xff] }
 0x1e2   : > { %v1563_v36 = vadd.f32 %v1517_v3, %v1218_v23  ;;  %v1865_v16 = vpop.f32.mrf.mxu0  ;;  %v867_v24 = vadd.f32 %v866_v60, %v5068_v61 }
 0x1e4   : > { %v5474_v51 = vadd.f32 %v1862_v26, %v1563_v36  ;;  %4343 = vmatmul.msk.f32.gmra.mxu1 %vm258_vm0, %v2306_v28  ;;  %4416 = vmatmul.msk.f32.gmra.mxu2 %vm258_vm0, %v2308_v47  ;;  %v2654_v28 = vmax.f32 %v4453_v53, 0.0  ;;  %v3000_v36 = vmax.f32 %v4527_v20, 0.0  ;;  %v4456_v20 = vld [vmem:[%s4840_s24 + $0xa5] sm:$0xff] }
 0x1e5   : > { %4489 = vmatmul.msk.f32.gmra.mxu3 %vm258_vm0, %v2653_v29  ;;  %4562 = vmatmul.msk.f32.gmra.mxu0 %vm258_vm0, %v2998_v25  ;;  %v2310_v29 = vmax.f32 %v4381_v57, 0.0  ;;  %v3309_v57 = vld [vmem:[%s6071_s2 + $0x80] sm:$0xff] }
 0x1e6   : > { %3411 = vperm.xlu1 %4653, %v3309_v57  }
 0x1e7   : > { %v1175_v33 = vpop.f32.mrf.mxu2 }
 0x1e8   : > { %v1219_v13 = vadd.f32 %v1175_v33, %v867_v24  ;;  %v1520_v35 = vpop.f32.mrf.mxu3  ;;  %v4382_v24 = vld [vmem:[%s4840_s24 + $0x9c] sm:$0xff] }
 0x1e9   : > { %v869_v50 = vpop.f32.mrf.mxu1  ;;  %v4528_v33 = vld [vmem:[%s4840_s24 + $0x9e] sm:$0xff] }
 0x1ea   : > { %v1564_v26 = vadd.f32 %v1520_v35, %v1219_v13  ;;  %v1868_v6 = vpop.f32.mrf.mxu0  ;;  %v870_v55 = vadd.f32 %v869_v50, %v5083_v9 }
 0x1ec   : > { %v5487_v61 = vadd.f32 %v1865_v16, %v1564_v26  ;;  %4344 = vmatmul.msk.f32.gmra.mxu1 %vm258_vm0, %v2307_v63  ;;  %4417 = vmatmul.msk.f32.gmra.mxu2 %vm258_vm0, %v2309_v10  ;;  %v2655_v63 = vmax.f32 %v4454_v22, 0.0  ;;  %v3001_v26 = vmax.f32 %v4528_v33, 0.0  ;;  %v4457_v33 = vld [vmem:[%s4840_s24 + $0xad] sm:$0xff] }
 0x1ed   : > { %4490 = vmatmul.msk.f32.gmra.mxu3 %vm258_vm0, %v2654_v28  ;;  %4563 = vmatmul.msk.f32.gmra.mxu0 %vm258_vm0, %v2999_v46  ;;  %v2311_v28 = vmax.f32 %v4382_v24, 0.0  ;;  %v3307_v24 = vld [vmem:[%s6071_s2 + $0x70] sm:$0xff] }
 0x1ee   : > { %3401 = vperm.xlu2 %4654, %v3307_v24  }
 0x1ef   : > { %v1178_v23 = vpop.f32.mrf.mxu2 }
 0x1f0   : > { %v1220_v3 = vadd.f32 %v1178_v23, %v870_v55  ;;  %v1523_v60 = vpop.f32.mrf.mxu3  ;;  %v5519_v55 = vld [vmem:[%s4840_s24 + $0xa4] sm:$0xff] }
 0x1f1   : > { %v872_v25 = vpop.f32.mrf.mxu1  ;;  %v4529_v23 = vld [vmem:[%s4840_s24 + $0xa6] sm:$0xff] }
 0x1f2   : > { %v1565_v16 = vadd.f32 %v1523_v60, %v1220_v3  ;;  %v1871_v54 = vpop.f32.mrf.mxu0  ;;  %v873_v53 = vadd.f32 %v872_v25, %v5098_v27 }
 0x1f4   : > { %v5500_v9 = vadd.f32 %v1868_v6, %v1565_v16  ;;  %4345 = vmatmul.msk.f32.gmra.mxu1 %vm258_vm0, %v2308_v47  ;;  %4418 = vmatmul.msk.f32.gmra.mxu2 %vm258_vm0, %v2310_v29  ;;  %v2656_v47 = vmax.f32 %v4455_v58, 0.0  ;;  %v3002_v16 = vmax.f32 %v4529_v23, 0.0 }
 0x1f5   : > { %4491 = vmatmul.msk.f32.gmra.mxu3 %vm258_vm0, %v2655_v63  ;;  %4564 = vmatmul.msk.f32.gmra.mxu0 %vm258_vm0, %v3000_v36  ;;  %v2312_v63 = vmax.f32 %v5519_v55, 0.0  ;;  %v2657_v36 = vmax.f32 %v4456_v20, 0.0  ;;  %v5557_v20 = vld [vmem:[%s4840_s24 + $0xb4] sm:$0xff] }
 0x1f7   : > { %v1181_v13 = vpop.f32.mrf.mxu2 }
 0x1f8   : > { %v1221_v35 = vadd.f32 %v1181_v13, %v873_v53  ;;  %v1526_v50 = vpop.f32.mrf.mxu3  ;;  %v5535_v53 = vld [vmem:[%s4840_s24 + $0xac] sm:$0xff] }
 0x1f9   : > { %v875_v46 = vpop.f32.mrf.mxu1  ;;  %v4530_v13 = vld [vmem:[%s4840_s24 + $0xae] sm:$0xff] }
 0x1fa   : > { %v1566_v6 = vadd.f32 %v1526_v50, %v1221_v35  ;;  %v1874_v19 = vpop.f32.mrf.mxu0  ;;  %v876_v22 = vadd.f32 %v875_v46, %v5113_v44 }
 0x1fc   : > { %v5513_v27 = vadd.f32 %v1871_v54, %v1566_v6  ;;  %4346 = vmatmul.msk.f32.gmra.mxu1 %vm258_vm0, %v2309_v10  ;;  %4419 = vmatmul.msk.f32.gmra.mxu2 %vm258_vm0, %v2311_v28  ;;  %v2658_v6 = vmax.f32 %v4457_v33, 0.0 }
 0x1fd   : > { %4492 = vmatmul.msk.f32.gmra.mxu3 %vm258_vm0, %v2656_v47  ;;  %4565 = vmatmul.msk.f32.gmra.mxu0 %vm258_vm0, %v3001_v26  ;;  %v2313_v47 = vmax.f32 %v5535_v53, 0.0  ;;  %v3317_v53 = vld [vmem:[%s6071_s2 + $0xc0] sm:$0xff] }
 0x1ff   : > { %v1184_v3 = vpop.f32.mrf.mxu2 }
 0x200   : > { %v1222_v60 = vadd.f32 %v1184_v3, %v876_v22  ;;  %v1529_v25 = vpop.f32.mrf.mxu3 }
 0x201   : > { %v2114_v10 = vpop.f32.mrf.mxu1 }
 0x202   : > { %v1567_v54 = vadd.f32 %v1529_v25, %v1222_v60  ;;  %v3149_v7 = vpop.f32.mrf.mxu0  ;;  %v2222_v58 = vadd.f32 %v2114_v10, %v5123_v17  ;;  %v3311_v17 = vld [vmem:[%s6071_s2 + $0x90] sm:$0xff] }
 0x203   : > { %3421 = vperm.xlu0 %4652, %v3311_v17   ;;  %v4531_v60 = vld [vmem:[%s4840_s24 + $0xb6] sm:$0xff] }
 0x204   : > { %v5529_v44 = vadd.f32 %v1874_v19, %v1567_v54  ;;  %4347 = vmatmul.msk.f32.gmra.mxu1 %vm258_vm0, %v2310_v29  ;;  %4420 = vmatmul.msk.f32.gmra.mxu2 %vm258_vm0, %v2312_v63  ;;  %v3332_v29 = vpop.permute.xlu0 %3331  ;;  %v3003_v19 = vmax.f32 %v4530_v13, 0.0  ;;  %v3312_v54 = vld [vmem:[%s6071_s2 + $0x98] sm:$0xff] }
 0x205   : > { %4493 = vmatmul.msk.f32.gmra.mxu3 %vm258_vm0, %v2657_v36  ;;  %4566 = vmatmul.msk.f32.gmra.mxu0 %vm258_vm0, %v3002_v16  ;;  %v2314_v16 = vmax.f32 %v5557_v20, 0.0  ;;  %v3320_v20 = vld [vmem:[%s6071_s2 + $0xd8] sm:$0xff] }
 0x206   : > { %3426 = vperm.xlu1 %4653, %v3312_v54  }
 0x207   : > { %v2459_v35 = vpop.f32.mrf.mxu2 }
 0x208   : > { %v2567_v50 = vadd.f32 %v2459_v35, %v2222_v58  ;;  %v2804_v46 = vpop.f32.mrf.mxu3 }
 0x209   : > { %v2117_v26 = vpop.f32.mrf.mxu1 }
 0x20a   : > { %v2912_v57 = vadd.f32 %v2804_v46, %v2567_v50  ;;  %v3152_v55 = vpop.f32.mrf.mxu0  ;;  %v2223_v23 = vadd.f32 %v2117_v26, %v5133_v52  ;;  %v3004_v52 = vmax.f32 %v4531_v60, 0.0  ;;  %v5574_v50 = vld [vmem:[%s4840_s24 + $0xbc] sm:$0xff]  ;;  %v3315_v60 = vld [vmem:[%s6071_s2 + $0xb0] sm:$0xff] }
 0x20c   : > { %v3257_v22 = vadd.f32 %v3149_v7, %v2912_v57  ;;  %4348 = vmatmul.msk.f32.gmra.mxu1 %vm258_vm0, %v2311_v28  ;;  %4421 = vmatmul.msk.f32.gmra.mxu2 %vm258_vm0, %v2313_v47  ;;  %v4458_v28 = vld [vmem:[%s4840_s24 + $0xb5] sm:$0xff]  ;;  %v3337_v13 = vpop.permute.xlu0 %3336 }
 0x20d   : > { %4494 = vmatmul.msk.f32.gmra.mxu3 %vm258_vm0, %v2658_v6  ;;  %4567 = vmatmul.msk.f32.gmra.mxu0 %vm258_vm0, %v3003_v19  ;;  %v2659_v24 = vmax.f32 %v4458_v28, 0.0  ;;  %v4459_v6 = vld [vmem:[%s4840_s24 + $0xbd] sm:$0xff] }
 0x20e   : > { %v3509_v3 = vmul.f32 %v3332_v29, %v3257_v22  ;;  %v4532_v19 = vld [vmem:[%s4840_s24 + $0xbe] sm:$0xff]  ;;  %v2660_v54 = vmax.f32 %v4459_v6, 0.0  ;;  %3441 = vperm.xlu1 %4653, %v3315_v60  }
 0x20f   : > { %v2462_v25 = vpop.f32.mrf.mxu2 }
 0x210   : > { %3545 = vst.msk [vmem:[%s5553_s6] sm:$0xff] %vm258_vm0, %v3509_v3  ;;  %v2568_v10 = vadd.f32 %v2462_v25, %v2223_v23  ;;  %v2807_v36 = vpop.f32.mrf.mxu3  ;;  %v3663_v46 = vmul.f32 %v3509_v3, %v3509_v3  ;;  %v3582_v17 = vsel %vm258_vm0, %v3509_v3, 0.0 }
 0x211   : > { %v2120_v7 = vpop.f32.mrf.mxu1 }
 0x212   : > { %v2913_v58 = vadd.f32 %v2807_v36, %v2568_v10  ;;  %v3155_v33 = vpop.f32.mrf.mxu0  ;;  %v2224_v26 = vadd.f32 %v2120_v7, %v5143_v15  ;;  %v3342_v36 = vpop.permute.xlu1 %3341  ;;  %v3005_v7 = vmax.f32 %v4532_v19, 0.0  ;;  %v3699_v3 = vsel %vm258_vm0, %v3663_v46, 0.0  ;;  %v5605_v46 = vld [vmem:[%s4840_s24 + $0xc4] sm:$0xff] }
 0x213   : > { %v4460_v19 = vld [vmem:[%s4840_s24 + $0xc5] sm:$0xff] }
 0x214   : > { %v3258_v35 = vadd.f32 %v3152_v55, %v2913_v58  ;;  %4349 = vmatmul.msk.f32.gmra.mxu1 %vm258_vm0, %v2312_v63  ;;  %4422 = vmatmul.msk.f32.gmra.mxu2 %vm258_vm0, %v2314_v16  ;;  %v3314_v63 = vld [vmem:[%s6071_s2 + $0xa8] sm:$0xff]  ;;  %v2315_v55 = vmax.f32 %v5574_v50, 0.0  ;;  %v2661_v60 = vmax.f32 %v4460_v19, 0.0  ;;  %v3323_v50 = vld [vmem:[%s6071_s2 + $0xf0] sm:$0xff] }
 0x215   : > { %4495 = vmatmul.msk.f32.gmra.mxu3 %vm258_vm0, %v2659_v24  ;;  %4568 = vmatmul.msk.f32.gmra.mxu0 %vm258_vm0, %v3004_v52 }
 0x216   : > { %v3510_v29 = vmul.f32 %v3337_v13, %v3258_v35  ;;  %3436 = vperm.xlu0 %4652, %v3314_v63   ;;  %v3310_v13 = vld [vmem:[%s6071_s2 + $0x88] sm:$0xff] }
 0x217   : > { %v2465_v57 = vpop.f32.mrf.mxu2  ;;  %3416 = vperm.xlu2 %4654, %v3310_v13   ;;  %v4533_v63 = vld [vmem:[%s4840_s24 + $0xc6] sm:$0xff] }
 0x218   : > { %3546 = vst.msk [vmem:[%s5553_s6 + $0x8] sm:$0xff] %vm258_vm0, %v3510_v29  ;;  %v3583_v22 = vsel %vm258_vm0, %v3510_v29, 0.0  ;;  %v3664_v23 = vmul.f32 %v3510_v29, %v3510_v29  ;;  %v2569_v28 = vadd.f32 %v2465_v57, %v2224_v26  ;;  %v2810_v15 = vpop.f32.mrf.mxu3 }
 0x219   : > { %v3584_v25 = vadd.f32 %v3583_v22, %v3582_v17  ;;  %v2123_v10 = vpop.f32.mrf.mxu1 }
 0x21a   : > { %v3700_v24 = vsel %vm258_vm0, %v3664_v23, 0.0  ;;  %v2914_v52 = vadd.f32 %v2810_v15, %v2569_v28  ;;  %v3158_v58 = vpop.f32.mrf.mxu0  ;;  %v2225_v29 = vadd.f32 %v2123_v10, %v5153_v49  ;;  %v2316_v23 = vmax.f32 %v5605_v46, 0.0  ;;  %v3318_v49 = vld [vmem:[%s6071_s2 + $0xc8] sm:$0xff] }
 0x21b   : > { %v3701_v35 = vadd.f32 %v3700_v24, %v3699_v3  ;;  %v3006_v10 = vmax.f32 %v4533_v63, 0.0  ;;  %3456 = vperm.xlu1 %4653, %v3318_v49   ;;  %v3347_v24 = vpop.permute.xlu1 %3346  ;;  %v3326_v46 = vld [vmem:[%s6071_s2 + $0x108] sm:$0xff] }
 0x21c   : > { %v3259_v26 = vadd.f32 %v3155_v33, %v2914_v52  ;;  %4350 = vmatmul.msk.f32.gmra.mxu1 %vm258_vm0, %v2313_v47  ;;  %4423 = vmatmul.msk.f32.gmra.mxu2 %vm258_vm0, %v2315_v55 }
 0x21d   : > { %4496 = vmatmul.msk.f32.gmra.mxu3 %vm258_vm0, %v2660_v54  ;;  %4569 = vmatmul.msk.f32.gmra.mxu0 %vm258_vm0, %v3005_v7 }
 0x21e   : > { %v3511_v6 = vmul.f32 %v3342_v36, %v3259_v26  ;;  %3451 = vperm.xlu0 %4652, %v3317_v53  }
 0x21f   : > { %v2468_v47 = vpop.f32.mrf.mxu2 }
 0x220   : > { %3547 = vst.msk [vmem:[%s5553_s6 + $0x10] sm:$0xff] %vm258_vm0, %v3511_v6  ;;  %v3585_v33 = vsel %vm258_vm0, %v3511_v6, 0.0  ;;  %v3665_v57 = vmul.f32 %v3511_v6, %v3511_v6  ;;  %v2570_v17 = vadd.f32 %v2468_v47, %v2225_v29  ;;  %v2813_v22 = vpop.f32.mrf.mxu3  ;;  %v4534_v29 = vld [vmem:[%s4840_s24 + $0xce] sm:$0xff] }
 0x221   : > { %v3586_v28 = vadd.f32 %v3585_v33, %v3584_v25  ;;  %v2126_v15 = vpop.f32.mrf.mxu1  ;;  %v5630_v25 = vld [vmem:[%s4840_s24 + $0xcc] sm:$0xff] }
 0x222   : > { %v3702_v36 = vsel %vm258_vm0, %v3665_v57, 0.0  ;;  %v2915_v54 = vadd.f32 %v2813_v22, %v2570_v17  ;;  %v3161_v7 = vpop.f32.mrf.mxu0  ;;  %v2226_v13 = vadd.f32 %v2126_v15, %v5163_v12  ;;  %v2317_v53 = vmax.f32 %v5630_v25, 0.0  ;;  %v3321_v12 = vld [vmem:[%s6071_s2 + $0xe0] sm:$0xff]  ;;  %v3352_v57 = vpop.permute.xlu2 %3351 }
 0x223   : > { %v3703_v3 = vadd.f32 %v3702_v36, %v3701_v35  ;;  %v4461_v35 = vld [vmem:[%s4840_s24 + $0xcd] sm:$0xff]  ;;  %v3007_v22 = vmax.f32 %v4534_v29, 0.0  ;;  %3471 = vperm.xlu1 %4653, %v3321_v12  }
 0x224   : > { %v3260_v52 = vadd.f32 %v3158_v58, %v2915_v54  ;;  %4351 = vmatmul.msk.f32.gmra.mxu1 %vm258_vm0, %v2314_v16  ;;  %4424 = vmatmul.msk.f32.gmra.mxu2 %vm258_vm0, %v2316_v23  ;;  %v2662_v17 = vmax.f32 %v4461_v35, 0.0  ;;  %v5658_v54 = vld [vmem:[%s4840_s24 + $0xd4] sm:$0xff] }
 0x225   : > { %4497 = vmatmul.msk.f32.gmra.mxu3 %vm258_vm0, %v2661_v60  ;;  %4570 = vmatmul.msk.f32.gmra.mxu0 %vm258_vm0, %v3006_v10  ;;  %v3313_v10 = vld [vmem:[%s6071_s2 + $0xa0] sm:$0xff] }
 0x226   : > { %v3512_v26 = vmul.f32 %v3347_v24, %v3260_v52  ;;  %3466 = vperm.xlu0 %4652, %v3320_v20   ;;  %3431 = vperm.xlu2 %4654, %v3313_v10   ;;  %v2318_v20 = vmax.f32 %v5658_v54, 0.0 }
 0x227   : > { %v2471_v16 = vpop.f32.mrf.mxu2 }
 0x228   : > { %3548 = vst.msk [vmem:[%s5553_s6 + $0x18] sm:$0xff] %vm258_vm0, %v3512_v26  ;;  %v3587_v58 = vsel %vm258_vm0, %v3512_v26, 0.0  ;;  %v3666_v6 = vmul.f32 %v3512_v26, %v3512_v26  ;;  %v2571_v19 = vadd.f32 %v2471_v16, %v2226_v13  ;;  %v2816_v63 = vpop.f32.mrf.mxu3  ;;  %v4535_v13 = vld [vmem:[%s4840_s24 + $0xd6] sm:$0xff] }
 0x229   : > { %v3588_v47 = vadd.f32 %v3587_v58, %v3586_v28  ;;  %v2129_v33 = vpop.f32.mrf.mxu1 }
 0x22a   : > { %v3704_v49 = vsel %vm258_vm0, %v3666_v6, 0.0  ;;  %v2916_v15 = vadd.f32 %v2816_v63, %v2571_v19  ;;  %v3164_v60 = vpop.f32.mrf.mxu0  ;;  %v2227_v24 = vadd.f32 %v2129_v33, %v5173_v32  ;;  %v3324_v32 = vld [vmem:[%s6071_s2 + $0xf8] sm:$0xff]  ;;  %v3008_v19 = vmax.f32 %v4535_v13, 0.0 }
 0x22b   : > { %v3705_v36 = vadd.f32 %v3704_v49, %v3703_v3  ;;  %v4462_v3 = vld [vmem:[%s4840_s24 + $0xd5] sm:$0xff]  ;;  %3486 = vperm.xlu1 %4653, %v3324_v32  }
 0x22c   : > { %v3261_v28 = vadd.f32 %v3161_v7, %v2916_v15  ;;  %4352 = vmatmul.msk.f32.gmra.mxu1 %vm258_vm0, %v2315_v55  ;;  %4425 = vmatmul.msk.f32.gmra.mxu2 %vm258_vm0, %v2317_v53  ;;  %v2663_v6 = vmax.f32 %v4462_v3, 0.0  ;;  %v5686_v49 = vld [vmem:[%s4840_s24 + $0xdc] sm:$0xff] }
 0x22d   : > { %4498 = vmatmul.msk.f32.gmra.mxu3 %vm258_vm0, %v2662_v17  ;;  %4571 = vmatmul.msk.f32.gmra.mxu0 %vm258_vm0, %v3007_v22  ;;  %v3357_v22 = vpop.permute.xlu2 %3356  ;;  %v2319_v13 = vmax.f32 %v5686_v49, 0.0 }
 0x22e   : > { %v3513_v52 = vmul.f32 %v3352_v57, %v3261_v28  ;;  %3481 = vperm.xlu0 %4652, %v3323_v50   ;;  %v3316_v57 = vld [vmem:[%s6071_s2 + $0xb8] sm:$0xff] }
 0x22f   : > { %v2474_v55 = vpop.f32.mrf.mxu2  ;;  %3446 = vperm.xlu2 %4654, %v3316_v57   ;;  %v4536_v28 = vld [vmem:[%s4840_s24 + $0xde] sm:$0xff] }
 0x230   : > { %3549 = vst.msk [vmem:[%s5553_s6 + $0x20] sm:$0xff] %vm258_vm0, %v3513_v52  ;;  %v3589_v7 = vsel %vm258_vm0, %v3513_v52, 0.0  ;;  %v3667_v26 = vmul.f32 %v3513_v52, %v3513_v52  ;;  %v2572_v35 = vadd.f32 %v2474_v55, %v2227_v24  ;;  %v2819_v29 = vpop.f32.mrf.mxu3 }
 0x231   : > { %v3590_v16 = vadd.f32 %v3589_v7, %v3588_v47  ;;  %v2132_v58 = vpop.f32.mrf.mxu1 }
 0x232   : > { %v3706_v63 = vsel %vm258_vm0, %v3667_v26, 0.0  ;;  %v2917_v12 = vadd.f32 %v2819_v29, %v2572_v35  ;;  %v3167_v33 = vpop.f32.mrf.mxu0  ;;  %v2228_v15 = vadd.f32 %v2132_v58, %v5183_v48  ;;  %v3327_v48 = vld [vmem:[%s6071_s2 + $0x110] sm:$0xff]  ;;  %v3009_v26 = vmax.f32 %v4536_v28, 0.0 }
 0x233   : > { %v3707_v17 = vadd.f32 %v3706_v63, %v3705_v36  ;;  %v4463_v36 = vld [vmem:[%s4840_s24 + $0xdd] sm:$0xff]  ;;  %3501 = vperm.xlu1 %4653, %v3327_v48   ;;  %v3319_v58 = vld [vmem:[%s6071_s2 + $0xd0] sm:$0xff]  ;;  %v3367_v48 = vpop.permute.xlu1 %3366 }
 0x234   : > { %v3262_v47 = vadd.f32 %v3164_v60, %v2917_v12  ;;  %4353 = vmatmul.msk.f32.gmra.mxu1 %vm258_vm0, %v2316_v23  ;;  %4426 = vmatmul.msk.f32.gmra.mxu2 %vm258_vm0, %v2318_v20  ;;  %v2664_v7 = vmax.f32 %v4463_v36, 0.0  ;;  %v5714_v63 = vld [vmem:[%s4840_s24 + $0xe4] sm:$0xff] }
 0x235   : > { %4499 = vmatmul.msk.f32.gmra.mxu3 %vm258_vm0, %v2663_v6  ;;  %4572 = vmatmul.msk.f32.gmra.mxu0 %vm258_vm0, %v3008_v19  ;;  %v3362_v19 = vpop.permute.xlu0 %3361 }
 0x236   : > { %v3514_v10 = vmul.f32 %v3357_v22, %v3262_v47  ;;  %3496 = vperm.xlu0 %4652, %v3326_v46   ;;  %v4537_v22 = vld [vmem:[%s4840_s24 + $0xe6] sm:$0xff] }
 0x237   : > { %v2477_v23 = vpop.f32.mrf.mxu2  ;;  %3461 = vperm.xlu2 %4654, %v3319_v58  }
 0x238   : > { %3550 = vst.msk [vmem:[%s5553_s6 + $0x28] sm:$0xff] %vm258_vm0, %v3514_v10  ;;  %v3591_v60 = vsel %vm258_vm0, %v3514_v10, 0.0  ;;  %v3668_v24 = vmul.f32 %v3514_v10, %v3514_v10  ;;  %v2573_v52 = vadd.f32 %v2477_v23, %v2228_v15  ;;  %v2822_v3 = vpop.f32.mrf.mxu3  ;;  %v2320_v10 = vmax.f32 %v5714_v63, 0.0 }
 0x239   : > { %v3592_v50 = vadd.f32 %v3591_v60, %v3590_v16  ;;  %v2135_v55 = vpop.f32.mrf.mxu1  ;;  %v3010_v23 = vmax.f32 %v4537_v22, 0.0 }
 0x23a   : > { %v3708_v35 = vsel %vm258_vm0, %v3668_v24, 0.0  ;;  %v2918_v29 = vadd.f32 %v2822_v3, %v2573_v52  ;;  %v3170_v32 = vpop.f32.mrf.mxu0  ;;  %v2229_v12 = vadd.f32 %v2135_v55, %v5193_v5  ;;  %v3322_v52 = vld [vmem:[%s6071_s2 + $0xe8] sm:$0xff] }
 0x23b   : > { %v3709_v6 = vadd.f32 %v3708_v35, %v3707_v17  ;;  %v4464_v17 = vld [vmem:[%s4840_s24 + $0xe5] sm:$0xff]  ;;  %v4465_v35 = vld [vmem:[%s4840_s24 + $0xed] sm:$0xff] }
 0x23c   : > { %v3263_v16 = vadd.f32 %v3167_v33, %v2918_v29  ;;  %4354 = vmatmul.msk.f32.gmra.mxu1 %vm258_vm0, %v2317_v53  ;;  %4427 = vmatmul.msk.f32.gmra.mxu2 %vm258_vm0, %v2319_v13  ;;  %v2665_v46 = vmax.f32 %v4464_v17, 0.0  ;;  %v4538_v29 = vld [vmem:[%s4840_s24 + $0xee] sm:$0xff] }
 0x23d   : > { %4500 = vmatmul.msk.f32.gmra.mxu3 %vm258_vm0, %v2664_v7  ;;  %4573 = vmatmul.msk.f32.gmra.mxu0 %vm258_vm0, %v3009_v26  ;;  %v3011_v17 = vmax.f32 %v4538_v29, 0.0 }
 0x23e   : > { %v3515_v57 = vmul.f32 %v3362_v19, %v3263_v16 }
 0x23f   : > { %v2480_v33 = vpop.f32.mrf.mxu2  ;;  %3476 = vperm.xlu2 %4654, %v3322_v52  }
 0x240   : > { %3551 = vst.msk [vmem:[%s5553_s6 + $0x30] sm:$0xff] %vm258_vm0, %v3515_v57  ;;  %v3593_v25 = vsel %vm258_vm0, %v3515_v57, 0.0  ;;  %v3669_v53 = vmul.f32 %v3515_v57, %v3515_v57  ;;  %v2574_v47 = vadd.f32 %v2480_v33, %v2229_v12  ;;  %v2825_v15 = vpop.f32.mrf.mxu3  ;;  %v2666_v57 = vmax.f32 %v4465_v35, 0.0 }
 0x241   : > { %v3594_v36 = vadd.f32 %v3593_v25, %v3592_v50  ;;  %v2138_v28 = vpop.f32.mrf.mxu1  ;;  %v5736_v50 = vld [vmem:[%s4840_s24 + $0xec] sm:$0xff]  ;;  %v3325_v25 = vld [vmem:[%s6071_s2 + $0x100] sm:$0xff] }
 0x242   : > { %v3710_v5 = vsel %vm258_vm0, %v3669_v53, 0.0  ;;  %v2919_v60 = vadd.f32 %v2825_v15, %v2574_v47  ;;  %v3173_v24 = vpop.f32.mrf.mxu0  ;;  %v2230_v7 = vadd.f32 %v2138_v28, %v5203_v45  ;;  %v2321_v19 = vmax.f32 %v5736_v50, 0.0  ;;  %v3372_v47 = vpop.permute.xlu2 %3371 }
 0x243   : > { %v3711_v3 = vadd.f32 %v3710_v5, %v3709_v6  ;;  %v4539_v5 = vld [vmem:[%s4840_s24 + $0xf6] sm:$0xff] }
 0x244   : > { %v3264_v55 = vadd.f32 %v3170_v32, %v2919_v60  ;;  %4355 = vmatmul.msk.f32.gmra.mxu1 %vm258_vm0, %v2318_v20  ;;  %4428 = vmatmul.msk.f32.gmra.mxu2 %vm258_vm0, %v2320_v10 }
 0x245   : > { %4501 = vmatmul.msk.f32.gmra.mxu3 %vm258_vm0, %v2665_v46  ;;  %4574 = vmatmul.msk.f32.gmra.mxu0 %vm258_vm0, %v3010_v23  ;;  %v4466_v23 = vld [vmem:[%s4840_s24 + $0xf5] sm:$0xff] }
 0x246   : > { %v3516_v26 = vmul.f32 %v3367_v48, %v3264_v55 }
 0x247   : > { %v2483_v32 = vpop.f32.mrf.mxu2  ;;  %3491 = vperm.xlu2 %4654, %v3325_v25  }
 0x248   : > { %3552 = vst.msk [vmem:[%s5553_s6 + $0x38] sm:$0xff] %vm258_vm0, %v3516_v26  ;;  %v3595_v54 = vsel %vm258_vm0, %v3516_v26, 0.0  ;;  %v3670_v20 = vmul.f32 %v3516_v26, %v3516_v26  ;;  %v2575_v58 = vadd.f32 %v2483_v32, %v2230_v7  ;;  %v2828_v6 = vpop.f32.mrf.mxu3  ;;  %v2667_v7 = vmax.f32 %v4466_v23, 0.0  ;;  %v3328_v32 = vld [vmem:[%s6071_s2 + $0x118] sm:$0xff] }
 0x249   : > { %v3596_v16 = vadd.f32 %v3595_v54, %v3594_v36  ;;  %v2141_v12 = vpop.f32.mrf.mxu1  ;;  %v5758_v36 = vld [vmem:[%s4840_s24 + $0xf4] sm:$0xff]  ;;  %v3012_v26 = vmax.f32 %v4539_v5, 0.0 }
 0x24a   : > { %v3712_v45 = vsel %vm258_vm0, %v3670_v20, 0.0  ;;  %v2920_v22 = vadd.f32 %v2828_v6, %v2575_v58  ;;  %v3176_v33 = vpop.f32.mrf.mxu0  ;;  %v2231_v28 = vadd.f32 %v2141_v12, %v5213_v4  ;;  %v3377_v20 = vpop.permute.xlu0 %3376  ;;  %v5780_v6 = vld [vmem:[%s4840_s24 + $0xfc] sm:$0xff] }
 0x24b   : > { %v3713_v53 = vadd.f32 %v3712_v45, %v3711_v3  ;;  %v2322_v3 = vmax.f32 %v5758_v36, 0.0  ;;  %v2323_v25 = vmax.f32 %v5780_v6, 0.0 }
 0x24c   : > { %v3265_v15 = vadd.f32 %v3173_v24, %v2920_v22  ;;  %4356 = vmatmul.msk.f32.gmra.mxu1 %vm258_vm0, %v2319_v13  ;;  %4429 = vmatmul.msk.f32.gmra.mxu2 %vm258_vm0, %v2321_v19 }
 0x24d   : > { %4502 = vmatmul.msk.f32.gmra.mxu3 %vm258_vm0, %v2666_v57  ;;  %4575 = vmatmul.msk.f32.gmra.mxu0 %vm258_vm0, %v3011_v17  ;;  %v4467_v57 = vld [vmem:[%s4840_s24 + $0xfd] sm:$0xff] }
 0x24e   : > { %v3517_v46 = vmul.f32 %v3372_v47, %v3265_v15  ;;  %v4540_v17 = vld [vmem:[%s4840_s24 + $0xfe] sm:$0xff]  ;;  %v2668_v15 = vmax.f32 %v4467_v57, 0.0  ;;  %v3387_v57 = vpop.permute.xlu2 %3386 }
 0x24f   : > { %v2486_v60 = vpop.f32.mrf.mxu2  ;;  %3506 = vperm.xlu2 %4654, %v3328_v32  }
 0x250   : > { %3553 = vst.msk [vmem:[%s5553_s6 + $0x40] sm:$0xff] %vm258_vm0, %v3517_v46  ;;  %v3597_v49 = vsel %vm258_vm0, %v3517_v46, 0.0  ;;  %v3671_v13 = vmul.f32 %v3517_v46, %v3517_v46  ;;  %v2576_v24 = vadd.f32 %v2486_v60, %v2231_v28  ;;  %v2831_v52 = vpop.f32.mrf.mxu3  ;;  %v3382_v60 = vpop.permute.xlu1 %3381 }
 0x251   : > { %v3598_v48 = vadd.f32 %v3597_v49, %v3596_v16  ;;  %v2144_v55 = vpop.f32.mrf.mxu1 }
 0x252   : > { %v3714_v4 = vsel %vm258_vm0, %v3671_v13, 0.0  ;;  %v2921_v35 = vadd.f32 %v2831_v52, %v2576_v24  ;;  %v3179_v29 = vpop.f32.mrf.mxu0  ;;  %v2232_v16 = vadd.f32 %v2144_v55, %v5223_v39  ;;  %v3013_v39 = vmax.f32 %v4540_v17, 0.0  ;;  %v5799_v13 = vld [vmem:[%s4840_s24 + $0x104] sm:$0xff] }
 0x253   : > { %v3715_v54 = vadd.f32 %v3714_v4, %v3713_v53  ;;  %v4541_v55 = vld [vmem:[%s4840_s24 + $0x106] sm:$0xff] }
 0x254   : > { %v3266_v58 = vadd.f32 %v3176_v33, %v2921_v35  ;;  %4357 = vmatmul.msk.f32.gmra.mxu1 %vm258_vm0, %v2320_v10  ;;  %4430 = vmatmul.msk.f32.gmra.mxu2 %vm258_vm0, %v2322_v3  ;;  %v2324_v35 = vmax.f32 %v5799_v13, 0.0 }
 0x255   : > { %4503 = vmatmul.msk.f32.gmra.mxu3 %vm258_vm0, %v2667_v7  ;;  %4576 = vmatmul.msk.f32.gmra.mxu0 %vm258_vm0, %v3012_v26 }
 0x256   : > { %v3518_v12 = vmul.f32 %v3377_v20, %v3266_v58 }
 0x257   : > { %v2489_v45 = vpop.f32.mrf.mxu2 }
 0x258   : > { %3554 = vst.msk [vmem:[%s5553_s6 + $0x48] sm:$0xff] %vm258_vm0, %v3518_v12  ;;  %v3599_v63 = vsel %vm258_vm0, %v3518_v12, 0.0  ;;  %v3672_v10 = vmul.f32 %v3518_v12, %v3518_v12  ;;  %v2577_v22 = vadd.f32 %v2489_v45, %v2232_v16  ;;  %v2834_v33 = vpop.f32.mrf.mxu3  ;;  %v5818_v45 = vld [vmem:[%s4840_s24 + $0x10c] sm:$0xff] }
 0x259   : > { %v3600_v53 = vadd.f32 %v3599_v63, %v3598_v48  ;;  %v2147_v47 = vpop.f32.mrf.mxu1  ;;  %v4468_v48 = vld [vmem:[%s4840_s24 + $0x105] sm:$0xff] }
 0x25a   : > { %v3716_v28 = vsel %vm258_vm0, %v3672_v10, 0.0  ;;  %v2922_v46 = vadd.f32 %v2834_v33, %v2577_v22  ;;  %v3182_v23 = vpop.f32.mrf.mxu0  ;;  %v2233_v24 = vadd.f32 %v2147_v47, %v5233_v1  ;;  %v3014_v1 = vmax.f32 %v4541_v55, 0.0  ;;  %v4469_v22 = vld [vmem:[%s4840_s24 + $0x10d] sm:$0xff] }
 0x25b   : > { %v3717_v5 = vadd.f32 %v3716_v28, %v3715_v54  ;;  %v2669_v54 = vmax.f32 %v4468_v48, 0.0  ;;  %v4542_v33 = vld [vmem:[%s4840_s24 + $0x10e] sm:$0xff] }
 0x25c   : > { %v3267_v49 = vadd.f32 %v3179_v29, %v2922_v46  ;;  %4358 = vmatmul.msk.f32.gmra.mxu1 %vm258_vm0, %v2321_v19  ;;  %4431 = vmatmul.msk.f32.gmra.mxu2 %vm258_vm0, %v2323_v25  ;;  %v5837_v55 = vld [vmem:[%s4840_s24 + $0x114] sm:$0xff] }
 0x25d   : > { %4504 = vmatmul.msk.f32.gmra.mxu3 %vm258_vm0, %v2668_v15  ;;  %4577 = vmatmul.msk.f32.gmra.mxu0 %vm258_vm0, %v3013_v39  ;;  %v2325_v39 = vmax.f32 %v5818_v45, 0.0 }
 0x25e   : > { %v3519_v52 = vmul.f32 %v3382_v60, %v3267_v49 }
 0x25f   : > { %v2492_v7 = vpop.f32.mrf.mxu2 }
 0x260   : > { %3555 = vst.msk [vmem:[%s5553_s6 + $0x50] sm:$0xff] %vm258_vm0, %v3519_v52  ;;  %v3601_v50 = vsel %vm258_vm0, %v3519_v52, 0.0  ;;  %v3673_v19 = vmul.f32 %v3519_v52, %v3519_v52  ;;  %v2578_v26 = vadd.f32 %v2492_v7, %v2233_v24  ;;  %v2837_v4 = vpop.f32.mrf.mxu3  ;;  %v3392_v52 = vpop.permute.xlu0 %3391 }
 0x261   : > { %v3602_v29 = vadd.f32 %v3601_v50, %v3600_v53  ;;  %v2150_v32 = vpop.f32.mrf.mxu1 }
 0x262   : > { %v3718_v20 = vsel %vm258_vm0, %v3673_v19, 0.0  ;;  %v2923_v58 = vadd.f32 %v2837_v4, %v2578_v26  ;;  %v3185_v16 = vpop.f32.mrf.mxu0  ;;  %v2234_v63 = vadd.f32 %v2150_v32, %v5243_v38  ;;  %v3015_v38 = vmax.f32 %v4542_v33, 0.0  ;;  %v4470_v19 = vld [vmem:[%s4840_s24 + $0x115] sm:$0xff] }
 0x263   : > { %v3719_v12 = vadd.f32 %v3718_v20, %v3717_v5  ;;  %v4543_v26 = vld [vmem:[%s4840_s24 + $0x116] sm:$0xff] }
 0x264   : > { %v3268_v17 = vadd.f32 %v3182_v23, %v2923_v58  ;;  %4359 = vmatmul.msk.f32.gmra.mxu1 %vm258_vm0, %v2322_v3  ;;  %4432 = vmatmul.msk.f32.gmra.mxu2 %vm258_vm0, %v2324_v35  ;;  %v2670_v23 = vmax.f32 %v4469_v22, 0.0  ;;  %v2671_v58 = vmax.f32 %v4470_v19, 0.0  ;;  %v5856_v22 = vld [vmem:[%s4840_s24 + $0x11c] sm:$0xff] }
 0x265   : > { %4505 = vmatmul.msk.f32.gmra.mxu3 %vm258_vm0, %v2669_v54  ;;  %4578 = vmatmul.msk.f32.gmra.mxu0 %vm258_vm0, %v3014_v1  ;;  %v2326_v54 = vmax.f32 %v5837_v55, 0.0 }
 0x266   : > { %v3520_v10 = vmul.f32 %v3387_v57, %v3268_v17 }
 0x267   : > { %v2495_v53 = vpop.f32.mrf.mxu2 }
 0x268   : > { %3556 = vst.msk [vmem:[%s5553_s6 + $0x58] sm:$0xff] %vm258_vm0, %v3520_v10  ;;  %v3603_v36 = vsel %vm258_vm0, %v3520_v10, 0.0  ;;  %v3674_v3 = vmul.f32 %v3520_v10, %v3520_v10  ;;  %v2579_v47 = vadd.f32 %v2495_v53, %v2234_v63  ;;  %v2840_v15 = vpop.f32.mrf.mxu3  ;;  %v3397_v63 = vpop.permute.xlu1 %3396 }
 0x269   : > { %v3604_v28 = vadd.f32 %v3603_v36, %v3602_v29  ;;  %v2153_v46 = vpop.f32.mrf.mxu1  ;;  %v4471_v36 = vld [vmem:[%s4840_s24 + $0x11d] sm:$0xff] }
 0x26a   : > { %v3720_v5 = vsel %vm258_vm0, %v3674_v3, 0.0  ;;  %v2924_v60 = vadd.f32 %v2840_v15, %v2579_v47  ;;  %v3188_v49 = vpop.f32.mrf.mxu0  ;;  %v2235_v7 = vadd.f32 %v2153_v46, %v5253_v0  ;;  %v3016_v0 = vmax.f32 %v4543_v26, 0.0  ;;  %v4544_v3 = vld [vmem:[%s4840_s24 + $0x11e] sm:$0xff] }
 0x26b   : > { %v3721_v24 = vadd.f32 %v3720_v5, %v3719_v12  ;;  %v2327_v46 = vmax.f32 %v5856_v22, 0.0  ;;  %v2672_v5 = vmax.f32 %v4471_v36, 0.0 }
 0x26c   : > { %v3269_v48 = vadd.f32 %v3185_v16, %v2924_v60  ;;  %4360 = vmatmul.msk.f32.gmra.mxu1 %vm258_vm0, %v2323_v25  ;;  %4433 = vmatmul.msk.f32.gmra.mxu2 %vm258_vm0, %v2325_v39 }
 0x26d   : > { %4506 = vmatmul.msk.f32.gmra.mxu3 %vm258_vm0, %v2670_v23  ;;  %4579 = vmatmul.msk.f32.gmra.mxu0 %vm258_vm0, %v3015_v38 }
 0x26e   : > { %v3521_v50 = vmul.f32 %v3392_v52, %v3269_v48  ;;  %v3402_v48 = vpop.permute.xlu2 %3401 }
 0x26f   : > { %v2498_v4 = vpop.f32.mrf.mxu2 }
 0x270   : > { %3557 = vst.msk [vmem:[%s5553_s6 + $0x60] sm:$0xff] %vm258_vm0, %v3521_v50  ;;  %v3605_v6 = vsel %vm258_vm0, %v3521_v50, 0.0  ;;  %v3675_v25 = vmul.f32 %v3521_v50, %v3521_v50  ;;  %v2580_v29 = vadd.f32 %v2498_v4, %v2235_v7  ;;  %v2843_v32 = vpop.f32.mrf.mxu3  ;;  %v5875_v50 = vld [vmem:[%s4840_s24 + $0x124] sm:$0xff] }
 0x271   : > { %v3606_v1 = vadd.f32 %v3605_v6, %v3604_v28  ;;  %v2156_v20 = vpop.f32.mrf.mxu1  ;;  %v4472_v4 = vld [vmem:[%s4840_s24 + $0x125] sm:$0xff] }
 0x272   : > { %v3722_v16 = vsel %vm258_vm0, %v3675_v25, 0.0  ;;  %v2925_v12 = vadd.f32 %v2843_v32, %v2580_v29  ;;  %v3191_v57 = vpop.f32.mrf.mxu0  ;;  %v2236_v33 = vadd.f32 %v2156_v20, %v5263_v37  ;;  %v3017_v37 = vmax.f32 %v4544_v3, 0.0  ;;  %v4545_v6 = vld [vmem:[%s4840_s24 + $0x126] sm:$0xff] }
 0x273   : > { %v3723_v17 = vadd.f32 %v3722_v16, %v3721_v24  ;;  %v4473_v3 = vld [vmem:[%s4840_s24 + $0x12d] sm:$0xff] }
 0x274   : > { %v3270_v10 = vadd.f32 %v3188_v49, %v2925_v12  ;;  %4361 = vmatmul.msk.f32.gmra.mxu1 %vm258_vm0, %v2324_v35  ;;  %4434 = vmatmul.msk.f32.gmra.mxu2 %vm258_vm0, %v2326_v54 }
 0x275   : > { %4507 = vmatmul.msk.f32.gmra.mxu3 %vm258_vm0, %v2671_v58  ;;  %4580 = vmatmul.msk.f32.gmra.mxu0 %vm258_vm0, %v3016_v0  ;;  %v2673_v0 = vmax.f32 %v4472_v4, 0.0  ;;  %v4474_v4 = vld [vmem:[%s4840_s24 + $0x135] sm:$0xff] }
 0x276   : > { %v3522_v53 = vmul.f32 %v3397_v63, %v3270_v10  ;;  %v3407_v63 = vpop.permute.xlu0 %3406 }
 0x277   : > { %v2501_v47 = vpop.f32.mrf.mxu2 }
 0x278   : > { %3558 = vst.msk [vmem:[%s5553_s6 + $0x68] sm:$0xff] %vm258_vm0, %v3522_v53  ;;  %v3607_v13 = vsel %vm258_vm0, %v3522_v53, 0.0  ;;  %v3676_v35 = vmul.f32 %v3522_v53, %v3522_v53  ;;  %v2581_v15 = vadd.f32 %v2501_v47, %v2236_v33  ;;  %v2846_v28 = vpop.f32.mrf.mxu3  ;;  %v5894_v33 = vld [vmem:[%s4840_s24 + $0x12c] sm:$0xff] }
 0x279   : > { %v3608_v23 = vadd.f32 %v3607_v13, %v3606_v1  ;;  %v2159_v38 = vpop.f32.mrf.mxu1  ;;  %v2328_v1 = vmax.f32 %v5875_v50, 0.0  ;;  %v4546_v47 = vld [vmem:[%s4840_s24 + $0x12e] sm:$0xff] }
 0x27a   : > { %v3724_v60 = vsel %vm258_vm0, %v3676_v35, 0.0  ;;  %v2926_v49 = vadd.f32 %v2846_v28, %v2581_v15  ;;  %v3194_v24 = vpop.f32.mrf.mxu0  ;;  %v2237_v19 = vadd.f32 %v2159_v38, %v5273_v62  ;;  %v3018_v62 = vmax.f32 %v4545_v6, 0.0  ;;  %v4547_v6 = vld [vmem:[%s4840_s24 + $0x136] sm:$0xff] }
 0x27b   : > { %v3725_v52 = vadd.f32 %v3724_v60, %v3723_v17  ;;  %v2329_v28 = vmax.f32 %v5894_v33, 0.0 }
 0x27c   : > { %v3271_v7 = vadd.f32 %v3191_v57, %v2926_v49  ;;  %4362 = vmatmul.msk.f32.gmra.mxu1 %vm258_vm0, %v2325_v39  ;;  %4435 = vmatmul.msk.f32.gmra.mxu2 %vm258_vm0, %v2327_v46 }
 0x27d   : > { %4508 = vmatmul.msk.f32.gmra.mxu3 %vm258_vm0, %v2672_v5  ;;  %4581 = vmatmul.msk.f32.gmra.mxu0 %vm258_vm0, %v3017_v37  ;;  %v2674_v5 = vmax.f32 %v4473_v3, 0.0  ;;  %v4548_v3 = vld [vmem:[%s4840_s24 + $0x13e] sm:$0xff] }
 0x27e   : > { %v3523_v26 = vmul.f32 %v3402_v48, %v3271_v7  ;;  %v4401_v7 = vld [vmem:[%s4840_s24 + $0x134] sm:$0xff] }
 0x27f   : > { %v2504_v25 = vpop.f32.mrf.mxu2 }
 0x280   : > { %3559 = vst.msk [vmem:[%s5553_s6 + $0x70] sm:$0xff] %vm258_vm0, %v3523_v26  ;;  %v3609_v45 = vsel %vm258_vm0, %v3523_v26, 0.0  ;;  %v3677_v39 = vmul.f32 %v3523_v26, %v3523_v26  ;;  %v2582_v29 = vadd.f32 %v2504_v25, %v2237_v19  ;;  %v2849_v32 = vpop.f32.mrf.mxu3 }
 0x281   : > { %v3610_v20 = vadd.f32 %v3609_v45, %v3608_v23  ;;  %v2162_v58 = vpop.f32.mrf.mxu1 }
 0x282   : > { %v3726_v16 = vsel %vm258_vm0, %v3677_v39, 0.0  ;;  %v2927_v12 = vadd.f32 %v2849_v32, %v2582_v29  ;;  %v3197_v57 = vpop.f32.mrf.mxu0  ;;  %v2238_v53 = vadd.f32 %v2162_v58, %v5283_v34  ;;  %v3019_v34 = vmax.f32 %v4546_v47, 0.0 }
 0x283   : > { %v3727_v17 = vadd.f32 %v3726_v16, %v3725_v52  ;;  %v3412_v52 = vpop.permute.xlu1 %3411  ;;  %v2330_v29 = vmax.f32 %v4401_v7, 0.0  ;;  %v2675_v58 = vmax.f32 %v4474_v4, 0.0 }
 0x284   : > { %v3272_v10 = vadd.f32 %v3194_v24, %v2927_v12  ;;  %4363 = vmatmul.msk.f32.gmra.mxu1 %vm258_vm0, %v2326_v54  ;;  %4436 = vmatmul.msk.f32.gmra.mxu2 %vm258_vm0, %v2328_v1 }
 0x285   : > { %4509 = vmatmul.msk.f32.gmra.mxu3 %vm258_vm0, %v2673_v0  ;;  %4582 = vmatmul.msk.f32.gmra.mxu0 %vm258_vm0, %v3018_v62  ;;  %v3020_v0 = vmax.f32 %v4547_v6, 0.0 }
 0x286   : > { %v3524_v36 = vmul.f32 %v3407_v63, %v3272_v10  ;;  %v4402_v63 = vld [vmem:[%s4840_s24 + $0x13c] sm:$0xff] }
 0x287   : > { %v2507_v13 = vpop.f32.mrf.mxu2 }
 0x288   : > { %3560 = vst.msk [vmem:[%s5553_s6 + $0x78] sm:$0xff] %vm258_vm0, %v3524_v36  ;;  %v3611_v55 = vsel %vm258_vm0, %v3524_v36, 0.0  ;;  %v3678_v54 = vmul.f32 %v3524_v36, %v3524_v36  ;;  %v2583_v35 = vadd.f32 %v2507_v13, %v2238_v53  ;;  %v2852_v15 = vpop.f32.mrf.mxu3  ;;  %v4475_v36 = vld [vmem:[%s4840_s24 + $0x13d] sm:$0xff]  ;;  %s230_s24 = sand.u32 1, %s4717_s16  }
 0x289   : > { %v3612_v23 = vadd.f32 %v3611_v55, %v3610_v20  ;;  %v2165_v38 = vpop.f32.mrf.mxu1  ;;  %s3793_s8 = scalar_lea.sflag [#allocation4], %s230_s24 }
 0x28a   : > { %v3728_v37 = vsel %vm258_vm0, %v3678_v54, 0.0  ;;  %v2928_v60 = vadd.f32 %v2852_v15, %v2583_v35  ;;  %v3200_v49 = vpop.f32.mrf.mxu0  ;;  %v2239_v19 = vadd.f32 %v2165_v38, %v5293_v59  ;;  %v2331_v54 = vmax.f32 %v4402_v63, 0.0 }
 0x28b   : > { %v3729_v24 = vadd.f32 %v3728_v37, %v3727_v17  ;;  %v3021_v38 = vmax.f32 %v4548_v3, 0.0 }
 0x28c   : > { %v3273_v48 = vadd.f32 %v3197_v57, %v2928_v60  ;;  %4364 = vmatmul.msk.f32.gmra.mxu1 %vm258_vm0, %v2327_v46  ;;  %4437 = vmatmul.msk.f32.gmra.mxu2 %vm258_vm0, %v2329_v28  ;;  %v3417_v57 = vpop.permute.xlu2 %3416  ;;  %v3422_v60 = vpop.permute.xlu0 %3421 }
 0x28d   : > { %4510 = vmatmul.msk.f32.gmra.mxu3 %vm258_vm0, %v2674_v5  ;;  %4583 = vmatmul.msk.f32.gmra.mxu0 %vm258_vm0, %v3019_v34 }
 0x28e   : > { %v3525_v26 = vmul.f32 %v3412_v52, %v3273_v48 }
 0x28f   : > { %v2510_v25 = vpop.f32.mrf.mxu2 }
 0x290   : > { %3561 = vst.msk [vmem:[%s5553_s6 + $0x80] sm:$0xff] %vm258_vm0, %v3525_v26  ;;  %v3613_v22 = vsel %vm258_vm0, %v3525_v26, 0.0  ;;  %v3679_v46 = vmul.f32 %v3525_v26, %v3525_v26  ;;  %v2584_v45 = vadd.f32 %v2510_v25, %v2239_v19  ;;  %v2855_v39 = vpop.f32.mrf.mxu3 }
 0x291   : > { %v3614_v32 = vadd.f32 %v3613_v22, %v3612_v23  ;;  %v2168_v20 = vpop.f32.mrf.mxu1  ;;  %v2676_v23 = vmax.f32 %v4475_v36, 0.0 }
 0x292   : > { %v3730_v59 = vsel %vm258_vm0, %v3679_v46, 0.0  ;;  %v2929_v62 = vadd.f32 %v2855_v39, %v2584_v45  ;;  %v3203_v16 = vpop.f32.mrf.mxu0  ;;  %v2240_v10 = vadd.f32 %v2168_v20, %v5306_v14  ;;  %v3427_v39 = vpop.permute.xlu1 %3426 }
 0x293   : > { %v3731_v12 = vadd.f32 %v3730_v59, %v3729_v24 }
 0x294   : > { %v3274_v17 = vadd.f32 %v3200_v49, %v2929_v62  ;;  %4365 = vmatmul.msk.f32.gmra.mxu1 %vm258_vm0, %v2328_v1  ;;  %4438 = vmatmul.msk.f32.gmra.mxu2 %vm258_vm0, %v2330_v29 }
 0x295   : > { %4511 = vmatmul.msk.f32.gmra.mxu3 %vm258_vm0, %v2675_v58  ;;  %4584 = vmatmul.msk.f32.gmra.mxu0 %vm258_vm0, %v3020_v0 }
 0x296   : > { %v3526_v53 = vmul.f32 %v3417_v57, %v3274_v17 }
 0x297   : > { %v2513_v47 = vpop.f32.mrf.mxu2 }
 0x298   : > { %3562 = vst.msk [vmem:[%s5553_s6 + $0x88] sm:$0xff] %vm258_vm0, %v3526_v53  ;;  %v3615_v13 = vsel %vm258_vm0, %v3526_v53, 0.0  ;;  %v3680_v50 = vmul.f32 %v3526_v53, %v3526_v53  ;;  %v2585_v55 = vadd.f32 %v2513_v47, %v2240_v10  ;;  %v2858_v1 = vpop.f32.mrf.mxu3  ;;  %v3432_v53 = vpop.permute.xlu2 %3431 }
 0x299   : > { %v3616_v35 = vadd.f32 %v3615_v13, %v3614_v32  ;;  %v2171_v15 = vpop.f32.mrf.mxu1 }
 0x29a   : > { %v3732_v5 = vsel %vm258_vm0, %v3680_v50, 0.0  ;;  %v2930_v14 = vadd.f32 %v2858_v1, %v2585_v55  ;;  %v3206_v34 = vpop.f32.mrf.mxu0  ;;  %v2241_v24 = vadd.f32 %v2171_v15, %v5320_v43 }
 0x29b   : > { %v3733_v37 = vadd.f32 %v3732_v5, %v3731_v12 }
 0x29c   : > { %v3275_v49 = vadd.f32 %v3203_v16, %v2930_v14  ;;  %4366 = vmatmul.msk.f32.gmra.mxu1 %vm258_vm0, %v2329_v28  ;;  %4439 = vmatmul.msk.f32.gmra.mxu2 %vm258_vm0, %v2331_v54  ;;  %v3437_v14 = vpop.permute.xlu0 %3436 }
 0x29d   : > { %4512 = vmatmul.msk.f32.gmra.mxu3 %vm258_vm0, %v2676_v23  ;;  %4585 = vmatmul.msk.f32.gmra.mxu0 %vm258_vm0, %v3021_v38 }
 0x29e   : > { %v3527_v52 = vmul.f32 %v3422_v60, %v3275_v49 }
 0x29f   : > { %v2516_v48 = vpop.f32.mrf.mxu2 }
 0x2a0   : > { %3563 = vst.msk [vmem:[%s5553_s6 + $0x90] sm:$0xff] %vm258_vm0, %v3527_v52  ;;  %v3617_v7 = vsel %vm258_vm0, %v3527_v52, 0.0  ;;  %v3681_v19 = vmul.f32 %v3527_v52, %v3527_v52  ;;  %v2586_v26 = vadd.f32 %v2516_v48, %v2241_v24  ;;  %v2861_v33 = vpop.f32.mrf.mxu3 }
 0x2a1   : > { %v3618_v4 = vadd.f32 %v3617_v7, %v3616_v35  ;;  %v2174_v28 = vpop.f32.mrf.mxu1 }
 0x2a2   : > { %v3734_v6 = vsel %vm258_vm0, %v3681_v19, 0.0  ;;  %v2931_v25 = vadd.f32 %v2861_v33, %v2586_v26  ;;  %v3209_v22 = vpop.f32.mrf.mxu0  ;;  %v2242_v43 = vadd.f32 %v2174_v28, %v5334_v30 }
 0x2a3   : > { %v3735_v46 = vadd.f32 %v3734_v6, %v3733_v37  ;;  %v3442_v6 = vpop.permute.xlu1 %3441 }
 0x2a4   : > { %v3276_v45 = vadd.f32 %v3206_v34, %v2931_v25 }
 0x2a6   : > { %v3528_v29 = vmul.f32 %v3427_v39, %v3276_v45 }
 0x2a7   : > { %v2519_v32 = vpop.f32.mrf.mxu2 }
 0x2a8   : > { %3564 = vst.msk [vmem:[%s5553_s6 + $0x98] sm:$0xff] %vm258_vm0, %v3528_v29  ;;  %v3619_v20 = vsel %vm258_vm0, %v3528_v29, 0.0  ;;  %v3682_v58 = vmul.f32 %v3528_v29, %v3528_v29  ;;  %v2587_v0 = vadd.f32 %v2519_v32, %v2242_v43  ;;  %v2864_v59 = vpop.f32.mrf.mxu3 }
 0x2a9   : > { %v3620_v62 = vadd.f32 %v3619_v20, %v3618_v4  ;;  %v2177_v16 = vpop.f32.mrf.mxu1 }
 0x2aa   : > { %v3736_v12 = vsel %vm258_vm0, %v3682_v58, 0.0  ;;  %v2932_v57 = vadd.f32 %v2864_v59, %v2587_v0  ;;  %v3212_v17 = vpop.f32.mrf.mxu0  ;;  %v2243_v30 = vadd.f32 %v2177_v16, %v5347_v40  ;;  %v3447_v16 = vpop.permute.xlu2 %3446 }
 0x2ab   : > { %v3737_v63 = vadd.f32 %v3736_v12, %v3735_v46 }
 0x2ac   : > { %v3277_v10 = vadd.f32 %v3209_v22, %v2932_v57 }
 0x2ae   : > { %v3529_v36 = vmul.f32 %v3432_v53, %v3277_v10 }
 0x2af   : > { %v2522_v3 = vpop.f32.mrf.mxu2 }
 0x2b0   : > { %3565 = vst.msk [vmem:[%s5553_s6 + $0xa0] sm:$0xff] %vm258_vm0, %v3529_v36  ;;  %v3621_v47 = vsel %vm258_vm0, %v3529_v36, 0.0  ;;  %v3683_v13 = vmul.f32 %v3529_v36, %v3529_v36  ;;  %v2588_v50 = vadd.f32 %v2522_v3, %v2243_v30  ;;  %v2867_v55 = vpop.f32.mrf.mxu3 }
 0x2b1   : > { %v3622_v1 = vadd.f32 %v3621_v47, %v3620_v62  ;;  %v2180_v54 = vpop.f32.mrf.mxu1 }
 0x2b2   : > { %v3738_v35 = vsel %vm258_vm0, %v3683_v13, 0.0  ;;  %v2933_v15 = vadd.f32 %v2867_v55, %v2588_v50  ;;  %v3215_v23 = vpop.f32.mrf.mxu0  ;;  %v2244_v40 = vadd.f32 %v2180_v54, %v5357_v2 }
 0x2b3   : > { %v3739_v38 = vadd.f32 %v3738_v35, %v3737_v63 }
 0x2b4   : > { %v3278_v5 = vadd.f32 %v3212_v17, %v2933_v15 }
 0x2b6   : > { %v3530_v34 = vmul.f32 %v3437_v14, %v3278_v5 }
 0x2b7   : > { %v2525_v37 = vpop.f32.mrf.mxu2 }
 0x2b8   : > { %3566 = vst.msk [vmem:[%s5553_s6 + $0xa8] sm:$0xff] %vm258_vm0, %v3530_v34  ;;  %v3623_v60 = vsel %vm258_vm0, %v3530_v34, 0.0  ;;  %v3684_v49 = vmul.f32 %v3530_v34, %v3530_v34  ;;  %v2589_v24 = vadd.f32 %v2525_v37, %v2244_v40  ;;  %v2870_v52 = vpop.f32.mrf.mxu3 }
 0x2b9   : > { %v3624_v48 = vadd.f32 %v3623_v60, %v3622_v1  ;;  %v2183_v7 = vpop.f32.mrf.mxu1  ;;  %v3452_v1 = vpop.permute.xlu0 %3451 }
 0x2ba   : > { %v3740_v19 = vsel %vm258_vm0, %v3684_v49, 0.0  ;;  %v2934_v26 = vadd.f32 %v2870_v52, %v2589_v24  ;;  %v3218_v33 = vpop.f32.mrf.mxu0  ;;  %v2245_v2 = vadd.f32 %v2183_v7, %v5367_v18  ;;  %v3457_v52 = vpop.permute.xlu1 %3456 }
 0x2bb   : > { %v3741_v4 = vadd.f32 %v3740_v19, %v3739_v38 }
 0x2bc   : > { %v3279_v28 = vadd.f32 %v3215_v23, %v2934_v26 }
 0x2be   : > { %v3531_v25 = vmul.f32 %v3442_v6, %v3279_v28 }
 0x2bf   : > { %v2528_v22 = vpop.f32.mrf.mxu2 }
 0x2c0   : > { %3567 = vst.msk [vmem:[%s5553_s6 + $0xb0] sm:$0xff] %vm258_vm0, %v3531_v25  ;;  %v3625_v46 = vsel %vm258_vm0, %v3531_v25, 0.0  ;;  %v3685_v45 = vmul.f32 %v3531_v25, %v3531_v25  ;;  %v2590_v39 = vadd.f32 %v2528_v22, %v2245_v2  ;;  %v2873_v43 = vpop.f32.mrf.mxu3 }
 0x2c1   : > { %v3626_v29 = vadd.f32 %v3625_v46, %v3624_v48  ;;  %v2186_v32 = vpop.f32.mrf.mxu1 }
 0x2c2   : > { %v3742_v20 = vsel %vm258_vm0, %v3685_v45, 0.0  ;;  %v2935_v58 = vadd.f32 %v2873_v43, %v2590_v39  ;;  %v3221_v0 = vpop.f32.mrf.mxu0  ;;  %v2246_v18 = vadd.f32 %v2186_v32, %v5380_v8  ;;  %v3462_v39 = vpop.permute.xlu2 %3461 }
 0x2c3   : > { %v3743_v59 = vadd.f32 %v3742_v20, %v3741_v4 }
 0x2c4   : > { %v3280_v62 = vadd.f32 %v3218_v33, %v2935_v58 }
 0x2c6   : > { %v3532_v12 = vmul.f32 %v3447_v16, %v3280_v62 }
 0x2c7   : > { %v2531_v57 = vpop.f32.mrf.mxu2 }
 0x2c8   : > { %3568 = vst.msk [vmem:[%s5553_s6 + $0xb8] sm:$0xff] %vm258_vm0, %v3532_v12  ;;  %v3627_v17 = vsel %vm258_vm0, %v3532_v12, 0.0  ;;  %v3686_v63 = vmul.f32 %v3532_v12, %v3532_v12  ;;  %v2591_v10 = vadd.f32 %v2531_v57, %v2246_v18  ;;  %v2876_v53 = vpop.f32.mrf.mxu3 }
 0x2c9   : > { %v3628_v30 = vadd.f32 %v3627_v17, %v3626_v29  ;;  %v2189_v36 = vpop.f32.mrf.mxu1 }
 0x2ca   : > { %v3744_v3 = vsel %vm258_vm0, %v3686_v63, 0.0  ;;  %v2936_v47 = vadd.f32 %v2876_v53, %v2591_v10  ;;  %v3224_v13 = vpop.f32.mrf.mxu0  ;;  %v2247_v8 = vadd.f32 %v2189_v36, %v5396_v56  ;;  %v3467_v63 = vpop.permute.xlu0 %3466 }
 0x2cb   : > { %v3745_v50 = vadd.f32 %v3744_v3, %v3743_v59 }
 0x2cc   : > { %v3281_v55 = vadd.f32 %v3221_v0, %v2936_v47 }
 0x2ce   : > { %v3533_v54 = vmul.f32 %v3452_v1, %v3281_v55 }
 0x2cf   : > { %v2534_v35 = vpop.f32.mrf.mxu2 }
 0x2d0   : > { %3569 = vst.msk [vmem:[%s5553_s6 + $0xc0] sm:$0xff] %vm258_vm0, %v3533_v54  ;;  %v3629_v15 = vsel %vm258_vm0, %v3533_v54, 0.0  ;;  %v3687_v23 = vmul.f32 %v3533_v54, %v3533_v54  ;;  %v2592_v38 = vadd.f32 %v2534_v35, %v2247_v8  ;;  %v2879_v5 = vpop.f32.mrf.mxu3 }
 0x2d1   : > { %v3630_v14 = vadd.f32 %v3629_v15, %v3628_v30  ;;  %v2192_v40 = vpop.f32.mrf.mxu1  ;;  %v3472_v15 = vpop.permute.xlu1 %3471 }
 0x2d2   : > { %v3746_v34 = vsel %vm258_vm0, %v3687_v23, 0.0  ;;  %v2937_v37 = vadd.f32 %v2879_v5, %v2592_v38  ;;  %v3227_v60 = vpop.f32.mrf.mxu0  ;;  %v2248_v56 = vadd.f32 %v2192_v40, %v5409_v42 }
 0x2d3   : > { %v3747_v49 = vadd.f32 %v3746_v34, %v3745_v50 }
 0x2d4   : > { %v3282_v24 = vadd.f32 %v3224_v13, %v2937_v37 }
 0x2d6   : > { %v3534_v48 = vmul.f32 %v3457_v52, %v3282_v24 }
 0x2d7   : > { %v2537_v7 = vpop.f32.mrf.mxu2 }
 0x2d8   : > { %3570 = vst.msk [vmem:[%s5553_s6 + $0xc8] sm:$0xff] %vm258_vm0, %v3534_v48  ;;  %v3631_v19 = vsel %vm258_vm0, %v3534_v48, 0.0  ;;  %v3688_v26 = vmul.f32 %v3534_v48, %v3534_v48  ;;  %v2593_v33 = vadd.f32 %v2537_v7, %v2248_v56  ;;  %v2882_v4 = vpop.f32.mrf.mxu3  ;;  %v3477_v7 = vpop.permute.xlu2 %3476 }
 0x2d9   : > { %v3632_v28 = vadd.f32 %v3631_v19, %v3630_v14  ;;  %v2195_v6 = vpop.f32.mrf.mxu1 }
 0x2da   : > { %v3748_v2 = vsel %vm258_vm0, %v3688_v26, 0.0  ;;  %v2938_v25 = vadd.f32 %v2882_v4, %v2593_v33  ;;  %v3230_v22 = vpop.f32.mrf.mxu0  ;;  %v2249_v42 = vadd.f32 %v2195_v6, %v5422_v11 }
 0x2db   : > { %v3749_v46 = vadd.f32 %v3748_v2, %v3747_v49 }
 0x2dc   : > { %v3283_v45 = vadd.f32 %v3227_v60, %v2938_v25 }
 0x2de   : > { %v3535_v43 = vmul.f32 %v3462_v39, %v3283_v45 }
 0x2df   : > { %v2540_v29 = vpop.f32.mrf.mxu2 }
 0x2e0   : > { %3571 = vst.msk [vmem:[%s5553_s6 + $0xd0] sm:$0xff] %vm258_vm0, %v3535_v43  ;;  %v3633_v32 = vsel %vm258_vm0, %v3535_v43, 0.0  ;;  %v3689_v20 = vmul.f32 %v3535_v43, %v3535_v43  ;;  %v2594_v58 = vadd.f32 %v2540_v29, %v2249_v42  ;;  %v2885_v0 = vpop.f32.mrf.mxu3  ;;  %v3482_v43 = vpop.permute.xlu0 %3481 }
 0x2e1   : > { %v3634_v59 = vadd.f32 %v3633_v32, %v3632_v28  ;;  %v2198_v62 = vpop.f32.mrf.mxu1 }
 0x2e2   : > { %v3750_v16 = vsel %vm258_vm0, %v3689_v20, 0.0  ;;  %v2939_v18 = vadd.f32 %v2885_v0, %v2594_v58  ;;  %v3233_v12 = vpop.f32.mrf.mxu0  ;;  %v2250_v11 = vadd.f32 %v2198_v62, %v5435_v21 }
 0x2e3   : > { %v3751_v57 = vadd.f32 %v3750_v16, %v3749_v46 }
 0x2e4   : > { %v3284_v17 = vadd.f32 %v3230_v22, %v2939_v18 }
 0x2e6   : > { %v3536_v10 = vmul.f32 %v3467_v63, %v3284_v17 }
 0x2e7   : > { %v2543_v53 = vpop.f32.mrf.mxu2 }
 0x2e8   : > { %3572 = vst.msk [vmem:[%s5553_s6 + $0xd8] sm:$0xff] %vm258_vm0, %v3536_v10  ;;  %v3635_v30 = vsel %vm258_vm0, %v3536_v10, 0.0  ;;  %v3690_v36 = vmul.f32 %v3536_v10, %v3536_v10  ;;  %v2595_v3 = vadd.f32 %v2543_v53, %v2250_v11  ;;  %v2888_v47 = vpop.f32.mrf.mxu3  ;;  %v4736_v11 = vmov 0.0  }
 0x2e9   : > { %v3636_v13 = vadd.f32 %v3635_v30, %v3634_v59  ;;  %v2201_v50 = vpop.f32.mrf.mxu1  ;;  %259 = vst.msk [vmem:[#allocation2] sm:$0xff] %vm258_vm0, %v4736_v11 }
 0x2ea   : > { %v3752_v55 = vsel %vm258_vm0, %v3690_v36, 0.0  ;;  %v2940_v1 = vadd.f32 %v2888_v47, %v2595_v3  ;;  %v3236_v8 = vpop.f32.mrf.mxu0  ;;  %v2251_v21 = vadd.f32 %v2201_v50, %v5448_v31 }
 0x2eb   : > { %v3753_v54 = vadd.f32 %v3752_v55, %v3751_v57 }
 0x2ec   : > { %v3285_v35 = vadd.f32 %v3233_v12, %v2940_v1 }
 0x2ee   : > { %v3537_v23 = vmul.f32 %v3472_v15, %v3285_v35  ;;  %v3492_v15 = vpop.permute.xlu2 %3491 }
 0x2ef   : > { %v2546_v38 = vpop.f32.mrf.mxu2 }
 0x2f0   : > { %3573 = vst.msk [vmem:[%s5553_s6 + $0xe0] sm:$0xff] %vm258_vm0, %v3537_v23  ;;  %v3637_v5 = vsel %vm258_vm0, %v3537_v23, 0.0  ;;  %v3691_v14 = vmul.f32 %v3537_v23, %v3537_v23  ;;  %v2596_v40 = vadd.f32 %v2546_v38, %v2251_v21  ;;  %v2891_v34 = vpop.f32.mrf.mxu3 }
 0x2f1   : > { %v3638_v37 = vadd.f32 %v3637_v5, %v3636_v13  ;;  %v2204_v60 = vpop.f32.mrf.mxu1 }
 0x2f2   : > { %v3754_v49 = vsel %vm258_vm0, %v3691_v14, 0.0  ;;  %v2941_v24 = vadd.f32 %v2891_v34, %v2596_v40  ;;  %v3239_v52 = vpop.f32.mrf.mxu0  ;;  %v2252_v31 = vadd.f32 %v2204_v60, %v5461_v41 }
 0x2f3   : > { %v3755_v56 = vadd.f32 %v3754_v49, %v3753_v54 }
 0x2f4   : > { %v3286_v48 = vadd.f32 %v3236_v8, %v2941_v24 }
 0x2f6   : > { %v3538_v19 = vmul.f32 %v3477_v7, %v3286_v48  ;;  %v3497_v48 = vpop.permute.xlu0 %3496 }
 0x2f7   : > { %v2549_v26 = vpop.f32.mrf.mxu2 }
 0x2f8   : > { %3574 = vst.msk [vmem:[%s5553_s6 + $0xe8] sm:$0xff] %vm258_vm0, %v3538_v19  ;;  %v3639_v33 = vsel %vm258_vm0, %v3538_v19, 0.0  ;;  %v3692_v4 = vmul.f32 %v3538_v19, %v3538_v19  ;;  %v2597_v28 = vadd.f32 %v2549_v26, %v2252_v31  ;;  %v2894_v6 = vpop.f32.mrf.mxu3 }
 0x2f9   : > { %v3640_v2 = vadd.f32 %v3639_v33, %v3638_v37  ;;  %v2207_v25 = vpop.f32.mrf.mxu1 }
 0x2fa   : > { %v3756_v22 = vsel %vm258_vm0, %v3692_v4, 0.0  ;;  %v2942_v46 = vadd.f32 %v2894_v6, %v2597_v28  ;;  %v3242_v45 = vpop.f32.mrf.mxu0  ;;  %v2253_v41 = vadd.f32 %v2207_v25, %v5474_v51  ;;  %v3487_v51 = vpop.permute.xlu1 %3486 }
 0x2fb   : > { %v3757_v39 = vadd.f32 %v3756_v22, %v3755_v56 }
 0x2fc   : > { %v3287_v42 = vadd.f32 %v3239_v52, %v2942_v46 }
 0x2fe   : > { %v3539_v29 = vmul.f32 %v3482_v43, %v3287_v42 }
 0x2ff   : > { %v2552_v32 = vpop.f32.mrf.mxu2 }
 0x300   : > { %3575 = vst.msk [vmem:[%s5553_s6 + $0xf0] sm:$0xff] %vm258_vm0, %v3539_v29  ;;  %v3641_v20 = vsel %vm258_vm0, %v3539_v29, 0.0  ;;  %v3693_v58 = vmul.f32 %v3539_v29, %v3539_v29  ;;  %v2598_v0 = vadd.f32 %v2552_v32, %v2253_v41  ;;  %v2897_v59 = vpop.f32.mrf.mxu3 }
 0x301   : > { %v3642_v62 = vadd.f32 %v3641_v20, %v3640_v2  ;;  %v2210_v16 = vpop.f32.mrf.mxu1 }
 0x302   : > { %v3758_v18 = vsel %vm258_vm0, %v3693_v58, 0.0  ;;  %v2943_v12 = vadd.f32 %v2897_v59, %v2598_v0  ;;  %v3245_v17 = vpop.f32.mrf.mxu0  ;;  %v2254_v10 = vadd.f32 %v2210_v16, %v5487_v61 }
 0x303   : > { %v3759_v57 = vadd.f32 %v3758_v18, %v3757_v39  ;;  %v3502_v39 = vpop.permute.xlu1 %3501 }
 0x304   : > { %v3288_v63 = vadd.f32 %v3242_v45, %v2943_v12  ;;  %v3507_v12 = vpop.permute.xlu2 %3506 }
 0x306   : > { %v3540_v53 = vmul.f32 %v3487_v51, %v3288_v63 }
 0x307   : > { %v2555_v30 = vpop.f32.mrf.mxu2 }
 0x308   : > { %3576 = vst.msk [vmem:[%s5553_s6 + $0xf8] sm:$0xff] %vm258_vm0, %v3540_v53  ;;  %v3643_v36 = vsel %vm258_vm0, %v3540_v53, 0.0  ;;  %v3694_v3 = vmul.f32 %v3540_v53, %v3540_v53  ;;  %v2599_v47 = vadd.f32 %v2555_v30, %v2254_v10  ;;  %v2900_v13 = vpop.f32.mrf.mxu3 }
 0x309   : > { %v3644_v50 = vadd.f32 %v3643_v36, %v3642_v62  ;;  %v2213_v55 = vpop.f32.mrf.mxu1 }
 0x30a   : > { %v3760_v1 = vsel %vm258_vm0, %v3694_v3, 0.0  ;;  %v2944_v8 = vadd.f32 %v2900_v13, %v2599_v47  ;;  %v3248_v21 = vpop.f32.mrf.mxu0  ;;  %v2255_v61 = vadd.f32 %v2213_v55, %v5500_v9 }
 0x30b   : > { %v3761_v54 = vadd.f32 %v3760_v1, %v3759_v57  ;;  %v3581_v1 = vld [vmem:[#allocation2] sm:$0x1] }
 0x30c   : > { %v3289_v35 = vadd.f32 %v3245_v17, %v2944_v8 }
 0x30e   : > { %v3541_v23 = vmul.f32 %v3492_v15, %v3289_v35  ;;  %v3662_v35 = vld [vmem:[#allocation2 + $0x1] sm:$0x1] }
 0x30f   : > { %v2558_v38 = vpop.f32.mrf.mxu2 }
 0x310   : > { %3577 = vst.msk [vmem:[%s5553_s6 + $0x100] sm:$0xff] %vm258_vm0, %v3541_v23  ;;  %v3645_v5 = vsel %vm258_vm0, %v3541_v23, 0.0  ;;  %v3695_v14 = vmul.f32 %v3541_v23, %v3541_v23  ;;  %v2600_v40 = vadd.f32 %v2558_v38, %v2255_v61  ;;  %v2903_v34 = vpop.f32.mrf.mxu3 }
 0x311   : > { %v3646_v37 = vadd.f32 %v3645_v5, %v3644_v50  ;;  %v2216_v60 = vpop.f32.mrf.mxu1 }
 0x312   : > { %v3762_v49 = vsel %vm258_vm0, %v3695_v14, 0.0  ;;  %v2945_v24 = vadd.f32 %v2903_v34, %v2600_v40  ;;  %v2256_v9 = vadd.f32 %v2216_v60, %v5513_v27  ;;  %v3251_v19 = vpop.f32.mrf.mxu0 }
 0x313   : > { %v3763_v52 = vadd.f32 %v3762_v49, %v3761_v54 }
 0x314   : > { %v3290_v56 = vadd.f32 %v3248_v21, %v2945_v24 }
 0x316   : > { %v3542_v7 = vmul.f32 %v3497_v48, %v3290_v56 }
 0x317   : > { %v2561_v31 = vpop.f32.mrf.mxu2 }
 0x318   : > { %3578 = vst.msk [vmem:[%s5553_s6 + $0x108] sm:$0xff] %vm258_vm0, %v3542_v7  ;;  %v3647_v26 = vsel %vm258_vm0, %v3542_v7, 0.0  ;;  %v3696_v33 = vmul.f32 %v3542_v7, %v3542_v7  ;;  %v2601_v4 = vadd.f32 %v2561_v31, %v2256_v9  ;;  %v2906_v28 = vpop.f32.mrf.mxu3 }
 0x319   : > { %v3648_v6 = vadd.f32 %v3647_v26, %v3646_v37  ;;  %v2219_v46 = vpop.f32.mrf.mxu1 }
 0x31a   : > { %v3764_v2 = vsel %vm258_vm0, %v3696_v33, 0.0  ;;  %v2946_v25 = vadd.f32 %v2906_v28, %v2601_v4  ;;  %v2257_v27 = vadd.f32 %v2219_v46, %v5529_v44  ;;  %v3254_v0 = vpop.f32.mrf.mxu0 }
 0x31b   : > { %v3765_v22 = vadd.f32 %v3764_v2, %v3763_v52 }
 0x31c   : > { %v3291_v45 = vadd.f32 %v3251_v19, %v2946_v25 }
 0x31e   : > { %v3543_v42 = vmul.f32 %v3502_v39, %v3291_v45 }
 0x31f   : > { %v2564_v43 = vpop.f32.mrf.mxu2 }
 0x320   : > { %3579 = vst.msk [vmem:[%s5553_s6 + $0x110] sm:$0xff] %vm258_vm0, %v3543_v42  ;;  %v3649_v41 = vsel %vm258_vm0, %v3543_v42, 0.0  ;;  %v3697_v29 = vmul.f32 %v3543_v42, %v3543_v42  ;;  %v2602_v32 = vadd.f32 %v2564_v43, %v2257_v27  ;;  %v2909_v20 = vpop.f32.mrf.mxu3 }
 0x321   : > { %v3650_v58 = vadd.f32 %v3649_v41, %v3648_v6 }
 0x322   : > { %v3766_v59 = vsel %vm258_vm0, %v3697_v29, 0.0  ;;  %v2947_v62 = vadd.f32 %v2909_v20, %v2602_v32 }
 0x323   : > { %v3767_v16 = vadd.f32 %v3766_v59, %v3765_v22 }
 0x324   : > { %v3292_v18 = vadd.f32 %v3254_v0, %v2947_v62 }
 0x326   : > { %v3544_v57 = vmul.f32 %v3507_v12, %v3292_v18 }
 0x328   : > { %3580 = vst.msk [vmem:[%s5553_s6 + $0x118] sm:$0xff] %vm258_vm0, %v3544_v57  ;;  %v3651_v44 = vsel %vm258_vm0, %v3544_v57, 0.0  ;;  %v3698_v17 = vmul.f32 %v3544_v57, %v3544_v57  ;;  %s3963_s6 = sshll.u32 %s230_s24, 3 }
 0x329   : > { %v3652_v63 = vadd.f32 %v3651_v44, %v3650_v58  ;;  %s232_s5 = scalar_lea.vmem [#allocation3], %s3963_s6 }
 0x32a   : > { %v3768_v11 = vsel %vm258_vm0, %v3698_v17, 0.0  ;;  %s3809_s11 = sshll.u32 %s232_s5, 4  ;;  %s3810_s11 = int_to_ptr.vmem [resolvable:$true] %s3809_s11 }
 0x32b   : > { %v3653_v51 = vrot.slane %v3652_v63, 4  ;;  %v3769_v10 = vadd.f32 %v3768_v11, %v3767_v16 }
 0x32d   : > { %v3654_v53 = vadd.f32 %v3653_v51, %v3652_v63  ;;  %v3770_v30 = vrot.slane %v3769_v10, 4 }
 0x32f   : > { %v3655_v36 = vrot.slane %v3654_v53, 2  ;;  %v3771_v3 = vadd.f32 %v3770_v30, %v3769_v10 }
 0x331   : > { %v3656_v47 = vadd.f32 %v3655_v36, %v3654_v53  ;;  %v3772_v13 = vrot.slane %v3771_v3, 2 }
 0x333   : > { %v3657_v50 = vrot.slane %v3656_v47, 1  ;;  %v3773_v55 = vadd.f32 %v3772_v13, %v3771_v3 }
 0x335   : > { %v3658_v8 = vadd.f32 %v3657_v50, %v3656_v47  ;;  %v3774_v54 = vrot.slane %v3773_v55, 1 }
 0x337   : > { %v3659_v15 = vadd.f32 %v3658_v8, %v3581_v1  ;;  %v3775_v21 = vadd.f32 %v3774_v54, %v3773_v55 }
 0x339   : > { %3661 = vst.msk [vmem:[#allocation2] sm:$0x1] %vm3660_vm1, %v3659_v15  ;;  %v3776_v61 = vadd.f32 %v3775_v21, %v3662_v35 }
 0x33b   : > { %3777 = vst.msk [vmem:[#allocation2 + $0x1] sm:$0x1] %vm3660_vm1, %v3776_v61 }
 0x342   : > { %v3781_v23 = vld [vmem:[#allocation2] sm:$0xff] }
 0x343   : > { %3782 = vst.msk [vmem:[%s232_s5] sm:$0xff] %vm258_vm0, %v3781_v23 }
 0x344   : > { %4682 = shalt.err (!%p4679_p5)
}
 0x345   : > { %4595 = dma.vmem_to_hbm [thread:$0]  (%p4802_p4), %s3810_s11, 128, %s3812_s7, %s3793_s8  }
 0x346 PF: > { %p4601_p6 = scmp.ge.s32.totalorder %s4733_s20, 2  ;;  %s3835_s24 = sand.u32 1, %s4713_s15  }
 0x347   : > { %s3836_s6 = scalar_lea.sflag [#allocation4], %s3835_s24 }
 0x348   : > { %p4598_p7 = pnand %p4601_p6, %p4809_p8 }
 0x34a   : > { %p4599_p9 = pneg %p4598_p7 }
 0x34c   : > { %4708 = dma.done.wait (%p4599_p9), %s3836_s6, 128  }
 0x34d   : > { %4710 = vsyncadd (%p4599_p9), %s3836_s6, 4294967168  ;;  %s18_s20 = sadd.s32 1, %s4733_s20   ;;  %s6076_s15 = smov %s4717_s16 }
 0x34e   : > { %p15_p10 = scmp.ge.s32.totalorder %s18_s20, 4   ;;  %s6077_s16 = smov %s4721_s17 }
 0x34f   : > { %s6078_s17 = smov %s4815_s28  ;;  %s6079_s18 = smov %s4729_s19 }
 0x350   : > { %s6080_s19 = smov %s6082_s23  ;;  %17 = sbr.rel (!%p15_p10) target bundleno = 4 (0x4), region = 107 }
 0x355   :  { %3842 = vsyncpa [#allocation4], 1 }
 0x356   :  { %3844 = vsyncpa [#allocation4 + $0x1], 1 }

</bundles_post_ra>
